<compile_context>
chip_gen: v7x
topology: tpu7x:2x2x1
jax: 0.10.0
libtpu: 0.0.40
codegen_flags: <defaults>
</compile_context>

<pallas_src>
import functools
import math

import jax
import jax.numpy as jnp
from jax import lax
from jax.experimental import pallas as pl
from jax.experimental.pallas import tpu as pltpu


def _ru(a, m):
    """Round `a` up to a multiple of `m`."""
    return -(-a // m) * m


def _vmem_capacity_bytes():
    """Physical VMEM per TensorCore; conservative fallback if the query fails."""
    try:
        return int(pltpu.get_tpu_info().vmem_capacity_bytes)
    except Exception:
        return 64 << 20          # v7x-sized fallback -> safe on every generation


def _deepant_kernel(x_ref, w1_ref, b1_ref, w2_ref, b2_ref,
                    wfc1_ref, bfc1_ref, wout_ref, bout_ref, o_ref,
                    *, mxu_dtype, transpose_in_kernel):
    if transpose_in_kernel:
        TB, C, L = x_ref.shape
        # NCL -> NLC once, on-chip: positions -> sublanes, channels -> lanes.
        # x stays lane-dense in HBM and is only read once.
        x = jnp.transpose(x_ref[...], (0, 2, 1))               # (TB, L, C) f32
    else:
        TB, L, C = x_ref.shape
        x = x_ref[...]                                          # (TB, L, C) f32
    C1 = w1_ref.shape[2]                                        # 32 conv channels
    L1 = L - 2
    P1 = L1 // 2
    L2 = P1 - 2
    P2 = L2 // 2

    def conv_relu(inp, w_ref, b_ref, l_out):
        # Conv1d(k=3, valid) + ReLU as 3 accumulated MXU matmuls (one per tap):
        # rows = TB*l_out, contraction = input channels (lanes).  No lane-axis
        # concat of shifted slices (MXU has plenty of slack at K<=32, N=32).
        cin = inp.shape[2]
        w = w_ref[...]                                          # (3, cin, C1)
        acc = None
        for k in range(3):
            lhs = inp[:, k:k + l_out, :].reshape(TB * l_out, cin)
            contrib = jnp.dot(lhs.astype(mxu_dtype), w[k],
                              preferred_element_type=jnp.float32)
            acc = contrib if acc is None else acc + contrib
        h = jnp.maximum(acc + b_ref[...], 0.0)                  # f32
        return h.reshape(TB, l_out, C1)

    def maxpool2(h, p_out):
        # MaxPool1d(2): pair max along the position (sublane) axis; channels
        # stay untouched on lanes.
        hh = h[:, :2 * p_out, :].reshape(TB, p_out, 2, C1)
        return jnp.maximum(hh[:, :, 0, :], hh[:, :, 1, :])      # (TB, p_out, C1)

    h1 = maxpool2(conv_relu(x, w1_ref, b1_ref, L1), P1)         # (TB, P1, 32)
    h2 = maxpool2(conv_relu(h1, w2_ref, b2_ref, L2), P2)        # (TB, P2, 32)

    # denseblock: Linear(32*P2, 40) + ReLU.  fc1 weight is pre-arranged
    # (P2, 32, 40) so the flatten contraction is a short accumulated
    # per-position matmul loop -- no in-kernel flatten relayout.
    # TODO(synk): Dropout(p=0.25) applies only in training; inference forward is identity.
    wfc = wfc1_ref[...]
    y = None
    for p in range(P2):
        contrib = jnp.dot(h2[:, p, :].astype(mxu_dtype), wfc[p],
                          preferred_element_type=jnp.float32)
        y = contrib if y is None else y + contrib
    y = jnp.maximum(y + bfc1_ref[...], 0.0)                     # (TB, 40)

    # out: Linear(40, n_features), padded to 128 lanes for an unmasked store.
    out = jnp.dot(y.astype(mxu_dtype), wout_ref[...],
                  preferred_element_type=jnp.float32) + bout_ref[...]
    o_ref[...] = out.astype(o_ref.dtype)                        # (TB, 128)


def _deepant_forward_impl(x, params, *, mxu_dtype, fuse_transpose):
    B, C, L = x.shape
    w1, b1, w2, b2, wfc1, bfc1, wout, bout = params
    nf = wout.shape[1]
    L1 = L - 2
    P1 = L1 // 2
    L2 = P1 - 2
    P2 = L2 // 2
    assert P2 >= 1, "seq_len too short for DeepAnt"
    assert wfc1.shape[0] == 32 * P2
    NFP = 128                                    # lane-dense output width

    # ---- one-time weight / layout preprocessing (outside the hot kernel) ----
    # conv weights -> (3, C_in, 32):  [k, c, o] == torch w[o, c, k].
    w1p = jnp.transpose(w1, (2, 1, 0)).astype(mxu_dtype)
    w2p = jnp.transpose(w2, (2, 1, 0)).astype(mxu_dtype)
    # fc1 weight -> (P2, 32, 40): entry [p, c, f] == torch flat index c*P2 + p.
    wfc1p = jnp.transpose(wfc1.reshape(32, P2, 40), (1, 0, 2)).astype(mxu_dtype)
    # out weight/bias padded to 128 lanes so the kernel store is unmasked.
    woutp = jnp.zeros((40, NFP), mxu_dtype).at[:, :nf].set(wout.astype(mxu_dtype))
    boutp = jnp.zeros((1, NFP), jnp.float32).at[:, :nf].set(bout.astype(jnp.float32))
    b1p = b1.reshape(1, 32).astype(jnp.float32)
    b2p = b2.reshape(1, 32).astype(jnp.float32)
    bfc1p = bfc1.reshape(1, 40).astype(jnp.float32)

    # ---- VMEM budget -> batch tile (explicit per-generation scoped limit) ----
    LANE = 128
    act_rows = (_ru(L, 8)                # NLC view of x
                + 3 * _ru(L1, 8)         # conv1 tap operand + accumulator + relu
                + _ru(P1, 8)             # pooled h1
                + 3 * _ru(L2, 8)         # conv2 tap operand + accumulator + relu
                + _ru(P2, 8))            # pooled h2
    per_example = (2 * _ru(C, 8) * _ru(L, LANE) * 4      # x block, double-buffered
                   + act_rows * LANE * 4)                # lane-padded f32 intermediates
    weight_bytes = 4 * sum(int(a.size) * a.dtype.itemsize
                           for a in (w1p, w2p, wfc1p, woutp, b1p, b2p, bfc1p, boutp))
    vmem_cap = _vmem_capacity_bytes()                    # 128 MiB v5e/v6e, 64 MiB v7x
    vmem_limit = max(32 << 20, min((vmem_cap * 3) // 4, 100 << 20))
    tile_budget = max((vmem_limit * 7) // 10 - weight_bytes, per_example)
    TB = max(1, min(256, tile_budget // per_example, B))
    if B >= 16:
        # Keep >= 2 grid steps so the "parallel" batch axis can split across
        # TensorCores (v7x megacore); negligible cost on single-core chips.
        TB = min(TB, _ru(-(-B // 2), 8))
    if TB < B:
        TB = max(8, (TB // 8) * 8)       # out-block second-minor: multiple of 8
        TB = min(TB, B)
    nb = -(-B // TB)                     # ragged last tile handled by Pallas masking

    kernel = functools.partial(_deepant_kernel, mxu_dtype=mxu_dtype,
                               transpose_in_kernel=fuse_transpose)
    if fuse_transpose:
        x_in = x.astype(jnp.float32)                               # native (B, C, L)
        x_spec = pl.BlockSpec((TB, C, L), lambda b: (b, 0, 0))
    else:
        x_in = jnp.transpose(x, (0, 2, 1)).astype(jnp.float32)     # (B, L, C) copy
        x_spec = pl.BlockSpec((TB, L, C), lambda b: (b, 0, 0))

    grid_spec = pltpu.PrefetchScalarGridSpec(
        num_scalar_prefetch=0,
        grid=(nb,),
        in_specs=[
            x_spec,                                              # input block
            pl.BlockSpec(w1p.shape, lambda b: (0, 0, 0)),        # conv1 weight
            pl.BlockSpec(b1p.shape, lambda b: (0, 0)),           # conv1 bias
            pl.BlockSpec(w2p.shape, lambda b: (0, 0, 0)),        # conv2 weight
            pl.BlockSpec(b2p.shape, lambda b: (0, 0)),           # conv2 bias
            pl.BlockSpec(wfc1p.shape, lambda b: (0, 0, 0)),      # fc1 weight
            pl.BlockSpec(bfc1p.shape, lambda b: (0, 0)),         # fc1 bias
            pl.BlockSpec(woutp.shape, lambda b: (0, 0)),         # out weight (padded)
            pl.BlockSpec(boutp.shape, lambda b: (0, 0)),         # out bias (padded)
        ],
        out_specs=pl.BlockSpec((TB, NFP), lambda b: (b, 0)),     # lane-dense store
    )
    out = pl.pallas_call(
        kernel,
        out_shape=jax.ShapeDtypeStruct((B, NFP), jnp.float32),
        grid_spec=grid_spec,
        compiler_params=pltpu.CompilerParams(
            dimension_semantics=("parallel",),
            vmem_limit_bytes=int(vmem_limit)),
    )(x_in, w1p, b1p, w2p, b2p, wfc1p, bfc1p, woutp, boutp)
    return out[:, :nf]


def deepant_forward(x, params, *, mxu_dtype=jnp.bfloat16):
    """x: (B, n_features, seq_len) -> (B, n_features) float32."""
    try:
        return _deepant_forward_impl(x, params, mxu_dtype=mxu_dtype,
                                     fuse_transpose=True)
    except Exception:
        # Robustness fallback: if this Mosaic build rejects the in-kernel
        # minor-dim transpose of the (TB, C, L) block, do the NCL->NLC relayout
        # in the wrapper (costs one extra HBM pass; numerics identical).
        return _deepant_forward_impl(x, params, mxu_dtype=mxu_dtype,
                                     fuse_transpose=False)


def deepant_reference(x, params):
    """Pure-JAX reference (lax conv) for validation."""
    w1, b1, w2, b2, wfc1, bfc1, wout, bout = params
    dn = ("NCH", "OIH", "NCH")
    h = lax.conv_general_dilated(x, w1, (1,), "VALID", dimension_numbers=dn)
    h = jnp.maximum(h + b1[None, :, None], 0.0)
    P1 = h.shape[-1] // 2
    h = h[..., :2 * P1].reshape(h.shape[0], 32, P1, 2).max(axis=-1)
    h = lax.conv_general_dilated(h, w2, (1,), "VALID", dimension_numbers=dn)
    h = jnp.maximum(h + b2[None, :, None], 0.0)
    P2 = h.shape[-1] // 2
    h = h[..., :2 * P2].reshape(h.shape[0], 32, P2, 2).max(axis=-1)
    flat = h.reshape(h.shape[0], -1)                 # torch flatten: c*P2 + p
    y = jnp.maximum(flat @ wfc1 + bfc1[None, :], 0.0)
    return y @ wout + bout[None, :]


def init_params(key, n_features, seq_len):
    block1_out = math.ceil((seq_len - 3 - 2) / 2 + 1)
    block2_out = math.ceil((block1_out - 3 - 2) / 2 + 1)
    flatten_out = 32 * block2_out
    ks = jax.random.split(key, 8)
    w1 = jax.random.normal(ks[0], (32, n_features, 3), jnp.float32) * 0.1
    b1 = jax.random.normal(ks[1], (32,), jnp.float32) * 0.1
    w2 = jax.random.normal(ks[2], (32, 32, 3), jnp.float32) * 0.1
    b2 = jax.random.normal(ks[3], (32,), jnp.float32) * 0.1
    # fc weights stored pre-transposed (in_dim, out_dim); rows use the torch
    # flatten order of (B, 32, P2): flat index = c * P2 + p.
    wfc1 = jax.random.normal(ks[4], (flatten_out, 40), jnp.float32) * 0.1
    bfc1 = jax.random.normal(ks[5], (40,), jnp.float32) * 0.1
    wout = jax.random.normal(ks[6], (40, n_features), jnp.float32) * 0.1
    bout = jax.random.normal(ks[7], (n_features,), jnp.float32) * 0.1
    return (w1, b1, w2, b2, wfc1, bfc1, wout, bout)


if __name__ == "__main__":
    B, n_features, seq_len = 2, 4, 32
    key = jax.random.PRNGKey(0)
    kx, kp = jax.random.split(key)
    x = jax.random.normal(kx, (B, n_features, seq_len), jnp.float32)
    params = init_params(kp, n_features, seq_len)

    ref = jax.block_until_ready(deepant_reference(x, params))

    # f32 MXU operands: tight check against the lax reference.
    out_f32 = jax.block_until_ready(
        deepant_forward(x, params, mxu_dtype=jnp.float32))
    assert out_f32.shape == (B, n_features), out_f32.shape
    assert jnp.allclose(out_f32, ref, rtol=1e-4, atol=1e-4), (out_f32, ref)

    # Default path: bf16 MXU operands, f32 accumulation -> loose tolerance.
    out_bf16 = jax.block_until_ready(deepant_forward(x, params))
    assert out_bf16.shape == (B, n_features), out_bf16.shape
    assert jnp.allclose(out_bf16, ref, rtol=5e-2, atol=3e-2), (out_bf16, ref)

    print("KERNEL_OK")
</pallas_src>

<mosaic_0001>
module attributes {stable_mosaic.version = 11 : i64} {
  func.func @_deepant_kernel(%arg0: i32, %arg1: memref<2x4x32xf32, #tpu.memory_space<vmem>>, %arg2: memref<3x4x32xf32, #tpu.memory_space<vmem>>, %arg3: memref<1x32xf32, #tpu.memory_space<vmem>>, %arg4: memref<3x32x32xf32, #tpu.memory_space<vmem>>, %arg5: memref<1x32xf32, #tpu.memory_space<vmem>>, %arg6: memref<6x32x40xf32, #tpu.memory_space<vmem>>, %arg7: memref<1x40xf32, #tpu.memory_space<vmem>>, %arg8: memref<40x128xf32, #tpu.memory_space<vmem>>, %arg9: memref<1x128xf32, #tpu.memory_space<vmem>>, %arg10: memref<2x128xf32, #tpu.memory_space<vmem>>) attributes {dimension_semantics = [#tpu.dimension_semantics<parallel>], iteration_bounds = array<i64: 1>, scalar_prefetch = 0 : i64, scratch_operands = 0 : i64, tpu.core_type = #tpu.core_type<tc>, window_params = [{transform_indices = @transform_0, window_bounds = array<i64: 2, 4, 32>}, {pipeline_mode = #tpu.pipeline_mode<synchronous>, transform_indices = @transform_1, window_bounds = array<i64: 3, 4, 32>}, {pipeline_mode = #tpu.pipeline_mode<synchronous>, transform_indices = @transform_2, window_bounds = array<i64: 1, 32>}, {pipeline_mode = #tpu.pipeline_mode<synchronous>, transform_indices = @transform_3, window_bounds = array<i64: 3, 32, 32>}, {pipeline_mode = #tpu.pipeline_mode<synchronous>, transform_indices = @transform_4, window_bounds = array<i64: 1, 32>}, {pipeline_mode = #tpu.pipeline_mode<synchronous>, transform_indices = @transform_5, window_bounds = array<i64: 6, 32, 40>}, {pipeline_mode = #tpu.pipeline_mode<synchronous>, transform_indices = @transform_6, window_bounds = array<i64: 1, 40>}, {pipeline_mode = #tpu.pipeline_mode<synchronous>, transform_indices = @transform_7, window_bounds = array<i64: 40, 128>}, {pipeline_mode = #tpu.pipeline_mode<synchronous>, transform_indices = @transform_8, window_bounds = array<i64: 1, 128>}, {transform_indices = @transform_9, window_bounds = array<i64: 2, 128>}]} {
    %c0 = arith.constant 0 : index
    %c0_0 = arith.constant 0 : index
    %c0_1 = arith.constant 0 : index
    %0 = vector.load %arg1[%c0, %c0_0, %c0_1] : memref<2x4x32xf32, #tpu.memory_space<vmem>>, vector<2x4x32xf32>
    %1 = tpu.transpose %0, [0, 2, 1] : vector<2x4x32xf32> -> vector<2x32x4xf32>
    %c0_2 = arith.constant 0 : index
    %c0_3 = arith.constant 0 : index
    %c0_4 = arith.constant 0 : index
    %2 = vector.load %arg2[%c0_2, %c0_3, %c0_4] : memref<3x4x32xf32, #tpu.memory_space<vmem>>, vector<3x4x32xf32>
    %3 = vector.extract_strided_slice %1 {offsets = [0, 0, 0], sizes = [2, 30, 4], strides = [1, 1, 1]} : vector<2x32x4xf32> to vector<2x30x4xf32>
    %4 = vector.shape_cast %3 : vector<2x30x4xf32> to vector<60x4xf32>
    %5 = vector.extract_strided_slice %2 {offsets = [0, 0, 0], sizes = [1, 4, 32], strides = [1, 1, 1]} : vector<3x4x32xf32> to vector<1x4x32xf32>
    %6 = vector.shape_cast %5 : vector<1x4x32xf32> to vector<4x32xf32>
    %cst = arith.constant dense<0.000000e+00> : vector<60x32xf32>
    %7 = tpu.matmul %4, %6, %cst {dimension_numbers = #tpu.dot_dimension_numbers<[1], [0], [0], [1], [0, 0, 1, 1], [], []>} : vector<60x4xf32>, vector<4x32xf32>, vector<60x32xf32> -> vector<60x32xf32>
    %8 = vector.extract_strided_slice %1 {offsets = [0, 1, 0], sizes = [2, 30, 4], strides = [1, 1, 1]} : vector<2x32x4xf32> to vector<2x30x4xf32>
    %9 = vector.shape_cast %8 : vector<2x30x4xf32> to vector<60x4xf32>
    %10 = vector.extract_strided_slice %2 {offsets = [1, 0, 0], sizes = [1, 4, 32], strides = [1, 1, 1]} : vector<3x4x32xf32> to vector<1x4x32xf32>
    %11 = vector.shape_cast %10 : vector<1x4x32xf32> to vector<4x32xf32>
    %cst_5 = arith.constant dense<0.000000e+00> : vector<60x32xf32>
    %12 = tpu.matmul %9, %11, %cst_5 {dimension_numbers = #tpu.dot_dimension_numbers<[1], [0], [0], [1], [0, 0, 1, 1], [], []>} : vector<60x4xf32>, vector<4x32xf32>, vector<60x32xf32> -> vector<60x32xf32>
    %13 = arith.addf %7, %12 : vector<60x32xf32>
    %14 = vector.extract_strided_slice %1 {offsets = [0, 2, 0], sizes = [2, 30, 4], strides = [1, 1, 1]} : vector<2x32x4xf32> to vector<2x30x4xf32>
    %15 = vector.shape_cast %14 : vector<2x30x4xf32> to vector<60x4xf32>
    %16 = vector.extract_strided_slice %2 {offsets = [2, 0, 0], sizes = [1, 4, 32], strides = [1, 1, 1]} : vector<3x4x32xf32> to vector<1x4x32xf32>
    %17 = vector.shape_cast %16 : vector<1x4x32xf32> to vector<4x32xf32>
    %cst_6 = arith.constant dense<0.000000e+00> : vector<60x32xf32>
    %18 = tpu.matmul %15, %17, %cst_6 {dimension_numbers = #tpu.dot_dimension_numbers<[1], [0], [0], [1], [0, 0, 1, 1], [], []>} : vector<60x4xf32>, vector<4x32xf32>, vector<60x32xf32> -> vector<60x32xf32>
    %19 = arith.addf %13, %18 : vector<60x32xf32>
    %c0_7 = arith.constant 0 : index
    %c0_8 = arith.constant 0 : index
    %20 = vector.load %arg3[%c0_7, %c0_8] : memref<1x32xf32, #tpu.memory_space<vmem>>, vector<1x32xf32>
    %21 = vector.broadcast %20 : vector<1x32xf32> to vector<60x32xf32>
    %22 = arith.addf %19, %21 : vector<60x32xf32>
    %cst_9 = arith.constant 0.000000e+00 : f32
    %23 = vector.broadcast %cst_9 : f32 to vector<60x32xf32>
    %24 = arith.maximumf %22, %23 : vector<60x32xf32>
    %25 = vector.shape_cast %24 : vector<60x32xf32> to vector<2x30x32xf32>
    %26 = vector.shape_cast %25 : vector<2x30x32xf32> to vector<2x15x2x32xf32>
    %27 = vector.extract_strided_slice %26 {offsets = [0, 0, 0, 0], sizes = [2, 15, 1, 32], strides = [1, 1, 1, 1]} : vector<2x15x2x32xf32> to vector<2x15x1x32xf32>
    %28 = vector.shape_cast %27 : vector<2x15x1x32xf32> to vector<2x15x32xf32>
    %29 = vector.extract_strided_slice %26 {offsets = [0, 0, 1, 0], sizes = [2, 15, 1, 32], strides = [1, 1, 1, 1]} : vector<2x15x2x32xf32> to vector<2x15x1x32xf32>
    %30 = vector.shape_cast %29 : vector<2x15x1x32xf32> to vector<2x15x32xf32>
    %31 = arith.maximumf %28, %30 : vector<2x15x32xf32>
    %c0_10 = arith.constant 0 : index
    %c0_11 = arith.constant 0 : index
    %c0_12 = arith.constant 0 : index
    %32 = vector.load %arg4[%c0_10, %c0_11, %c0_12] : memref<3x32x32xf32, #tpu.memory_space<vmem>>, vector<3x32x32xf32>
    %33 = vector.extract_strided_slice %31 {offsets = [0, 0, 0], sizes = [2, 13, 32], strides = [1, 1, 1]} : vector<2x15x32xf32> to vector<2x13x32xf32>
    %34 = vector.shape_cast %33 : vector<2x13x32xf32> to vector<26x32xf32>
    %35 = vector.extract_strided_slice %32 {offsets = [0, 0, 0], sizes = [1, 32, 32], strides = [1, 1, 1]} : vector<3x32x32xf32> to vector<1x32x32xf32>
    %36 = vector.shape_cast %35 : vector<1x32x32xf32> to vector<32x32xf32>
    %cst_13 = arith.constant dense<0.000000e+00> : vector<26x32xf32>
    %37 = tpu.matmul %34, %36, %cst_13 {dimension_numbers = #tpu.dot_dimension_numbers<[1], [0], [0], [1], [0, 0, 1, 1], [], []>} : vector<26x32xf32>, vector<32x32xf32>, vector<26x32xf32> -> vector<26x32xf32>
    %38 = vector.extract_strided_slice %31 {offsets = [0, 1, 0], sizes = [2, 13, 32], strides = [1, 1, 1]} : vector<2x15x32xf32> to vector<2x13x32xf32>
    %39 = vector.shape_cast %38 : vector<2x13x32xf32> to vector<26x32xf32>
    %40 = vector.extract_strided_slice %32 {offsets = [1, 0, 0], sizes = [1, 32, 32], strides = [1, 1, 1]} : vector<3x32x32xf32> to vector<1x32x32xf32>
    %41 = vector.shape_cast %40 : vector<1x32x32xf32> to vector<32x32xf32>
    %cst_14 = arith.constant dense<0.000000e+00> : vector<26x32xf32>
    %42 = tpu.matmul %39, %41, %cst_14 {dimension_numbers = #tpu.dot_dimension_numbers<[1], [0], [0], [1], [0, 0, 1, 1], [], []>} : vector<26x32xf32>, vector<32x32xf32>, vector<26x32xf32> -> vector<26x32xf32>
    %43 = arith.addf %37, %42 : vector<26x32xf32>
    %44 = vector.extract_strided_slice %31 {offsets = [0, 2, 0], sizes = [2, 13, 32], strides = [1, 1, 1]} : vector<2x15x32xf32> to vector<2x13x32xf32>
    %45 = vector.shape_cast %44 : vector<2x13x32xf32> to vector<26x32xf32>
    %46 = vector.extract_strided_slice %32 {offsets = [2, 0, 0], sizes = [1, 32, 32], strides = [1, 1, 1]} : vector<3x32x32xf32> to vector<1x32x32xf32>
    %47 = vector.shape_cast %46 : vector<1x32x32xf32> to vector<32x32xf32>
    %cst_15 = arith.constant dense<0.000000e+00> : vector<26x32xf32>
    %48 = tpu.matmul %45, %47, %cst_15 {dimension_numbers = #tpu.dot_dimension_numbers<[1], [0], [0], [1], [0, 0, 1, 1], [], []>} : vector<26x32xf32>, vector<32x32xf32>, vector<26x32xf32> -> vector<26x32xf32>
    %49 = arith.addf %43, %48 : vector<26x32xf32>
    %c0_16 = arith.constant 0 : index
    %c0_17 = arith.constant 0 : index
    %50 = vector.load %arg5[%c0_16, %c0_17] : memref<1x32xf32, #tpu.memory_space<vmem>>, vector<1x32xf32>
    %51 = vector.broadcast %50 : vector<1x32xf32> to vector<26x32xf32>
    %52 = arith.addf %49, %51 : vector<26x32xf32>
    %cst_18 = arith.constant 0.000000e+00 : f32
    %53 = vector.broadcast %cst_18 : f32 to vector<26x32xf32>
    %54 = arith.maximumf %52, %53 : vector<26x32xf32>
    %55 = vector.shape_cast %54 : vector<26x32xf32> to vector<2x13x32xf32>
    %56 = vector.extract_strided_slice %55 {offsets = [0, 0, 0], sizes = [2, 12, 32], strides = [1, 1, 1]} : vector<2x13x32xf32> to vector<2x12x32xf32>
    %57 = vector.shape_cast %56 : vector<2x12x32xf32> to vector<2x6x2x32xf32>
    %58 = vector.extract_strided_slice %57 {offsets = [0, 0, 0, 0], sizes = [2, 6, 1, 32], strides = [1, 1, 1, 1]} : vector<2x6x2x32xf32> to vector<2x6x1x32xf32>
    %59 = vector.shape_cast %58 : vector<2x6x1x32xf32> to vector<2x6x32xf32>
    %60 = vector.extract_strided_slice %57 {offsets = [0, 0, 1, 0], sizes = [2, 6, 1, 32], strides = [1, 1, 1, 1]} : vector<2x6x2x32xf32> to vector<2x6x1x32xf32>
    %61 = vector.shape_cast %60 : vector<2x6x1x32xf32> to vector<2x6x32xf32>
    %62 = arith.maximumf %59, %61 : vector<2x6x32xf32>
    %c0_19 = arith.constant 0 : index
    %c0_20 = arith.constant 0 : index
    %c0_21 = arith.constant 0 : index
    %63 = vector.load %arg6[%c0_19, %c0_20, %c0_21] : memref<6x32x40xf32, #tpu.memory_space<vmem>>, vector<6x32x40xf32>
    %64 = vector.extract_strided_slice %62 {offsets = [0, 0, 0], sizes = [2, 1, 32], strides = [1, 1, 1]} : vector<2x6x32xf32> to vector<2x1x32xf32>
    %65 = vector.shape_cast %64 : vector<2x1x32xf32> to vector<2x32xf32>
    %66 = vector.extract_strided_slice %63 {offsets = [0, 0, 0], sizes = [1, 32, 40], strides = [1, 1, 1]} : vector<6x32x40xf32> to vector<1x32x40xf32>
    %67 = vector.shape_cast %66 : vector<1x32x40xf32> to vector<32x40xf32>
    %cst_22 = arith.constant dense<0.000000e+00> : vector<2x40xf32>
    %68 = tpu.matmul %65, %67, %cst_22 {dimension_numbers = #tpu.dot_dimension_numbers<[1], [0], [0], [1], [0, 0, 1, 1], [], []>} : vector<2x32xf32>, vector<32x40xf32>, vector<2x40xf32> -> vector<2x40xf32>
    %69 = vector.extract_strided_slice %62 {offsets = [0, 1, 0], sizes = [2, 1, 32], strides = [1, 1, 1]} : vector<2x6x32xf32> to vector<2x1x32xf32>
    %70 = vector.shape_cast %69 : vector<2x1x32xf32> to vector<2x32xf32>
    %71 = vector.extract_strided_slice %63 {offsets = [1, 0, 0], sizes = [1, 32, 40], strides = [1, 1, 1]} : vector<6x32x40xf32> to vector<1x32x40xf32>
    %72 = vector.shape_cast %71 : vector<1x32x40xf32> to vector<32x40xf32>
    %cst_23 = arith.constant dense<0.000000e+00> : vector<2x40xf32>
    %73 = tpu.matmul %70, %72, %cst_23 {dimension_numbers = #tpu.dot_dimension_numbers<[1], [0], [0], [1], [0, 0, 1, 1], [], []>} : vector<2x32xf32>, vector<32x40xf32>, vector<2x40xf32> -> vector<2x40xf32>
    %74 = arith.addf %68, %73 : vector<2x40xf32>
    %75 = vector.extract_strided_slice %62 {offsets = [0, 2, 0], sizes = [2, 1, 32], strides = [1, 1, 1]} : vector<2x6x32xf32> to vector<2x1x32xf32>
    %76 = vector.shape_cast %75 : vector<2x1x32xf32> to vector<2x32xf32>
    %77 = vector.extract_strided_slice %63 {offsets = [2, 0, 0], sizes = [1, 32, 40], strides = [1, 1, 1]} : vector<6x32x40xf32> to vector<1x32x40xf32>
    %78 = vector.shape_cast %77 : vector<1x32x40xf32> to vector<32x40xf32>
    %cst_24 = arith.constant dense<0.000000e+00> : vector<2x40xf32>
    %79 = tpu.matmul %76, %78, %cst_24 {dimension_numbers = #tpu.dot_dimension_numbers<[1], [0], [0], [1], [0, 0, 1, 1], [], []>} : vector<2x32xf32>, vector<32x40xf32>, vector<2x40xf32> -> vector<2x40xf32>
    %80 = arith.addf %74, %79 : vector<2x40xf32>
    %81 = vector.extract_strided_slice %62 {offsets = [0, 3, 0], sizes = [2, 1, 32], strides = [1, 1, 1]} : vector<2x6x32xf32> to vector<2x1x32xf32>
    %82 = vector.shape_cast %81 : vector<2x1x32xf32> to vector<2x32xf32>
    %83 = vector.extract_strided_slice %63 {offsets = [3, 0, 0], sizes = [1, 32, 40], strides = [1, 1, 1]} : vector<6x32x40xf32> to vector<1x32x40xf32>
    %84 = vector.shape_cast %83 : vector<1x32x40xf32> to vector<32x40xf32>
    %cst_25 = arith.constant dense<0.000000e+00> : vector<2x40xf32>
    %85 = tpu.matmul %82, %84, %cst_25 {dimension_numbers = #tpu.dot_dimension_numbers<[1], [0], [0], [1], [0, 0, 1, 1], [], []>} : vector<2x32xf32>, vector<32x40xf32>, vector<2x40xf32> -> vector<2x40xf32>
    %86 = arith.addf %80, %85 : vector<2x40xf32>
    %87 = vector.extract_strided_slice %62 {offsets = [0, 4, 0], sizes = [2, 1, 32], strides = [1, 1, 1]} : vector<2x6x32xf32> to vector<2x1x32xf32>
    %88 = vector.shape_cast %87 : vector<2x1x32xf32> to vector<2x32xf32>
    %89 = vector.extract_strided_slice %63 {offsets = [4, 0, 0], sizes = [1, 32, 40], strides = [1, 1, 1]} : vector<6x32x40xf32> to vector<1x32x40xf32>
    %90 = vector.shape_cast %89 : vector<1x32x40xf32> to vector<32x40xf32>
    %cst_26 = arith.constant dense<0.000000e+00> : vector<2x40xf32>
    %91 = tpu.matmul %88, %90, %cst_26 {dimension_numbers = #tpu.dot_dimension_numbers<[1], [0], [0], [1], [0, 0, 1, 1], [], []>} : vector<2x32xf32>, vector<32x40xf32>, vector<2x40xf32> -> vector<2x40xf32>
    %92 = arith.addf %86, %91 : vector<2x40xf32>
    %93 = vector.extract_strided_slice %62 {offsets = [0, 5, 0], sizes = [2, 1, 32], strides = [1, 1, 1]} : vector<2x6x32xf32> to vector<2x1x32xf32>
    %94 = vector.shape_cast %93 : vector<2x1x32xf32> to vector<2x32xf32>
    %95 = vector.extract_strided_slice %63 {offsets = [5, 0, 0], sizes = [1, 32, 40], strides = [1, 1, 1]} : vector<6x32x40xf32> to vector<1x32x40xf32>
    %96 = vector.shape_cast %95 : vector<1x32x40xf32> to vector<32x40xf32>
    %cst_27 = arith.constant dense<0.000000e+00> : vector<2x40xf32>
    %97 = tpu.matmul %94, %96, %cst_27 {dimension_numbers = #tpu.dot_dimension_numbers<[1], [0], [0], [1], [0, 0, 1, 1], [], []>} : vector<2x32xf32>, vector<32x40xf32>, vector<2x40xf32> -> vector<2x40xf32>
    %98 = arith.addf %92, %97 : vector<2x40xf32>
    %c0_28 = arith.constant 0 : index
    %c0_29 = arith.constant 0 : index
    %99 = vector.load %arg7[%c0_28, %c0_29] : memref<1x40xf32, #tpu.memory_space<vmem>>, vector<1x40xf32>
    %100 = vector.broadcast %99 : vector<1x40xf32> to vector<2x40xf32>
    %101 = arith.addf %98, %100 : vector<2x40xf32>
    %cst_30 = arith.constant 0.000000e+00 : f32
    %102 = vector.broadcast %cst_30 : f32 to vector<2x40xf32>
    %103 = arith.maximumf %101, %102 : vector<2x40xf32>
    %c0_31 = arith.constant 0 : index
    %c0_32 = arith.constant 0 : index
    %104 = vector.load %arg8[%c0_31, %c0_32] : memref<40x128xf32, #tpu.memory_space<vmem>>, vector<40x128xf32>
    %cst_33 = arith.constant dense<0.000000e+00> : vector<2x128xf32>
    %105 = tpu.matmul %103, %104, %cst_33 {dimension_numbers = #tpu.dot_dimension_numbers<[1], [0], [0], [1], [0, 0, 1, 1], [], []>} : vector<2x40xf32>, vector<40x128xf32>, vector<2x128xf32> -> vector<2x128xf32>
    %c0_34 = arith.constant 0 : index
    %c0_35 = arith.constant 0 : index
    %106 = vector.load %arg9[%c0_34, %c0_35] : memref<1x128xf32, #tpu.memory_space<vmem>>, vector<1x128xf32>
    %107 = vector.broadcast %106 : vector<1x128xf32> to vector<2x128xf32>
    %108 = arith.addf %105, %107 : vector<2x128xf32>
    %c0_36 = arith.constant 0 : index
    %c0_37 = arith.constant 0 : index
    %109 = vector.load %arg10[%c0_36, %c0_37] : memref<2x128xf32, #tpu.memory_space<vmem>>, vector<2x128xf32>
    tpu.vector_store %arg10[%c0_36, %c0_37], %108 {strides = array<i32>} : memref<2x128xf32, #tpu.memory_space<vmem>>, vector<2x128xf32>,
    return
  }
  func.func @transform_0(%arg0: i32) -> (i32, i32, i32) {
    %c0_i32 = arith.constant 0 : i32
    %c0_i32_0 = arith.constant 0 : i32
    %c0_i32_1 = arith.constant 0 : i32
    return %arg0, %c0_i32, %c0_i32_0 : i32, i32, i32
  }
  func.func @transform_1(%arg0: i32) -> (i32, i32, i32) {
    %c0_i32 = arith.constant 0 : i32
    %c0_i32_0 = arith.constant 0 : i32
    %c0_i32_1 = arith.constant 0 : i32
    %c0_i32_2 = arith.constant 0 : i32
    return %c0_i32, %c0_i32_0, %c0_i32_1 : i32, i32, i32
  }
  func.func @transform_2(%arg0: i32) -> (i32, i32) {
    %c0_i32 = arith.constant 0 : i32
    %c0_i32_0 = arith.constant 0 : i32
    %c0_i32_1 = arith.constant 0 : i32
    return %c0_i32, %c0_i32_0 : i32, i32
  }
  func.func @transform_3(%arg0: i32) -> (i32, i32, i32) {
    %c0_i32 = arith.constant 0 : i32
    %c0_i32_0 = arith.constant 0 : i32
    %c0_i32_1 = arith.constant 0 : i32
    %c0_i32_2 = arith.constant 0 : i32
    return %c0_i32, %c0_i32_0, %c0_i32_1 : i32, i32, i32
  }
  func.func @transform_4(%arg0: i32) -> (i32, i32) {
    %c0_i32 = arith.constant 0 : i32
    %c0_i32_0 = arith.constant 0 : i32
    %c0_i32_1 = arith.constant 0 : i32
    return %c0_i32, %c0_i32_0 : i32, i32
  }
  func.func @transform_5(%arg0: i32) -> (i32, i32, i32) {
    %c0_i32 = arith.constant 0 : i32
    %c0_i32_0 = arith.constant 0 : i32
    %c0_i32_1 = arith.constant 0 : i32
    %c0_i32_2 = arith.constant 0 : i32
    return %c0_i32, %c0_i32_0, %c0_i32_1 : i32, i32, i32
  }
  func.func @transform_6(%arg0: i32) -> (i32, i32) {
    %c0_i32 = arith.constant 0 : i32
    %c0_i32_0 = arith.constant 0 : i32
    %c0_i32_1 = arith.constant 0 : i32
    return %c0_i32, %c0_i32_0 : i32, i32
  }
  func.func @transform_7(%arg0: i32) -> (i32, i32) {
    %c0_i32 = arith.constant 0 : i32
    %c0_i32_0 = arith.constant 0 : i32
    %c0_i32_1 = arith.constant 0 : i32
    return %c0_i32, %c0_i32_0 : i32, i32
  }
  func.func @transform_8(%arg0: i32) -> (i32, i32) {
    %c0_i32 = arith.constant 0 : i32
    %c0_i32_0 = arith.constant 0 : i32
    %c0_i32_1 = arith.constant 0 : i32
    return %c0_i32, %c0_i32_0 : i32, i32
  }
  func.func @transform_9(%arg0: i32) -> (i32, i32) {
    %c0_i32 = arith.constant 0 : i32
    %c0_i32_0 = arith.constant 0 : i32
    return %arg0, %c0_i32 : i32, i32
  }
}

module attributes {stable_mosaic.version = 11 : i64} {
  func.func @_deepant_kernel(%arg0: i32, %arg1: memref<2x32x4xf32, #tpu.memory_space<vmem>>, %arg2: memref<3x4x32xf32, #tpu.memory_space<vmem>>, %arg3: memref<1x32xf32, #tpu.memory_space<vmem>>, %arg4: memref<3x32x32xf32, #tpu.memory_space<vmem>>, %arg5: memref<1x32xf32, #tpu.memory_space<vmem>>, %arg6: memref<6x32x40xf32, #tpu.memory_space<vmem>>, %arg7: memref<1x40xf32, #tpu.memory_space<vmem>>, %arg8: memref<40x128xf32, #tpu.memory_space<vmem>>, %arg9: memref<1x128xf32, #tpu.memory_space<vmem>>, %arg10: memref<2x128xf32, #tpu.memory_space<vmem>>) attributes {dimension_semantics = [#tpu.dimension_semantics<parallel>], iteration_bounds = array<i64: 1>, scalar_prefetch = 0 : i64, scratch_operands = 0 : i64, tpu.core_type = #tpu.core_type<tc>, window_params = [{transform_indices = @transform_0, window_bounds = array<i64: 2, 32, 4>}, {pipeline_mode = #tpu.pipeline_mode<synchronous>, transform_indices = @transform_1, window_bounds = array<i64: 3, 4, 32>}, {pipeline_mode = #tpu.pipeline_mode<synchronous>, transform_indices = @transform_2, window_bounds = array<i64: 1, 32>}, {pipeline_mode = #tpu.pipeline_mode<synchronous>, transform_indices = @transform_3, window_bounds = array<i64: 3, 32, 32>}, {pipeline_mode = #tpu.pipeline_mode<synchronous>, transform_indices = @transform_4, window_bounds = array<i64: 1, 32>}, {pipeline_mode = #tpu.pipeline_mode<synchronous>, transform_indices = @transform_5, window_bounds = array<i64: 6, 32, 40>}, {pipeline_mode = #tpu.pipeline_mode<synchronous>, transform_indices = @transform_6, window_bounds = array<i64: 1, 40>}, {pipeline_mode = #tpu.pipeline_mode<synchronous>, transform_indices = @transform_7, window_bounds = array<i64: 40, 128>}, {pipeline_mode = #tpu.pipeline_mode<synchronous>, transform_indices = @transform_8, window_bounds = array<i64: 1, 128>}, {transform_indices = @transform_9, window_bounds = array<i64: 2, 128>}]} {
    %c0 = arith.constant 0 : index
    %c0_0 = arith.constant 0 : index
    %c0_1 = arith.constant 0 : index
    %0 = vector.load %arg1[%c0, %c0_0, %c0_1] : memref<2x32x4xf32, #tpu.memory_space<vmem>>, vector<2x32x4xf32>
    %c0_2 = arith.constant 0 : index
    %c0_3 = arith.constant 0 : index
    %c0_4 = arith.constant 0 : index
    %1 = vector.load %arg2[%c0_2, %c0_3, %c0_4] : memref<3x4x32xf32, #tpu.memory_space<vmem>>, vector<3x4x32xf32>
    %2 = vector.extract_strided_slice %0 {offsets = [0, 0, 0], sizes = [2, 30, 4], strides = [1, 1, 1]} : vector<2x32x4xf32> to vector<2x30x4xf32>
    %3 = vector.shape_cast %2 : vector<2x30x4xf32> to vector<60x4xf32>
    %4 = vector.extract_strided_slice %1 {offsets = [0, 0, 0], sizes = [1, 4, 32], strides = [1, 1, 1]} : vector<3x4x32xf32> to vector<1x4x32xf32>
    %5 = vector.shape_cast %4 : vector<1x4x32xf32> to vector<4x32xf32>
    %cst = arith.constant dense<0.000000e+00> : vector<60x32xf32>
    %6 = tpu.matmul %3, %5, %cst {dimension_numbers = #tpu.dot_dimension_numbers<[1], [0], [0], [1], [0, 0, 1, 1], [], []>} : vector<60x4xf32>, vector<4x32xf32>, vector<60x32xf32> -> vector<60x32xf32>
    %7 = vector.extract_strided_slice %0 {offsets = [0, 1, 0], sizes = [2, 30, 4], strides = [1, 1, 1]} : vector<2x32x4xf32> to vector<2x30x4xf32>
    %8 = vector.shape_cast %7 : vector<2x30x4xf32> to vector<60x4xf32>
    %9 = vector.extract_strided_slice %1 {offsets = [1, 0, 0], sizes = [1, 4, 32], strides = [1, 1, 1]} : vector<3x4x32xf32> to vector<1x4x32xf32>
    %10 = vector.shape_cast %9 : vector<1x4x32xf32> to vector<4x32xf32>
    %cst_5 = arith.constant dense<0.000000e+00> : vector<60x32xf32>
    %11 = tpu.matmul %8, %10, %cst_5 {dimension_numbers = #tpu.dot_dimension_numbers<[1], [0], [0], [1], [0, 0, 1, 1], [], []>} : vector<60x4xf32>, vector<4x32xf32>, vector<60x32xf32> -> vector<60x32xf32>
    %12 = arith.addf %6, %11 : vector<60x32xf32>
    %13 = vector.extract_strided_slice %0 {offsets = [0, 2, 0], sizes = [2, 30, 4], strides = [1, 1, 1]} : vector<2x32x4xf32> to vector<2x30x4xf32>
    %14 = vector.shape_cast %13 : vector<2x30x4xf32> to vector<60x4xf32>
    %15 = vector.extract_strided_slice %1 {offsets = [2, 0, 0], sizes = [1, 4, 32], strides = [1, 1, 1]} : vector<3x4x32xf32> to vector<1x4x32xf32>
    %16 = vector.shape_cast %15 : vector<1x4x32xf32> to vector<4x32xf32>
    %cst_6 = arith.constant dense<0.000000e+00> : vector<60x32xf32>
    %17 = tpu.matmul %14, %16, %cst_6 {dimension_numbers = #tpu.dot_dimension_numbers<[1], [0], [0], [1], [0, 0, 1, 1], [], []>} : vector<60x4xf32>, vector<4x32xf32>, vector<60x32xf32> -> vector<60x32xf32>
    %18 = arith.addf %12, %17 : vector<60x32xf32>
    %c0_7 = arith.constant 0 : index
    %c0_8 = arith.constant 0 : index
    %19 = vector.load %arg3[%c0_7, %c0_8] : memref<1x32xf32, #tpu.memory_space<vmem>>, vector<1x32xf32>
    %20 = vector.broadcast %19 : vector<1x32xf32> to vector<60x32xf32>
    %21 = arith.addf %18, %20 : vector<60x32xf32>
    %cst_9 = arith.constant 0.000000e+00 : f32
    %22 = vector.broadcast %cst_9 : f32 to vector<60x32xf32>
    %23 = arith.maximumf %21, %22 : vector<60x32xf32>
    %24 = vector.shape_cast %23 : vector<60x32xf32> to vector<2x30x32xf32>
    %25 = vector.shape_cast %24 : vector<2x30x32xf32> to vector<2x15x2x32xf32>
    %26 = vector.extract_strided_slice %25 {offsets = [0, 0, 0, 0], sizes = [2, 15, 1, 32], strides = [1, 1, 1, 1]} : vector<2x15x2x32xf32> to vector<2x15x1x32xf32>
    %27 = vector.shape_cast %26 : vector<2x15x1x32xf32> to vector<2x15x32xf32>
    %28 = vector.extract_strided_slice %25 {offsets = [0, 0, 1, 0], sizes = [2, 15, 1, 32], strides = [1, 1, 1, 1]} : vector<2x15x2x32xf32> to vector<2x15x1x32xf32>
    %29 = vector.shape_cast %28 : vector<2x15x1x32xf32> to vector<2x15x32xf32>
    %30 = arith.maximumf %27, %29 : vector<2x15x32xf32>
    %c0_10 = arith.constant 0 : index
    %c0_11 = arith.constant 0 : index
    %c0_12 = arith.constant 0 : index
    %31 = vector.load %arg4[%c0_10, %c0_11, %c0_12] : memref<3x32x32xf32, #tpu.memory_space<vmem>>, vector<3x32x32xf32>
    %32 = vector.extract_strided_slice %30 {offsets = [0, 0, 0], sizes = [2, 13, 32], strides = [1, 1, 1]} : vector<2x15x32xf32> to vector<2x13x32xf32>
    %33 = vector.shape_cast %32 : vector<2x13x32xf32> to vector<26x32xf32>
    %34 = vector.extract_strided_slice %31 {offsets = [0, 0, 0], sizes = [1, 32, 32], strides = [1, 1, 1]} : vector<3x32x32xf32> to vector<1x32x32xf32>
    %35 = vector.shape_cast %34 : vector<1x32x32xf32> to vector<32x32xf32>
    %cst_13 = arith.constant dense<0.000000e+00> : vector<26x32xf32>
    %36 = tpu.matmul %33, %35, %cst_13 {dimension_numbers = #tpu.dot_dimension_numbers<[1], [0], [0], [1], [0, 0, 1, 1], [], []>} : vector<26x32xf32>, vector<32x32xf32>, vector<26x32xf32> -> vector<26x32xf32>
    %37 = vector.extract_strided_slice %30 {offsets = [0, 1, 0], sizes = [2, 13, 32], strides = [1, 1, 1]} : vector<2x15x32xf32> to vector<2x13x32xf32>
    %38 = vector.shape_cast %37 : vector<2x13x32xf32> to vector<26x32xf32>
    %39 = vector.extract_strided_slice %31 {offsets = [1, 0, 0], sizes = [1, 32, 32], strides = [1, 1, 1]} : vector<3x32x32xf32> to vector<1x32x32xf32>
    %40 = vector.shape_cast %39 : vector<1x32x32xf32> to vector<32x32xf32>
    %cst_14 = arith.constant dense<0.000000e+00> : vector<26x32xf32>
    %41 = tpu.matmul %38, %40, %cst_14 {dimension_numbers = #tpu.dot_dimension_numbers<[1], [0], [0], [1], [0, 0, 1, 1], [], []>} : vector<26x32xf32>, vector<32x32xf32>, vector<26x32xf32> -> vector<26x32xf32>
    %42 = arith.addf %36, %41 : vector<26x32xf32>
    %43 = vector.extract_strided_slice %30 {offsets = [0, 2, 0], sizes = [2, 13, 32], strides = [1, 1, 1]} : vector<2x15x32xf32> to vector<2x13x32xf32>
    %44 = vector.shape_cast %43 : vector<2x13x32xf32> to vector<26x32xf32>
    %45 = vector.extract_strided_slice %31 {offsets = [2, 0, 0], sizes = [1, 32, 32], strides = [1, 1, 1]} : vector<3x32x32xf32> to vector<1x32x32xf32>
    %46 = vector.shape_cast %45 : vector<1x32x32xf32> to vector<32x32xf32>
    %cst_15 = arith.constant dense<0.000000e+00> : vector<26x32xf32>
    %47 = tpu.matmul %44, %46, %cst_15 {dimension_numbers = #tpu.dot_dimension_numbers<[1], [0], [0], [1], [0, 0, 1, 1], [], []>} : vector<26x32xf32>, vector<32x32xf32>, vector<26x32xf32> -> vector<26x32xf32>
    %48 = arith.addf %42, %47 : vector<26x32xf32>
    %c0_16 = arith.constant 0 : index
    %c0_17 = arith.constant 0 : index
    %49 = vector.load %arg5[%c0_16, %c0_17] : memref<1x32xf32, #tpu.memory_space<vmem>>, vector<1x32xf32>
    %50 = vector.broadcast %49 : vector<1x32xf32> to vector<26x32xf32>
    %51 = arith.addf %48, %50 : vector<26x32xf32>
    %cst_18 = arith.constant 0.000000e+00 : f32
    %52 = vector.broadcast %cst_18 : f32 to vector<26x32xf32>
    %53 = arith.maximumf %51, %52 : vector<26x32xf32>
    %54 = vector.shape_cast %53 : vector<26x32xf32> to vector<2x13x32xf32>
    %55 = vector.extract_strided_slice %54 {offsets = [0, 0, 0], sizes = [2, 12, 32], strides = [1, 1, 1]} : vector<2x13x32xf32> to vector<2x12x32xf32>
    %56 = vector.shape_cast %55 : vector<2x12x32xf32> to vector<2x6x2x32xf32>
    %57 = vector.extract_strided_slice %56 {offsets = [0, 0, 0, 0], sizes = [2, 6, 1, 32], strides = [1, 1, 1, 1]} : vector<2x6x2x32xf32> to vector<2x6x1x32xf32>
    %58 = vector.shape_cast %57 : vector<2x6x1x32xf32> to vector<2x6x32xf32>
    %59 = vector.extract_strided_slice %56 {offsets = [0, 0, 1, 0], sizes = [2, 6, 1, 32], strides = [1, 1, 1, 1]} : vector<2x6x2x32xf32> to vector<2x6x1x32xf32>
    %60 = vector.shape_cast %59 : vector<2x6x1x32xf32> to vector<2x6x32xf32>
    %61 = arith.maximumf %58, %60 : vector<2x6x32xf32>
    %c0_19 = arith.constant 0 : index
    %c0_20 = arith.constant 0 : index
    %c0_21 = arith.constant 0 : index
    %62 = vector.load %arg6[%c0_19, %c0_20, %c0_21] : memref<6x32x40xf32, #tpu.memory_space<vmem>>, vector<6x32x40xf32>
    %63 = vector.extract_strided_slice %61 {offsets = [0, 0, 0], sizes = [2, 1, 32], strides = [1, 1, 1]} : vector<2x6x32xf32> to vector<2x1x32xf32>
    %64 = vector.shape_cast %63 : vector<2x1x32xf32> to vector<2x32xf32>
    %65 = vector.extract_strided_slice %62 {offsets = [0, 0, 0], sizes = [1, 32, 40], strides = [1, 1, 1]} : vector<6x32x40xf32> to vector<1x32x40xf32>
    %66 = vector.shape_cast %65 : vector<1x32x40xf32> to vector<32x40xf32>
    %cst_22 = arith.constant dense<0.000000e+00> : vector<2x40xf32>
    %67 = tpu.matmul %64, %66, %cst_22 {dimension_numbers = #tpu.dot_dimension_numbers<[1], [0], [0], [1], [0, 0, 1, 1], [], []>} : vector<2x32xf32>, vector<32x40xf32>, vector<2x40xf32> -> vector<2x40xf32>
    %68 = vector.extract_strided_slice %61 {offsets = [0, 1, 0], sizes = [2, 1, 32], strides = [1, 1, 1]} : vector<2x6x32xf32> to vector<2x1x32xf32>
    %69 = vector.shape_cast %68 : vector<2x1x32xf32> to vector<2x32xf32>
    %70 = vector.extract_strided_slice %62 {offsets = [1, 0, 0], sizes = [1, 32, 40], strides = [1, 1, 1]} : vector<6x32x40xf32> to vector<1x32x40xf32>
    %71 = vector.shape_cast %70 : vector<1x32x40xf32> to vector<32x40xf32>
    %cst_23 = arith.constant dense<0.000000e+00> : vector<2x40xf32>
    %72 = tpu.matmul %69, %71, %cst_23 {dimension_numbers = #tpu.dot_dimension_numbers<[1], [0], [0], [1], [0, 0, 1, 1], [], []>} : vector<2x32xf32>, vector<32x40xf32>, vector<2x40xf32> -> vector<2x40xf32>
    %73 = arith.addf %67, %72 : vector<2x40xf32>
    %74 = vector.extract_strided_slice %61 {offsets = [0, 2, 0], sizes = [2, 1, 32], strides = [1, 1, 1]} : vector<2x6x32xf32> to vector<2x1x32xf32>
    %75 = vector.shape_cast %74 : vector<2x1x32xf32> to vector<2x32xf32>
    %76 = vector.extract_strided_slice %62 {offsets = [2, 0, 0], sizes = [1, 32, 40], strides = [1, 1, 1]} : vector<6x32x40xf32> to vector<1x32x40xf32>
    %77 = vector.shape_cast %76 : vector<1x32x40xf32> to vector<32x40xf32>
    %cst_24 = arith.constant dense<0.000000e+00> : vector<2x40xf32>
    %78 = tpu.matmul %75, %77, %cst_24 {dimension_numbers = #tpu.dot_dimension_numbers<[1], [0], [0], [1], [0, 0, 1, 1], [], []>} : vector<2x32xf32>, vector<32x40xf32>, vector<2x40xf32> -> vector<2x40xf32>
    %79 = arith.addf %73, %78 : vector<2x40xf32>
    %80 = vector.extract_strided_slice %61 {offsets = [0, 3, 0], sizes = [2, 1, 32], strides = [1, 1, 1]} : vector<2x6x32xf32> to vector<2x1x32xf32>
    %81 = vector.shape_cast %80 : vector<2x1x32xf32> to vector<2x32xf32>
    %82 = vector.extract_strided_slice %62 {offsets = [3, 0, 0], sizes = [1, 32, 40], strides = [1, 1, 1]} : vector<6x32x40xf32> to vector<1x32x40xf32>
    %83 = vector.shape_cast %82 : vector<1x32x40xf32> to vector<32x40xf32>
    %cst_25 = arith.constant dense<0.000000e+00> : vector<2x40xf32>
    %84 = tpu.matmul %81, %83, %cst_25 {dimension_numbers = #tpu.dot_dimension_numbers<[1], [0], [0], [1], [0, 0, 1, 1], [], []>} : vector<2x32xf32>, vector<32x40xf32>, vector<2x40xf32> -> vector<2x40xf32>
    %85 = arith.addf %79, %84 : vector<2x40xf32>
    %86 = vector.extract_strided_slice %61 {offsets = [0, 4, 0], sizes = [2, 1, 32], strides = [1, 1, 1]} : vector<2x6x32xf32> to vector<2x1x32xf32>
    %87 = vector.shape_cast %86 : vector<2x1x32xf32> to vector<2x32xf32>
    %88 = vector.extract_strided_slice %62 {offsets = [4, 0, 0], sizes = [1, 32, 40], strides = [1, 1, 1]} : vector<6x32x40xf32> to vector<1x32x40xf32>
    %89 = vector.shape_cast %88 : vector<1x32x40xf32> to vector<32x40xf32>
    %cst_26 = arith.constant dense<0.000000e+00> : vector<2x40xf32>
    %90 = tpu.matmul %87, %89, %cst_26 {dimension_numbers = #tpu.dot_dimension_numbers<[1], [0], [0], [1], [0, 0, 1, 1], [], []>} : vector<2x32xf32>, vector<32x40xf32>, vector<2x40xf32> -> vector<2x40xf32>
    %91 = arith.addf %85, %90 : vector<2x40xf32>
    %92 = vector.extract_strided_slice %61 {offsets = [0, 5, 0], sizes = [2, 1, 32], strides = [1, 1, 1]} : vector<2x6x32xf32> to vector<2x1x32xf32>
    %93 = vector.shape_cast %92 : vector<2x1x32xf32> to vector<2x32xf32>
    %94 = vector.extract_strided_slice %62 {offsets = [5, 0, 0], sizes = [1, 32, 40], strides = [1, 1, 1]} : vector<6x32x40xf32> to vector<1x32x40xf32>
    %95 = vector.shape_cast %94 : vector<1x32x40xf32> to vector<32x40xf32>
    %cst_27 = arith.constant dense<0.000000e+00> : vector<2x40xf32>
    %96 = tpu.matmul %93, %95, %cst_27 {dimension_numbers = #tpu.dot_dimension_numbers<[1], [0], [0], [1], [0, 0, 1, 1], [], []>} : vector<2x32xf32>, vector<32x40xf32>, vector<2x40xf32> -> vector<2x40xf32>
    %97 = arith.addf %91, %96 : vector<2x40xf32>
    %c0_28 = arith.constant 0 : index
    %c0_29 = arith.constant 0 : index
    %98 = vector.load %arg7[%c0_28, %c0_29] : memref<1x40xf32, #tpu.memory_space<vmem>>, vector<1x40xf32>
    %99 = vector.broadcast %98 : vector<1x40xf32> to vector<2x40xf32>
    %100 = arith.addf %97, %99 : vector<2x40xf32>
    %cst_30 = arith.constant 0.000000e+00 : f32
    %101 = vector.broadcast %cst_30 : f32 to vector<2x40xf32>
    %102 = arith.maximumf %100, %101 : vector<2x40xf32>
    %c0_31 = arith.constant 0 : index
    %c0_32 = arith.constant 0 : index
    %103 = vector.load %arg8[%c0_31, %c0_32] : memref<40x128xf32, #tpu.memory_space<vmem>>, vector<40x128xf32>
    %cst_33 = arith.constant dense<0.000000e+00> : vector<2x128xf32>
    %104 = tpu.matmul %102, %103, %cst_33 {dimension_numbers = #tpu.dot_dimension_numbers<[1], [0], [0], [1], [0, 0, 1, 1], [], []>} : vector<2x40xf32>, vector<40x128xf32>, vector<2x128xf32> -> vector<2x128xf32>
    %c0_34 = arith.constant 0 : index
    %c0_35 = arith.constant 0 : index
    %105 = vector.load %arg9[%c0_34, %c0_35] : memref<1x128xf32, #tpu.memory_space<vmem>>, vector<1x128xf32>
    %106 = vector.broadcast %105 : vector<1x128xf32> to vector<2x128xf32>
    %107 = arith.addf %104, %106 : vector<2x128xf32>
    %c0_36 = arith.constant 0 : index
    %c0_37 = arith.constant 0 : index
    %108 = vector.load %arg10[%c0_36, %c0_37] : memref<2x128xf32, #tpu.memory_space<vmem>>, vector<2x128xf32>
    tpu.vector_store %arg10[%c0_36, %c0_37], %107 {strides = array<i32>} : memref<2x128xf32, #tpu.memory_space<vmem>>, vector<2x128xf32>,
    return
  }
  func.func @transform_0(%arg0: i32) -> (i32, i32, i32) {
    %c0_i32 = arith.constant 0 : i32
    %c0_i32_0 = arith.constant 0 : i32
    %c0_i32_1 = arith.constant 0 : i32
    return %arg0, %c0_i32, %c0_i32_0 : i32, i32, i32
  }
  func.func @transform_1(%arg0: i32) -> (i32, i32, i32) {
    %c0_i32 = arith.constant 0 : i32
    %c0_i32_0 = arith.constant 0 : i32
    %c0_i32_1 = arith.constant 0 : i32
    %c0_i32_2 = arith.constant 0 : i32
    return %c0_i32, %c0_i32_0, %c0_i32_1 : i32, i32, i32
  }
  func.func @transform_2(%arg0: i32) -> (i32, i32) {
    %c0_i32 = arith.constant 0 : i32
    %c0_i32_0 = arith.constant 0 : i32
    %c0_i32_1 = arith.constant 0 : i32
    return %c0_i32, %c0_i32_0 : i32, i32
  }
  func.func @transform_3(%arg0: i32) -> (i32, i32, i32) {
    %c0_i32 = arith.constant 0 : i32
    %c0_i32_0 = arith.constant 0 : i32
    %c0_i32_1 = arith.constant 0 : i32
    %c0_i32_2 = arith.constant 0 : i32
    return %c0_i32, %c0_i32_0, %c0_i32_1 : i32, i32, i32
  }
  func.func @transform_4(%arg0: i32) -> (i32, i32) {
    %c0_i32 = arith.constant 0 : i32
    %c0_i32_0 = arith.constant 0 : i32
    %c0_i32_1 = arith.constant 0 : i32
    return %c0_i32, %c0_i32_0 : i32, i32
  }
  func.func @transform_5(%arg0: i32) -> (i32, i32, i32) {
    %c0_i32 = arith.constant 0 : i32
    %c0_i32_0 = arith.constant 0 : i32
    %c0_i32_1 = arith.constant 0 : i32
    %c0_i32_2 = arith.constant 0 : i32
    return %c0_i32, %c0_i32_0, %c0_i32_1 : i32, i32, i32
  }
  func.func @transform_6(%arg0: i32) -> (i32, i32) {
    %c0_i32 = arith.constant 0 : i32
    %c0_i32_0 = arith.constant 0 : i32
    %c0_i32_1 = arith.constant 0 : i32
    return %c0_i32, %c0_i32_0 : i32, i32
  }
  func.func @transform_7(%arg0: i32) -> (i32, i32) {
    %c0_i32 = arith.constant 0 : i32
    %c0_i32_0 = arith.constant 0 : i32
    %c0_i32_1 = arith.constant 0 : i32
    return %c0_i32, %c0_i32_0 : i32, i32
  }
  func.func @transform_8(%arg0: i32) -> (i32, i32) {
    %c0_i32 = arith.constant 0 : i32
    %c0_i32_0 = arith.constant 0 : i32
    %c0_i32_1 = arith.constant 0 : i32
    return %c0_i32, %c0_i32_0 : i32, i32
  }
  func.func @transform_9(%arg0: i32) -> (i32, i32) {
    %c0_i32 = arith.constant 0 : i32
    %c0_i32_0 = arith.constant 0 : i32
    return %arg0, %c0_i32 : i32, i32
  }
}

</mosaic_0001>

<bundles_post_ra>
// kernel: tpu_custom_call.1
= control target key start
LH: loop header
LB: loop body
LE: loop exit
PB: predicated region body
PF: predicated region fallthrough
CT: control target
= control target key end

     0   :  { %14 = vsyncpa [#allocation3], 0  ;;  %s4429_s0 = inlined_call_operand.hbm [shape: f32[2,4,32], index: 0, kind: input, shape index: {}]   ;;  %s4430_s1 = inlined_call_operand.hbm [shape: f32[3,4,32], index: 1, kind: input, shape index: {}]   ;;  %s4431_s2 = inlined_call_operand.vmem [shape: f32[1,32], index: 2, kind: input, shape index: {}]   ;;  %s4432_s3 = inlined_call_operand.hbm [shape: f32[3,32,32], index: 3, kind: input, shape index: {}]   ;;  %s4433_s4 = inlined_call_operand.vmem [shape: f32[1,32], index: 4, kind: input, shape index: {}]   ;;  %s4434_s5 = inlined_call_operand.hbm [shape: f32[6,32,40], index: 5, kind: input, shape index: {}]   ;;  %s4435_s6 = inlined_call_operand.vmem [shape: f32[1,40], index: 6, kind: input, shape index: {}]   ;;  %s4436_s7 = inlined_call_operand.hbm [shape: f32[40,128], index: 7, kind: input, shape index: {}]   ;;  %s4437_s8 = inlined_call_operand.vmem [shape: f32[1,128], index: 8, kind: input, shape index: {}]   ;;  %s4438_s9 = inlined_call_operand.hbm [shape: f32[2,128], index: 9, kind: output, shape index: {}]  }
   0x1   :  { %15 = vsyncpa [#allocation6], 0 }
   0x2   :  { %16 = vsyncpa [#allocation9], 0 }
   0x3   :  { %17 = vsyncpa [#allocation4], 0  ;;  %s3469_s30 = smov [#allocation5]   ;;  %s3329_s13 = scalar_lea.hbm %s4430_s1, 192 }
   0x4   :  { %s35_s10 = sshll.u32 %s3469_s30, 4  ;;  %p3330_p0 = scmp.ne.s32.totalorder %s4430_s1, %s3329_s13  ;;  %s36_s10 = int_to_ptr.vmem [resolvable:$true] %s35_s10 }
   0x5   :  { %p3333_p1 = scmp.lt.u32.totalorder %s3329_s13, %s4430_s1 }
   0x7   :  { %p3335_p2 = pnand %p3333_p1, %p3330_p0 }
   0x9   :  { %3338 = shalt.err (!%p3335_p2)
}
   0xa   :  { %s3339_s18 = scalar_lea.vmem %s36_s10, 192  ;;  %p3344_p4 = scmp.lt.s32.totalorder %s36_s10, %s36_s10 }
   0xb   :  { %p3340_p3 = scmp.ne.s32.totalorder %s36_s10, %s3339_s18  ;;  %p3345_p5 = scmp.lt.s32.totalorder %s3339_s18, %s3339_s18 }
   0xd   :  { %p3346_p6 = por %p3345_p5, %p3344_p4 }
   0xf   :  { %p3347_p7 = pnand %p3346_p6, %p3340_p3 }
  0x11   :  { %3350 = shalt.err (!%p3347_p7)
}
  0x12   :  { %s3470_s19 = smov 64   ;;  %s3471_s20 = smov 4  }
  0x13   :  { %41 = dma.hbm_to_vmem [thread:$0]  %s4430_s1, 192, %s36_s10, [#allocation6], %s3470_s19, %s3470_s19, %s3471_s20  }
  0x14   :  { %s3472_s23 = smov [#allocation8]   ;;  %s3473_s25 = smov [#allocation2]  }
  0x15   :  { %s63_s24 = sshll.u32 %s3472_s23, 4  ;;  %s23_s26 = sshll.u32 %s3473_s25, 4  ;;  %s64_s24 = int_to_ptr.vmem [resolvable:$true] %s63_s24  ;;  %s24_s26 = int_to_ptr.vmem [resolvable:$true] %s23_s26 }
  0x16   :  { %s3351_s29 = scalar_lea.hbm %s4434_s5, 3072 }
  0x17   :  { %p3352_p8 = scmp.ne.s32.totalorder %s4434_s5, %s3351_s29  ;;  %p3355_p9 = scmp.lt.u32.totalorder %s3351_s29, %s4434_s5 }
  0x19   :  { %p3357_p10 = pnand %p3355_p9, %p3352_p8 }
  0x1b   :  { %3360 = shalt.err (!%p3357_p10)
}
  0x1c   :  { %s3361_s1 = scalar_lea.vmem %s64_s24, 3072  ;;  %p3366_p12 = scmp.lt.s32.totalorder %s64_s24, %s64_s24 }
  0x1d   :  { %p3362_p11 = scmp.ne.s32.totalorder %s64_s24, %s3361_s1  ;;  %p3367_p13 = scmp.lt.s32.totalorder %s3361_s1, %s3361_s1 }
  0x1f   :  { %p3368_p0 = por %p3367_p13, %p3366_p12 }
  0x21   :  { %p3369_p1 = pnand %p3368_p0, %p3362_p11 }
  0x23   :  { %3372 = shalt.err (!%p3369_p1)
}
  0x24   :  { %s3474_s10 = smov 128   ;;  %s3475_s14 = smov 8  }
  0x25   :  { %69 = dma.hbm_to_vmem [thread:$0]  %s4434_s5, 3072, %s64_s24, [#allocation9], %s3474_s10, %s3474_s10, %s3475_s14  }
  0x26   :  { %s3373_s21 = scalar_lea.hbm %s4429_s0, 128 }
  0x27   :  { %p3374_p2 = scmp.ne.s32.totalorder %s4429_s0, %s3373_s21  ;;  %p3377_p3 = scmp.lt.u32.totalorder %s3373_s21, %s4429_s0 }
  0x29   :  { %p3379_p4 = pnand %p3377_p3, %p3374_p2 }
  0x2b   :  { %3382 = shalt.err (!%p3379_p4)
}
  0x2c   :  { %s3383_s28 = scalar_lea.vmem %s24_s26, 128  ;;  %p3388_p6 = scmp.lt.s32.totalorder %s24_s26, %s24_s26 }
  0x2d   :  { %p3384_p5 = scmp.ne.s32.totalorder %s24_s26, %s3383_s28  ;;  %p3389_p7 = scmp.lt.s32.totalorder %s3383_s28, %s3383_s28 }
  0x2f   :  { %p3390_p8 = por %p3389_p7, %p3388_p6 }
  0x31   :  { %p3391_p9 = pnand %p3390_p8, %p3384_p5 }
  0x33   :  { %3394 = shalt.err (!%p3391_p9)
}
  0x34   :  { %29 = dma.hbm_to_vmem [thread:$0]  %s4429_s0, 128, %s24_s26, [#allocation3], %s3470_s19, %s3470_s19, %s3471_s20  }
  0x35   :  { %s3476_s29 = smov [#allocation7]   ;;  %s3477_s11 = smov [#allocation10]  }
  0x36   :  { %s49_s30 = sshll.u32 %s3476_s29, 4  ;;  %s77_s12 = sshll.u32 %s3477_s11, 4  ;;  %s50_s30 = int_to_ptr.vmem [resolvable:$true] %s49_s30  ;;  %s78_s12 = int_to_ptr.vmem [resolvable:$true] %s77_s12 }
  0x37   :  { %s3395_s15 = scalar_lea.hbm %s4432_s3, 1536 }
  0x38   :  { %p3396_p10 = scmp.ne.s32.totalorder %s4432_s3, %s3395_s15  ;;  %p3399_p11 = scmp.lt.u32.totalorder %s3395_s15, %s4432_s3 }
  0x3a   :  { %p3401_p12 = pnand %p3399_p11, %p3396_p10 }
  0x3c   :  { %3404 = shalt.err (!%p3401_p12)
}
  0x3d   :  { %s3405_s0 = scalar_lea.vmem %s50_s30, 1536  ;;  %p3410_p0 = scmp.lt.s32.totalorder %s50_s30, %s50_s30 }
  0x3e   :  { %p3406_p13 = scmp.ne.s32.totalorder %s50_s30, %s3405_s0  ;;  %p3411_p1 = scmp.lt.s32.totalorder %s3405_s0, %s3405_s0 }
  0x40   :  { %p3412_p2 = por %p3411_p1, %p3410_p0 }
  0x42   :  { %p3413_p3 = pnand %p3412_p2, %p3406_p13 }
  0x44   :  { %3416 = shalt.err (!%p3413_p3)
}
  0x45   :  { %55 = dma.hbm_to_vmem [thread:$0]  %s4432_s3, 1536, %s50_s30, [#allocation6], %s3474_s10, %s3474_s10, %s3475_s14  }
  0x46   :  { %s3417_s23 = scalar_lea.hbm %s4436_s7, 640 }
  0x47   :  { %p3418_p4 = scmp.ne.s32.totalorder %s4436_s7, %s3417_s23  ;;  %p3421_p5 = scmp.lt.u32.totalorder %s3417_s23, %s4436_s7 }
  0x49   :  { %p3423_p6 = pnand %p3421_p5, %p3418_p4 }
  0x4b   :  { %3426 = shalt.err (!%p3423_p6)
}
  0x4c   :  { %s3427_s24 = scalar_lea.vmem %s78_s12, 640  ;;  %p3432_p8 = scmp.lt.s32.totalorder %s78_s12, %s78_s12 }
  0x4d   :  { %p3428_p7 = scmp.ne.s32.totalorder %s78_s12, %s3427_s24  ;;  %p3433_p9 = scmp.lt.s32.totalorder %s3427_s24, %s3427_s24 }
  0x4f   :  { %p3434_p10 = por %p3433_p9, %p3432_p8 }
  0x51   :  { %p3435_p11 = pnand %p3434_p10, %p3428_p7 }
  0x53   :  { %3438 = shalt.err (!%p3435_p11)
}
  0x54   :  { %83 = dma.hbm_to_vmem [thread:$0]  %s4436_s7, 640, %s78_s12, [#allocation9], %s3474_s10, %s3474_s10, %s3475_s14  }
  0x55   :  { %3461 = dma.done.wait [#allocation3], 128  }
  0x56   :  { %3462 = vsyncadd [#allocation3], 4294967168 }
  0x57   :  { %3463 = dma.done.wait [#allocation6], 1728  }
  0x58   :  { %3464 = vsyncadd [#allocation6], 4294965568 }
  0x59   :  { %3465 = dma.done.wait [#allocation9], 3712  }
  0x5a   :  { %3466 = vsyncadd [#allocation9], 4294963584  ;;  %v101_v0 = vld [vmem:[#allocation2] sm:$0xf]  ;;  %v102_v1 = vld [vmem:[#allocation2 + $0x4] sm:$0xf]  ;;  %v182_v6 = vlaneseq }
  0x5b   :  { %103 = vxpose.xlu0.b32.start.end [1/1] (short) (narrow) %v101_v0, 32  ;;  %v168_v2 = vld [vmem:[#allocation5 + $0x4] sm:$0xf]  ;;  %vm557_vm0 = vcmask 1043456   ;;  %v3611_v3 = vld [vmem:[#allocation5] sm:$0xf] }
  0x5c   :  { %3061 = vmatprep.subr.msk.mxu0 %vm557_vm0, %v168_v2  ;;  %v3478_v4 = vmov 1983009808   ;;  %v3615_v8 = vshrl.u32 %v182_v6, 7  ;;  %vm314_vm1 = vcmask 1040384   ;;  %vm315_vm2 = vcmask 1042434   ;;  %s3483_s13 = smov [#allocation11]  }
  0x5d   :  { %3062 = vmatpush3.msk.msra.mxu0 %vm557_vm0, %v168_v2  ;;  %v180_v5 = vunpack.c.l.s4 %v3478_v4  ;;  %vm316_vm3 = vmor %vm314_vm1, %vm315_vm2  ;;  %vm317_vm4 = vcmask 1044484   ;;  %vm319_vm6 = vcmask 1046534   ;;  %vm540_vm8 = vcmask 31744   ;;  %s2880_s1 = sshll.u32 %s3483_s13, 4  ;;  %s2881_s1 = int_to_ptr.vmem [resolvable:$true] %s2880_s1 }
  0x5e   :  { %3075 = vmatprep.subr.msk.mxu0 %vm557_vm0, %v3611_v3  ;;  %4453 = vst [vmem:[#allocation16_spill] sm:$0xff] %v3615_v8  ;;  %vm318_vm5 = vmor %vm316_vm3, %vm317_vm4  ;;  %vm1626_vm9 = vcmask 1041409   ;;  %vm1629_vm10 = vcmask 1043459   ;;  %vm1632_vm11 = vcmask 1045509   ;;  %vm1635_vm12 = vcmask 1047559   ;;  %s3439_s15 = scalar_lea.vmem %s2881_s1, 32  ;;  %p3444_p13 = scmp.lt.s32.totalorder %s2881_s1, %s2881_s1 }
  0x5f   :  { %v181_v7 = vunpack.c.0.s8 %v180_v5  ;;  %vm3647_vm7 = vmor %vm318_vm5, %vm319_vm6  ;;  %vm1652_vm13 = vcmask 261120   ;;  %vm3480_vm14 = vmmov 0   ;;  %vm2799_vm15 = vcmask 326656   ;;  %p3440_p12 = scmp.ne.s32.totalorder %s2881_s1, %s3439_s15  ;;  %p3445_p0 = scmp.lt.s32.totalorder %s3439_s15, %s3439_s15 }
  0x61   :  { %v3618_v9 = vsub.s32 %v181_v7, %v3615_v8  ;;  %p3446_p1 = por %p3445_p0, %p3444_p13 }
  0x63   :  { %p3447_p2 = pnand %p3446_p1, %p3440_p12 }
  0x68   :  { %135 = vxpose.xlu0.b32.start.end [1/1] (short) (narrow) %v102_v1, 32 }
  0xdb   :  { %v119_v10 = vpop.trf.xlu0 }
  0xdc   :  { %v3621_v11 = vrot.slane %v119_v10, %v3618_v9  ;;  %v178_v13 = vcombine.high %v119_v10, %v119_v10 }
  0xde   :  { %v3626_v14 = vcombine.high %v3621_v11, %v3621_v11  ;;  %v3633_v18 = vrot.slane %v178_v13, %v3618_v9  ;;  %v2891_v25 = vrot.slane %v3621_v11, 9 }
  0xdf   :  { %v120_v12 = vpop.trf.xlu0 }
  0xe0   :  { %v195_v15 = vcombine.high %v120_v12, %v120_v12  ;;  %v3629_v16 = vrot.slane %v120_v12, %v3618_v9  ;;  %v323_v21 = vrot.slane %v3626_v14, 7  ;;  %v3661_v29 = vcombine.high %v3633_v18, %v3633_v18 }
  0xe1   :  { %v326_v33 = vrot.slane %v3633_v18, 7 }
  0xe2   :  { %v3640_v22 = vrot.slane %v195_v15, %v3618_v9  ;;  %v3644_v23 = vcombine.high %v3629_v16, %v3629_v16  ;;  %v332_v30 = vrot.slane %v3629_v16, 7  ;;  %v324_v31 = vsel %vm3647_vm7, %v2891_v25, %v323_v21 }
  0xe3   :  { %v121_v17 = vpop.trf.xlu0  ;;  %v325_v32 = vrot.slane %v323_v21, 2  ;;  %v328_v49 = vrot.slane %v326_v33, 2  ;;  %v329_v50 = vrot.slane %v3661_v29, 7 }
  0xe4   :  { %v212_v19 = vcombine.high %v121_v17, %v121_v17  ;;  %v3636_v20 = vrot.slane %v121_v17, %v3618_v9  ;;  %v3669_v34 = vcombine.high %v3640_v22, %v3640_v22  ;;  %v335_v35 = vrot.slane %v3644_v23, 7 }
  0xe5   :  { %v338_v36 = vrot.slane %v3640_v22, 7  ;;  %v334_v51 = vrot.slane %v332_v30, 2  ;;  %v327_v54 = vsel %vm3647_vm7, %v325_v32, %v326_v33  ;;  %v330_v4 = vsel %vm3647_vm7, %v328_v49, %v329_v50 }
  0xe6   :  { %v3653_v26 = vrot.slane %v212_v19, %v3618_v9  ;;  %v3657_v27 = vcombine.high %v3636_v20, %v3636_v20  ;;  %v344_v39 = vrot.slane %v3636_v20, 7  ;;  %v337_v55 = vrot.slane %v335_v35, 2 }
  0xe7   :  { %v122_v28 = vpop.trf.xlu0  ;;  %v340_v56 = vrot.slane %v338_v36, 2  ;;  %v341_v57 = vrot.slane %v3669_v34, 7  ;;  %v331_v10 = vrot.slane %v329_v50, 2  ;;  %v413_v13 = vcombine.low %v324_v31, %v327_v54 }
  0xe8   :  { %v229_v37 = vcombine.high %v122_v28, %v122_v28  ;;  %v3675_v38 = vcombine.high %v3653_v26, %v3653_v26  ;;  %v347_v40 = vrot.slane %v3657_v27, 7  ;;  %v3680_v41 = vrot.slane %v122_v28, %v3618_v9 }
  0xe9   :  { %v350_v43 = vrot.slane %v3653_v26, 7  ;;  %v346_v58 = vrot.slane %v344_v39, 2  ;;  %v333_v25 = vsel %vm3647_vm7, %v331_v10, %v332_v30  ;;  %v336_v28 = vsel %vm3647_vm7, %v334_v51, %v335_v35 }
  0xea   :  { %v3684_v44 = vrot.slane %v229_v37, %v3618_v9  ;;  %v3691_v47 = vcombine.high %v3680_v41, %v3680_v41  ;;  %v356_v48 = vrot.slane %v3680_v41, 7  ;;  %v349_v60 = vrot.slane %v347_v40, 2 }
  0xeb   :  { %v151_v42 = vpop.trf.xlu0  ;;  %v3707_v61 = vrot.slane %v350_v43, 2  ;;  %v353_v62 = vrot.slane %v3675_v38, 7  ;;  %v339_v32 = vsel %vm3647_vm7, %v337_v55, %v338_v36  ;;  %v414_v33 = vcombine.low %v330_v4, %v333_v25 }
  0xec   :  { %v245_v45 = vcombine.high %v151_v42, %v151_v42  ;;  %v3687_v46 = vrot.slane %v151_v42, %v3618_v9  ;;  %v312_v52 = vcombine.high %v3684_v44, %v3684_v44  ;;  %v3716_v0 = vrot.slane %v356_v48, 2 }
  0xed   :  { %v359_v1 = vrot.slane %v3691_v47, 7  ;;  %v362_v2 = vrot.slane %v3684_v44, 7  ;;  %v343_v30 = vrot.slane %v341_v57, 2  ;;  %v430_v49 = vcombine.low %v336_v28, %v339_v32 }
  0xee   :  { %v3698_v53 = vrot.slane %v245_v45, %v3618_v9  ;;  %v3712_v63 = vcombine.high %v3687_v46, %v3687_v46  ;;  %v3722_v5 = vrot.slane %v312_v52, 7  ;;  %v2892_v7 = vrot.slane %v3687_v46, 9 }
  0xef   :  { %v152_v59 = vpop.trf.xlu0  ;;  %v361_v45 = vrot.slane %v359_v1, 2  ;;  %v421_v36 = vrot.slane %v413_v13, %v3618_v9  ;;  %v428_v51 = vrot.slane %v414_v33, %v3618_v9  ;;  %v345_v4 = vsel %vm3647_vm7, %v343_v30, %v344_v39 }
  0xf0   :  { %v3726_v6 = vcombine.high %v3698_v53, %v3698_v53  ;;  %v4441_v12 = vrot.slane %v3698_v53, 7  ;;  %v262_v15 = vcombine.high %v152_v59, %v152_v59  ;;  %v3731_v17 = vrot.slane %v152_v59, %v3618_v9 }
  0xf1   :  { %v369_v21 = vrot.slane %v3712_v63, 7  ;;  %v342_v59 = vsel %vm3647_vm7, %v340_v56, %v341_v57  ;;  %v429_v10 = vcombine.low %v421_v36, %v428_v51  ;;  %v438_v32 = vrot.slane %v430_v49, %v3618_v9 }
  0xf2   :  { %v3741_v37 = vrot.slane %v262_v15, %v3618_v9  ;;  %v3745_v31 = vcombine.high %v3731_v17, %v3731_v17  ;;  %v4439_v42 = vrot.slane %v3731_v17, 7  ;;  %v3752_v35 = vrot.slane %v4441_v12, 2 }
  0xf3   :  { %v153_v19 = vpop.trf.xlu0  ;;  %v3757_v54 = vrot.slane %v369_v21, 2  ;;  %v431_v25 = vcombine.low %v342_v59, %v345_v4  ;;  %3063 = vmatprep.mubr.msk.f32.mxu0 %vm540_vm8, %v429_v10  ;;  %v351_v30 = vsel %vm3647_vm7, %v349_v60, %v350_v43  ;;  %v355_v36 = vrot.slane %v353_v62, 2 }
  0xf4   :  { %v279_v50 = vcombine.high %v153_v19, %v153_v19  ;;  %v4440_v52 = vrot.slane %v3745_v31, 7  ;;  %v3766_v15 = vcombine.high %v3741_v37, %v3741_v37  ;;  %v380_v13 = vrot.slane %v4439_v42, 2 }
  0xf5   :  { %v384_v28 = vrot.slane %v3741_v37, 7  ;;  %v3773_v33 = vrot.slane %v153_v19, %v3618_v9  ;;  %v445_v57 = vrot.slane %v431_v25, %v3618_v9  ;;  %v348_v51 = vsel %vm3647_vm7, %v346_v58, %v347_v40  ;;  %v3808_v58 = vld [vmem:[#allocation5 + $0x8] sm:$0xf] }
  0xf6   :  { %v3776_v56 = vrot.slane %v279_v50, %v3618_v9  ;;  %v383_v39 = vrot.slane %v4440_v52, 2  ;;  %v387_v4 = vrot.slane %v3766_v15, 7  ;;  %v357_v43 = vsel %vm3647_vm7, %v355_v36, %v356_v48 }
  0xf7   :  { %v3788_v19 = vcombine.high %v3773_v33, %v3773_v33  ;;  %v390_v49 = vrot.slane %v3773_v33, 7  ;;  %v154_v59 = vpop.trf.xlu0  ;;  %v446_v10 = vcombine.low %v438_v32, %v445_v57  ;;  %v447_v60 = vcombine.low %v348_v51, %v351_v30 }
  0xf8   :  { %4456 = vst [vmem:[#allocation17_spill] sm:$0xff] %v3776_v56  ;;  %v396_v50 = vrot.slane %v3776_v56, 7  ;;  %v386_v25 = vrot.slane %v384_v28, 2  ;;  %v3803_v42 = vcombine.high %v3776_v56, %v3776_v56  ;;  %v354_v40 = vsel %vm3647_vm7, %v3707_v61, %v353_v62 }
  0xf9   :  { %4457 = vst [vmem:[#allocation18_spill] sm:$0xff] %v3788_v19  ;;  %v392_v52 = vrot.slane %v390_v49, 2  ;;  %3064 = vmatmul.mubr.msk.f32.vlgmr.msra.gmra.mrb[0].mxu0 %vm540_vm8, %v446_v10  ;;  %v393_v32 = vrot.slane %v3788_v19, 7  ;;  %v448_v55 = vcombine.low %v354_v40, %v357_v43  ;;  %v296_v48 = vcombine.high %v154_v59, %v154_v59 }
  0xfa   :  { %v398_v57 = vrot.slane %v396_v50, 2  ;;  %v455_v30 = vrot.slane %v447_v60, %v3618_v9  ;;  %v3814_v36 = vrot.slane %v154_v59, %v3618_v9  ;;  %v360_v61 = vsel %vm3647_vm7, %v3716_v0, %v359_v1  ;;  %3076 = vmatpush3.msk.msra.mxu0 %vm557_vm0, %v3611_v3 }
  0xfb   :  { %v363_v62 = vsel %vm3647_vm7, %v361_v45, %v362_v2  ;;  %v462_v51 = vrot.slane %v448_v55, %v3618_v9  ;;  %v3829_v10 = vrot.slane %v296_v48, %v3618_v9  ;;  %v364_v59 = vrot.slane %v362_v2, 2  ;;  %3089 = vmatprep.subr.msk.mxu0 %vm557_vm0, %v3808_v58 }
  0xfc   :  { %v370_v0 = vsel %vm3647_vm7, %v2892_v7, %v369_v21  ;;  %v399_v1 = vrot.slane %v3803_v42, 7  ;;  %v3842_v3 = vcombine.high %v3814_v36, %v3814_v36  ;;  %v402_v45 = vrot.slane %v3814_v36, 7 }
  0xfd   :  { %4458 = vst [vmem:[#allocation19_spill] sm:$0xff] %v3829_v10  ;;  %v464_v55 = vcombine.low %v360_v61, %v363_v62  ;;  %v463_v43 = vcombine.low %v455_v30, %v462_v51  ;;  %v3847_v2 = vcombine.high %v3829_v10, %v3829_v10  ;;  %v408_v60 = vrot.slane %v3829_v10, 7 }
  0xfe   :  { %4459 = vst [vmem:[#allocation20_spill] sm:$0xff] %v3842_v3  ;;  %v366_v7 = vsel %vm3647_vm7, %v364_v59, %v3722_v5  ;;  %v395_v21 = vrot.slane %v393_v32, 2  ;;  %v404_v40 = vrot.slane %v402_v45, 2  ;;  %v405_v48 = vrot.slane %v3842_v3, 7 }
  0xff   :  { %4460 = vst [vmem:[#allocation21_spill] sm:$0xff] %v3847_v2  ;;  %v465_v12 = vcombine.low %v366_v7, %v370_v0  ;;  %3066 = vmatprep.mubr.msk.f32.mxu0 %vm540_vm8, %v463_v43  ;;  %v410_v8 = vrot.slane %v408_v60, 2  ;;  %v411_v30 = vrot.slane %v3847_v2, 7  ;;  %v472_v61 = vrot.slane %v464_v55, %v3618_v9 }
 0x100   :  { %v4461_v62 = vrot.slane %v3698_v53, 7  ;;  %v4462_v59 = vrot.slane %v3726_v6, 7  ;;  %v4464_v2 = vrot.slane %v3745_v31, 7  ;;  %v4465_v19 = vrot.slane %v3731_v17, 7 }
 0x101   :  { %v479_v5 = vrot.slane %v465_v12, %v3618_v9  ;;  %v388_v12 = vsel %vm3647_vm7, %v386_v25, %v387_v4  ;;  %v683_v24 = vcombine.low %v3629_v16, %v3644_v23 }
 0x102   :  { %v373_v51 = vsel %vm3647_vm7, %v3757_v54, %v4461_v62  ;;  %v376_v0 = vsel %vm3647_vm7, %v3752_v35, %v4462_v59  ;;  %v4463_v43 = vmov %v4462_v59  ;;  %v382_v55 = vsel %vm3647_vm7, %v380_v13, %v4464_v2 }
 0x103   :  { %v377_v7 = vrot.slane %v4463_v43, 2  ;;  %v481_v3 = vcombine.low %v373_v51, %v376_v0  ;;  %v385_v54 = vsel %vm3647_vm7, %v383_v39, %v384_v28  ;;  %v389_v62 = vrot.slane %v387_v4, 2 }
 0x104   :  { %v480_v10 = vcombine.low %v472_v61, %v479_v5  ;;  %v394_v59 = vsel %vm3647_vm7, %v392_v52, %v393_v32  ;;  %v498_v43 = vcombine.low %v385_v54, %v388_v12  ;;  %v397_v39 = vsel %vm3647_vm7, %v395_v21, %v396_v50 }
 0x105   :  { %v379_v35 = vsel %vm3647_vm7, %v377_v7, %v4465_v19  ;;  %v489_v13 = vrot.slane %v481_v3, %v3618_v9  ;;  %v391_v28 = vsel %vm3647_vm7, %v389_v62, %v390_v49  ;;  %v400_v19 = vsel %vm3647_vm7, %v398_v57, %v399_v1 }
 0x106   :  { %v482_v56 = vcombine.low %v379_v35, %v382_v55  ;;  %3067 = vmatmul.mubr.msk.f32.gmra.mrb[2].mxu0 %vm540_vm8, %v480_v10  ;;  %v499_v4 = vcombine.low %v391_v28, %v394_v59  ;;  %v506_v25 = vrot.slane %v498_v43, %v3618_v9  ;;  %v401_v2 = vrot.slane %v399_v1, 2 }
 0x107   :  { %v406_v32 = vsel %vm3647_vm7, %v404_v40, %v405_v48  ;;  %v515_v3 = vcombine.low %v397_v39, %v400_v19  ;;  %v407_v61 = vrot.slane %v405_v48, 2  ;;  %v412_v10 = vsel %vm3647_vm7, %v410_v8, %v411_v30 }
 0x108   :  { %v496_v52 = vrot.slane %v482_v56, %v3618_v9  ;;  %v513_v49 = vrot.slane %v499_v4, %v3618_v9  ;;  %v403_v50 = vsel %vm3647_vm7, %v401_v2, %v402_v45  ;;  %v667_v21 = vcombine.low %v3633_v18, %v3661_v29 }
 0x109   :  { %v666_v57 = vcombine.low %v3621_v11, %v3626_v14  ;;  %v516_v1 = vcombine.low %v403_v50, %v406_v32  ;;  %v409_v40 = vsel %vm3647_vm7, %v407_v61, %v408_v60  ;;  %v684_v48 = vcombine.low %v3640_v22, %v3669_v34  ;;  %v4467_v50 = vld [vmem:[#allocation18_spill] sm:$0xff] }
 0x10a   :  { %v497_v56 = vcombine.low %v489_v13, %v496_v52  ;;  %v514_v51 = vcombine.low %v506_v25, %v513_v49  ;;  %v532_v5 = vcombine.low %v409_v40, %v412_v10  ;;  %v523_v8 = vrot.slane %v515_v3, %v3618_v9  ;;  %v4466_v49 = vld [vmem:[#allocation17_spill] sm:$0xff] }
 0x10b   :  { %v530_v45 = vrot.slane %v516_v1, %v3618_v9  ;;  %v681_v30 = vrot.slane %v667_v21, %v3618_v9  ;;  %v701_v11 = vcombine.low %v3653_v26, %v3675_v38  ;;  %v674_v0 = vrot.slane %v666_v57, %v3618_v9 }
 0x10c   :  { %3069 = vmatprep.mubr.msk.f32.mxu0 %vm540_vm8, %v497_v56  ;;  %v539_v60 = vrot.slane %v532_v5, %v3618_v9  ;;  %v700_v7 = vcombine.low %v3636_v20, %v3657_v27  ;;  %v698_v54 = vrot.slane %v684_v48, %v3618_v9  ;;  %v718_v12 = vcombine.low %v3684_v44, %v3687_v46 }
 0x10d   :  { %3070 = vmatmul.mubr.msk.f32.gmra.mrb[4].mxu0 %vm540_vm8, %v514_v51  ;;  %v531_v55 = vcombine.low %v523_v8, %v530_v45  ;;  %v735_v62 = vcombine.low %v3726_v6, %v3731_v17  ;;  %v682_v35 = vcombine.low %v674_v0, %v681_v30  ;;  %v715_v59 = vrot.slane %v701_v11, %v3618_v9  ;;  %v4468_v45 = vld [vmem:[#allocation19_spill] sm:$0xff] }
 0x10e   :  { %v691_v43 = vrot.slane %v683_v24, %v3618_v9  ;;  %v717_v13 = vcombine.low %v3680_v41, %v3691_v47  ;;  %v708_v28 = vrot.slane %v700_v7, %v3618_v9  ;;  %v734_v39 = vcombine.low %v3712_v63, %v3698_v53 }
 0x10f   :  { %3072 = vmatprep.mubr.msk.f32.mxu0 %vm540_vm8, %v531_v55  ;;  %v752_v25 = vcombine.low %v3766_v15, %v3773_v33  ;;  %v732_v19 = vrot.slane %v718_v12, %v3618_v9  ;;  %v769_v2 = vcombine.low %v3803_v42, %v3814_v36  ;;  %v749_v32 = vrot.slane %v735_v62, %v3618_v9 }
 0x110   :  { %v699_v4 = vcombine.low %v691_v43, %v698_v54  ;;  %v716_v52 = vcombine.low %v708_v28, %v715_v59  ;;  %v725_v3 = vrot.slane %v717_v13, %v3618_v9  ;;  %v751_v61 = vcombine.low %v3745_v31, %v3741_v37  ;;  %v4470_v43 = vld [vmem:[#allocation21_spill] sm:$0xff] }
 0x111   :  { %3073 = vmatmul.mubr.msk.f32.gmra.mrb[6].mxu0 %vm540_vm8, %v539_v60  ;;  %v742_v63 = vrot.slane %v734_v39, %v3618_v9  ;;  %v768_v10 = vcombine.low %v4467_v50, %v4466_v49  ;;  %v766_v57 = vrot.slane %v752_v25, %v3618_v9  ;;  %v918_v56 = vcombine.low %v3661_v29, %v3629_v16  ;;  %v4469_v16 = vld [vmem:[#allocation20_spill] sm:$0xff]  ;;  %v1488_v39 = vld [vmem:[#allocation7 + $0x20] sm:$0xff] }
 0x112   :  { %3077 = vmatprep.mubr.msk.f32.mxu0 %vm540_vm8, %v682_v35  ;;  %v733_v21 = vcombine.low %v725_v3, %v732_v19  ;;  %v783_v40 = vrot.slane %v769_v2, %v3618_v9  ;;  %v917_v48 = vcombine.low %v3626_v14, %v3633_v18  ;;  %v935_v5 = vcombine.low %v3669_v34, %v3636_v20  ;;  %v1490_v25 = vld [vmem:[#allocation7 + $0x30] sm:$0xff]  ;;  %v1491_v2 = vld [vmem:[#allocation7 + $0x38] sm:$0xff]  ;;  %v1485_v3 = vld [vmem:[#allocation7 + $0x8] sm:$0xff] }
 0x113   :  { %v750_v1 = vcombine.low %v742_v63, %v749_v32  ;;  %v776_v51 = vrot.slane %v768_v10, %v3618_v9  ;;  %v785_v29 = vcombine.low %v4469_v16, %v4468_v45  ;;  %v952_v30 = vcombine.low %v3675_v38, %v3680_v41  ;;  %v1484_v32 = vld [vmem:[#allocation7] sm:$0xff]  ;;  %v4024_v63 = vld [vmem:[%s4431_s2] ss:$0 sm:$0xff] }
 0x114   :  { %v932_v24 = vrot.slane %v918_v56, %v3618_v9  ;;  %v934_v14 = vcombine.low %v3644_v23, %v3640_v22  ;;  %v925_v18 = vrot.slane %v917_v48, %v3618_v9  ;;  %v951_v20 = vcombine.low %v3657_v27, %v3653_v26 }
 0x115   :  { %3078 = vmatmul.mubr.msk.f32.vlgmr.msra.gmra.mrb[0].mxu0 %vm540_vm8, %v699_v4  ;;  %v784_v11 = vcombine.low %v776_v51, %v783_v40  ;;  %v949_v34 = vrot.slane %v935_v5, %v3618_v9  ;;  %v2911_v38 = vcombine.high %v3684_v44, %v3687_v46  ;;  %v792_v41 = vrot.slane %v785_v29, %v3618_v9  ;;  %v1489_v4 = vld [vmem:[#allocation7 + $0x28] sm:$0xff] }
 0x116   :  { %3090 = vmatpush3.msk.msra.mxu0 %vm557_vm0, %v3808_v58  ;;  %3080 = vmatprep.mubr.msk.f32.mxu0 %vm540_vm8, %v716_v52  ;;  %v759_v58 = vrot.slane %v751_v61, %v3618_v9  ;;  %v986_v60 = vcombine.low %v3731_v17, %v3745_v31  ;;  %v933_v22 = vcombine.low %v925_v18, %v932_v24  ;;  %v4471_v5 = vld [vmem:[#allocation16_spill] sm:$0xff] }
 0x117   :  { %v966_v23 = vrot.slane %v952_v30, %v3618_v9  ;;  %v942_v0 = vrot.slane %v934_v14, %v3618_v9  ;;  %v968_v26 = vcombine.low %v3691_v47, %v3684_v44  ;;  %v959_v27 = vrot.slane %v951_v20, %v3618_v9  ;;  %v1486_v30 = vld [vmem:[#allocation7 + $0x10] sm:$0xff] }
 0x118   :  { %v767_v8 = vcombine.low %v759_v58, %v766_v57  ;;  %v985_v46 = vcombine.low %v3698_v53, %v3726_v6  ;;  %v1003_v17 = vcombine.low %v3773_v33, %v4467_v50  ;;  %v983_v31 = vrot.slane %v2911_v38, %v3618_v9 }
 0x119   :  { %3081 = vmatmul.mubr.msk.f32.gmra.mrb[2].mxu0 %vm540_vm8, %v733_v21  ;;  %v950_v7 = vcombine.low %v942_v0, %v949_v34  ;;  %v1020_v55 = vcombine.low %v3814_v36, %v4469_v16  ;;  %v967_v54 = vcombine.low %v959_v27, %v966_v23  ;;  %v1000_v12 = vrot.slane %v986_v60, %v3618_v9  ;;  %v1493_v23 = vld [vmem:[#allocation7 + $0x48] sm:$0xff] }
 0x11a   :  { %3083 = vmatprep.mubr.msk.f32.mxu0 %vm540_vm8, %v750_v1  ;;  %v976_v44 = vrot.slane %v968_v26, %v3618_v9  ;;  %v1002_v47 = vcombine.low %v3741_v37, %v3766_v15  ;;  %v993_v53 = vrot.slane %v985_v46, %v3618_v9  ;;  %v1019_v6 = vcombine.low %v4466_v49, %v3803_v42 }
 0x11b   :  { %v1017_v36 = vrot.slane %v1003_v17, %v3618_v9  ;;  %v1034_v35 = vrot.slane %v1020_v55, %v3618_v9  ;;  %v1036_v13 = vcombine.low %v4468_v45, %v4470_v43  ;;  %v3224_v19 = vpack.c.bf16 %v1489_v4, %v1488_v39 }
 0x11c   :  { %v984_v33 = vcombine.low %v976_v44, %v983_v31  ;;  %v1001_v62 = vcombine.low %v993_v53, %v1000_v12  ;;  %v1010_v59 = vrot.slane %v1002_v47, %v3618_v9  ;;  %v1027_v37 = vrot.slane %v1019_v6, %v3618_v9 }
 0x11d   :  { %3084 = vmatmul.mubr.msk.f32.gmra.mrb[4].mxu0 %vm540_vm8, %v767_v8  ;;  %v1043_v42 = vrot.slane %v1036_v13, %v3618_v9  ;;  %v3228_v52 = vpack.c.bf16 %v1491_v2, %v1490_v25  ;;  %3225 = vmatprep.subr.bf16.mxu1 %v3224_v19  ;;  %v4018_v61 = vpack.c.bf16 %v1485_v3, %v1484_v32  ;;  %v4031_v8 = vsub.s32 0, %v4471_v5 }
 0x11e   :  { %3086 = vmatprep.mubr.msk.f32.mxu0 %vm540_vm8, %v784_v11  ;;  %v1018_v15 = vcombine.low %v1010_v59, %v1017_v36  ;;  %v1035_v28 = vcombine.low %v1027_v37, %v1034_v35  ;;  %3227 = vmatpush3.bf16.msra.mxu1 %v3224_v19  ;;  %v1487_v11 = vld [vmem:[#allocation7 + $0x18] sm:$0xff] }
 0x11f   :  { %3229 = vmatprep.subr.bf16.mxu1 %v3228_v52 }
 0x121   :  { %3087 = vmatmul.mubr.msk.f32.gmra.mrb[6].mxu0 %vm540_vm8, %v792_v41 }
 0x122   :  { %3091 = vmatprep.mubr.msk.f32.mxu0 %vm540_vm8, %v933_v22  ;;  %3231 = vmatpush3.bf16.msra.mxu1 %v3228_v52  ;;  %v1492_v22 = vld [vmem:[#allocation7 + $0x40] sm:$0xff] }
 0x123   :  { %3233 = vmatprep.subr.bf16.mxu1 %v4018_v61  ;;  %v4041_v53 = vpack.c.bf16 %v1493_v23, %v1492_v22 }
 0x125   :  { %3092 = vmatmul.mubr.msk.f32.vlgmr.msra.gmra.mrb[0].mxu0 %vm540_vm8, %v950_v7  ;;  %v4037_v7 = vpack.c.bf16 %v1487_v11, %v1486_v30 }
 0x126   :  { %3094 = vmatprep.mubr.msk.f32.mxu0 %vm540_vm8, %v967_v54 }
 0x129   :  { %3095 = vmatmul.mubr.msk.f32.gmra.mrb[2].mxu0 %vm540_vm8, %v984_v33 }
 0x12a   :  { %3097 = vmatprep.mubr.msk.f32.mxu0 %vm540_vm8, %v1001_v62 }
 0x12d   :  { %3098 = vmatmul.mubr.msk.f32.gmra.mrb[4].mxu0 %vm540_vm8, %v1018_v15 }
 0x12e   :  { %3100 = vmatprep.mubr.msk.f32.mxu0 %vm540_vm8, %v1035_v28 }
 0x131   :  { %3101 = vmatmul.mubr.msk.f32.gmra.mrb[6].mxu0 %vm540_vm8, %v1043_v42 }
 0x1f8   :  { %v3093_v49 = vpop.f32.mrb[0].mxu0 }
 0x1f9   :  { %v1184_v50 = vadd.f32 %v3093_v49, %v4024_v63  ;;  %v1129_v10 = vpop.f32.mrb[1].mxu0 }
 0x1fa   :  { %v1183_v21 = vadd.f32 %v4024_v63, %v1129_v10 }
 0x1fb   :  { %v1192_v57 = vmax.f32 %v1184_v50, 0.0 }
 0x1fc   :  { %v1191_v56 = vmax.f32 %v1183_v21, 0.0  ;;  %v3096_v1 = vpop.f32.mrb[2].mxu0 }
 0x1fd   :  { %v1224_v40 = vcombine.high %v1192_v57, %v1192_v57  ;;  %v1231_v58 = vrot.slane %v1192_v57, %v3618_v9  ;;  %v1186_v48 = vadd.f32 %v3096_v1, %v4024_v63  ;;  %v1139_v51 = vpop.f32.mrb[3].mxu0 }
 0x1fe   :  { %v1207_v45 = vcombine.high %v1191_v56, %v1191_v56  ;;  %v1214_v16 = vrot.slane %v1191_v56, %v3618_v9  ;;  %v1185_v29 = vadd.f32 %v4024_v63, %v1139_v51 }
 0x1ff   :  { %v1238_v24 = vrot.slane %v1224_v40, %v3618_v9  ;;  %v1239_v14 = vcombine.high %v1231_v58, %v1231_v58  ;;  %v2926_v18 = vrot.slane %v1231_v58, 9  ;;  %v1194_v20 = vmax.f32 %v1186_v48, 0.0 }
 0x200   :  { %v1221_v34 = vrot.slane %v1207_v45, %v3618_v9  ;;  %v1222_v38 = vcombine.high %v1214_v16, %v1214_v16  ;;  %v2922_v41 = vrot.slane %v1214_v16, 9  ;;  %v3099_v60 = vpop.f32.mrb[4].mxu0  ;;  %v1193_v27 = vmax.f32 %v1185_v29, 0.0 }
 0x201   :  { %v2927_v0 = vrot.slane %v1239_v14, 9  ;;  %v2928_v26 = vrot.slane %v1238_v24, 9  ;;  %v1149_v46 = vpop.f32.mrb[5].mxu0  ;;  %v1458_v17 = vmax.f32 %v1231_v58, %v2926_v18  ;;  %v4039_v12 = vcombine.high %v1238_v24, %v1238_v24 }
 0x202   :  { %v1223_v31 = vcombine.high %v1221_v34, %v1221_v34  ;;  %v2923_v55 = vrot.slane %v1222_v38, 9  ;;  %v2924_v54 = vrot.slane %v1221_v34, 9  ;;  %v1454_v44 = vmax.f32 %v1214_v16, %v2922_v41 }
 0x203   :  { %v1258_v47 = vcombine.high %v1194_v20, %v1194_v20  ;;  %v1459_v6 = vmax.f32 %v1239_v14, %v2927_v0  ;;  %v4043_v33 = vmax.f32 %v1238_v24, %v2928_v26  ;;  %v1265_v37 = vrot.slane %v1194_v20, %v3618_v9 }
 0x204   :  { %v2925_v36 = vrot.slane %v1223_v31, 9  ;;  %v1455_v62 = vmax.f32 %v1222_v38, %v2923_v55  ;;  %v3102_v35 = vpop.f32.mrb[6].mxu0  ;;  %v1456_v59 = vmax.f32 %v1221_v34, %v2924_v54  ;;  %v1241_v43 = vcombine.high %v1193_v27, %v1193_v27 }
 0x205   :  { %v1272_v15 = vrot.slane %v1258_v47, %v3618_v9  ;;  %v1159_v13 = vpop.f32.mrb[7].mxu0  ;;  %v4048_v28 = vrot.slane %v1458_v17, %v4031_v8  ;;  %v4054_v4 = vrot.slane %v1193_v27, %v3618_v9  ;;  %v1273_v25 = vcombine.high %v1265_v37, %v1265_v37 }
 0x206   :  { %v1457_v42 = vmax.f32 %v1223_v31, %v2925_v36  ;;  %v4051_v39 = vrot.slane %v1455_v62, %v4031_v8  ;;  %v2934_v2 = vrot.slane %v1265_v37, 9  ;;  %v1751_v3 = vrot.slane %v1454_v44, %v4031_v8 }
 0x207   :  { %v1274_v19 = vcombine.high %v1272_v15, %v1272_v15  ;;  %v2936_v52 = vrot.slane %v1272_v15, 9  ;;  %v1255_v49 = vrot.slane %v1241_v43, %v3618_v9  ;;  %v1256_v50 = vcombine.high %v4054_v4, %v4054_v4 }
 0x208   :  { %v4057_v32 = vrot.slane %v1457_v42, %v4031_v8  ;;  %v4064_v10 = vrot.slane %v1456_v59, %v4031_v8  ;;  %v2935_v21 = vrot.slane %v1273_v25, 9  ;;  %v1466_v56 = vmax.f32 %v1265_v37, %v2934_v2 }
 0x209   :  { %v2937_v57 = vrot.slane %v1274_v19, 9  ;;  %v4067_v1 = vrot.slane %v1459_v6, %v4031_v8  ;;  %v4069_v40 = vmax.f32 %v1272_v15, %v2936_v52  ;;  %v1257_v58 = vcombine.high %v1255_v49, %v1255_v49 }
 0x20a   :  { %v2931_v48 = vrot.slane %v1256_v50, 9  ;;  %v4073_v51 = vsel %vm1626_vm9, %v4051_v39, %v1751_v3  ;;  %v4078_v45 = vsel %vm1626_vm9, %v4057_v32, %v4064_v10  ;;  %v1467_v16 = vmax.f32 %v1273_v25, %v2935_v21 }
 0x20b   :  { %v2930_v29 = vrot.slane %v4054_v4, 9  ;;  %v2932_v30 = vrot.slane %v1255_v49, 9  ;;  %v2933_v11 = vrot.slane %v1257_v58, 9  ;;  %v1188_v14 = vadd.f32 %v3099_v60, %v4024_v63 }
 0x20c   :  { %v1463_v24 = vmax.f32 %v1256_v50, %v2931_v48  ;;  %v4082_v18 = vmax.f32 %v1274_v19, %v2937_v57  ;;  %v4085_v20 = vrot.slane %v1466_v56, %v4031_v8  ;;  %v1187_v34 = vadd.f32 %v4024_v63, %v1149_v46 }
 0x20d   :  { %v1190_v38 = vadd.f32 %v3102_v35, %v4024_v63  ;;  %v1876_v41 = vrot.slane %v4069_v40, %v4031_v8  ;;  %v1464_v22 = vmax.f32 %v1255_v49, %v2932_v30  ;;  %v1465_v23 = vmax.f32 %v1257_v58, %v2933_v11 }
 0x20e   :  { %v1196_v0 = vmax.f32 %v1188_v14, 0.0  ;;  %v4092_v26 = vrot.slane %v1463_v24, %v4031_v8  ;;  %v1195_v27 = vmax.f32 %v1187_v34, 0.0  ;;  %v1189_v17 = vadd.f32 %v4024_v63, %v1159_v13 }
 0x20f   :  { %v1198_v60 = vmax.f32 %v1190_v38, 0.0  ;;  %v4096_v31 = vrot.slane %v1464_v22, %v4031_v8  ;;  %v4099_v46 = vrot.slane %v1465_v23, %v4031_v8  ;;  %v2929_v36 = vrot.slane %v4039_v12, 9 }
 0x210   :  { %v1292_v55 = vcombine.high %v1196_v0, %v1196_v0  ;;  %v1299_v54 = vrot.slane %v1196_v0, %v3618_v9  ;;  %v1275_v44 = vcombine.high %v1195_v27, %v1195_v27  ;;  %v1282_v47 = vrot.slane %v1195_v27, %v3618_v9 }
 0x211   :  { %v4104_v6 = vrot.slane %v1198_v60, %v3618_v9  ;;  %v1888_v63 = vsel %vm1626_vm9, %v4099_v46, %v4096_v31  ;;  %v1197_v59 = vmax.f32 %v1189_v17, 0.0  ;;  %v4117_v48 = vrot.slane %v1467_v16, %v4031_v8 }
 0x212   :  { %v1306_v62 = vrot.slane %v1292_v55, %v3618_v9  ;;  %v1307_v35 = vcombine.high %v1299_v54, %v1299_v54  ;;  %v4113_v37 = vsel %vm315_vm2, %v4085_v20, %v1888_v63  ;;  %v2942_v15 = vrot.slane %v1299_v54, 9 }
 0x213   :  { %v1289_v43 = vrot.slane %v1275_v44, %v3618_v9  ;;  %v1290_v13 = vcombine.high %v1282_v47, %v1282_v47  ;;  %v2938_v2 = vrot.slane %v1282_v47, 9  ;;  %v1755_v30 = vrot.slane %v4082_v18, %v4031_v8 }
 0x214   :  { %v1308_v42 = vcombine.high %v1306_v62, %v1306_v62  ;;  %v2943_v25 = vrot.slane %v1307_v35, 9  ;;  %v2944_v19 = vrot.slane %v1306_v62, 9  ;;  %v1474_v52 = vmax.f32 %v1299_v54, %v2942_v15 }
 0x215   :  { %v1291_v3 = vcombine.high %v1289_v43, %v1289_v43  ;;  %v2939_v49 = vrot.slane %v1290_v13, 9  ;;  %v2940_v50 = vrot.slane %v1289_v43, 9  ;;  %v1470_v58 = vmax.f32 %v1282_v47, %v2938_v2 }
 0x216   :  { %v2945_v21 = vrot.slane %v1308_v42, 9  ;;  %v1475_v57 = vmax.f32 %v1307_v35, %v2943_v25  ;;  %v1476_v56 = vmax.f32 %v1306_v62, %v2944_v19  ;;  %v1637_v11 = vsel %vm1626_vm9, %v4096_v31, %v4092_v26 }
 0x217   :  { %v2941_v24 = vrot.slane %v1291_v3, 9  ;;  %v4125_v34 = vrot.slane %v1474_v52, %v4031_v8  ;;  %v1471_v22 = vmax.f32 %v1290_v13, %v2939_v49  ;;  %v1472_v23 = vmax.f32 %v1289_v43, %v2940_v50 }
 0x218   :  { %v1477_v14 = vmax.f32 %v1308_v42, %v2945_v21  ;;  %v4128_v38 = vrot.slane %v1475_v57, %v4031_v8  ;;  %v2950_v0 = vrot.slane %v4104_v6, 9  ;;  %v1309_v27 = vcombine.high %v1197_v59, %v1197_v59 }
 0x219   :  { %v1473_v16 = vmax.f32 %v1291_v3, %v2941_v24  ;;  %v4132_v60 = vrot.slane %v1476_v56, %v4031_v8  ;;  %v4135_v17 = vrot.slane %v1470_v58, %v4031_v8  ;;  %v1316_v55 = vrot.slane %v1197_v59, %v3618_v9 }
 0x21a   :  { %v1461_v54 = vmax.f32 %v4039_v12, %v2929_v36  ;;  %v4140_v44 = vrot.slane %v1477_v14, %v4031_v8  ;;  %v4145_v47 = vsel %vm1626_vm9, %v4128_v38, %v4125_v34  ;;  %v1323_v62 = vrot.slane %v1309_v27, %v3618_v9 }
 0x21b   :  { %v4148_v63 = vrot.slane %v1473_v16, %v4031_v8  ;;  %v1482_v35 = vmax.f32 %v4104_v6, %v2950_v0  ;;  %v1324_v15 = vcombine.high %v1316_v55, %v1316_v55  ;;  %v2946_v59 = vrot.slane %v1316_v55, 9 }
 0x21c   :  { %v1462_v12 = vmax.f32 %v4054_v4, %v2930_v29  ;;  %v1325_v36 = vcombine.high %v1323_v62, %v1323_v62  ;;  %v2948_v43 = vrot.slane %v1323_v62, 9  ;;  %v4157_v13 = vrot.slane %v4043_v33, %v4031_v8 }
 0x21d   :  { %v4160_v42 = vrot.slane %v1461_v54, %v4031_v8  ;;  %v2947_v25 = vrot.slane %v1324_v15, 9  ;;  %v1478_v19 = vmax.f32 %v1316_v55, %v2946_v59  ;;  %v1627_v2 = vsel %vm1626_vm9, %v4064_v10, %v4051_v39 }
 0x21e   :  { %v4163_v9 = vrot.slane %v1462_v12, %v4031_v8  ;;  %v2949_v52 = vrot.slane %v1325_v36, 9  ;;  %v1480_v4 = vmax.f32 %v1323_v62, %v2948_v43  ;;  %v1628_v29 = vsel %vm315_vm2, %v4057_v32, %v1627_v2 }
 0x21f   :  { %v4171_v33 = vrot.slane %v1471_v22, %v4031_v8  ;;  %v1479_v3 = vmax.f32 %v1324_v15, %v2947_v25  ;;  %v4174_v49 = vrot.slane %v1478_v19, %v4031_v8  ;;  %v1630_v50 = vsel %vm1629_vm10, %v4048_v28, %v1628_v29 }
 0x220   :  { %v1763_v21 = vsel %vm1626_vm9, %v4092_v26, %v4163_v9  ;;  %v1631_v39 = vsel %vm317_vm4, %v4067_v1, %v1630_v50  ;;  %v4186_v56 = vrot.slane %v1472_v23, %v4031_v8  ;;  %v1638_v58 = vsel %vm315_vm2, %v4099_v46, %v1637_v11 }
 0x221   :  { %v1764_v57 = vsel %vm315_vm2, %v4096_v31, %v1763_v21  ;;  %v1633_v24 = vsel %vm1632_vm11, %v4157_v13, %v1631_v39  ;;  %v1639_v22 = vsel %vm1629_vm10, %v4085_v20, %v1638_v58  ;;  %v4197_v16 = vrot.slane %v1479_v3, %v4031_v8 }
 0x222   :  { %v1765_v14 = vsel %vm1629_vm10, %v4099_v46, %v1764_v57  ;;  %v1634_v31 = vsel %vm319_vm6, %v4160_v42, %v1633_v24  ;;  %v1640_v23 = vsel %vm317_vm4, %v4117_v48, %v1639_v22  ;;  %v1770_v11 = vsel %vm1626_vm9, %v4148_v63, %v4186_v56  ;;  %v1495_v57 = vld [vmem:[#allocation7 + $0x58] sm:$0xff] }
 0x223   :  { %v4207_v0 = vrot.slane %v1480_v4, %v4031_v8  ;;  %v1636_v46 = vsel %vm1635_vm12, %v4163_v9, %v1634_v31  ;;  %v1641_v27 = vsel %vm1632_vm11, %v4135_v17, %v1640_v23  ;;  %v1644_v55 = vsel %vm1626_vm9, %v4125_v34, %v4148_v63  ;;  %v2221_v31 = vld [vmem:[#allocation8 + $0x28] sm:$0xff]  ;;  %v2228_v23 = vld [vmem:[#allocation8 + $0x60] sm:$0xff] }
 0x224   :  { %v1481_v54 = vmax.f32 %v1325_v36, %v2949_v52  ;;  %3111 = vmatprep.mubr.msk.f32.mxu1 %vm1652_vm13, %v1636_v46  ;;  %v1642_v62 = vsel %vm319_vm6, %v4171_v33, %v1641_v27  ;;  %v1645_v15 = vsel %vm315_vm2, %v4128_v38, %v1644_v55  ;;  %v4222_v59 = vrot.slane %v1482_v35, %v4031_v8  ;;  %v2229_v46 = vld [vmem:[#allocation8 + $0x68] sm:$0xff]  ;;  %v2223_v27 = vld [vmem:[#allocation8 + $0x38] sm:$0xff] }
 0x225   :  { %v1757_v12 = vsel %vm315_vm2, %v4064_v10, %v4073_v51  ;;  %v1643_v43 = vsel %vm1635_vm12, %v4186_v56, %v1642_v62  ;;  %v1646_v36 = vsel %vm1629_vm10, %v4132_v60, %v1645_v15  ;;  %v1766_v10 = vsel %vm317_vm4, %v4085_v20, %v1765_v14  ;;  %v2230_v62 = vld [vmem:[#allocation8 + $0x70] sm:$0xff]  ;;  %v2231_v15 = vld [vmem:[#allocation8 + $0x78] sm:$0xff] }
 0x226   :  { %v1621_v25 = vrot.slane %v1481_v54, %v4031_v8  ;;  %v1758_v19 = vsel %vm1629_vm10, %v4057_v32, %v1757_v12  ;;  %3112 = vmatmul.mubr.msk.f32.vlgmr.msra.gmra.mrb[0].mxu1 %vm1652_vm13, %v1643_v43  ;;  %v1647_v35 = vsel %vm317_vm4, %v4140_v44, %v1646_v36  ;;  %v1771_v51 = vsel %vm315_vm2, %v4125_v34, %v1770_v11 }
 0x227   :  { %v1759_v2 = vsel %vm317_vm4, %v4048_v28, %v1758_v19  ;;  %3235 = vmatpush3.bf16.msra.mxu1 %v4018_v61  ;;  %v1648_v52 = vsel %vm1632_vm11, %v4174_v49, %v1647_v35  ;;  %v1767_v29 = vsel %vm1632_vm11, %v1755_v30, %v1766_v10  ;;  %v1772_v3 = vsel %vm1629_vm10, %v4128_v38, %v1771_v51 }
 0x228   :  { %v1651_v32 = vsel %vm1626_vm9, %v4222_v59, %v1621_v25  ;;  %v1760_v4 = vsel %vm1632_vm11, %v4067_v1, %v1759_v2  ;;  %v1649_v20 = vsel %vm319_vm6, %v4197_v16, %v1648_v52  ;;  %3237 = vmatprep.subr.bf16.mxu1 %v4037_v7  ;;  %v1768_v34 = vsel %vm319_vm6, %v4135_v17, %v1767_v29  ;;  %v1494_v17 = vld [vmem:[#allocation7 + $0x50] sm:$0xff] }
 0x229   :  { %v1761_v61 = vsel %vm319_vm6, %v4157_v13, %v1760_v4  ;;  %v1650_v50 = vsel %vm1635_vm12, %v4207_v0, %v1649_v20  ;;  %v1769_v30 = vsel %vm1635_vm12, %v4171_v33, %v1768_v34  ;;  %v1773_v21 = vsel %vm317_vm4, %v4132_v60, %v1772_v3 }
 0x22a   :  { %v1762_v18 = vsel %vm1635_vm12, %v4160_v42, %v1761_v61  ;;  %v1333_v39 = vcombine.high %v4104_v6, %v4104_v6  ;;  %3114 = vmatprep.mubr.msk.f32.mxu1 %vm1652_vm13, %v1650_v50  ;;  %v1774_v38 = vsel %vm1632_vm11, %v4140_v44, %v1773_v21  ;;  %v1882_v58 = vsel %vm315_vm2, %v4048_v28, %v4078_v45 }
 0x22b   :  { %v1890_v24 = vsel %vm1629_vm10, %v4117_v48, %v4113_v37  ;;  %3115 = vmatmul.mubr.msk.f32.gmra.mrb[2].mxu1 %vm1652_vm13, %v1651_v32  ;;  %v1775_v6 = vsel %vm319_vm6, %v4174_v49, %v1774_v38  ;;  %v1883_v14 = vsel %vm1629_vm10, %v4067_v1, %v1882_v58  ;;  %v1896_v28 = vsel %vm315_vm2, %v4132_v60, %v4145_v47 }
 0x22c   :  { %v1891_v22 = vsel %vm317_vm4, %v1876_v41, %v1890_v24  ;;  %3239 = vmatpush3.bf16.msra.mxu1 %v4037_v7  ;;  %3125 = vmatprep.mubr.msk.f32.mxu1 %vm1652_vm13, %v1762_v18  ;;  %v1776_v45 = vsel %vm1635_vm12, %v4197_v16, %v1775_v6  ;;  %v1884_v37 = vsel %vm317_vm4, %v4157_v13, %v1883_v14  ;;  %v2951_v60 = vrot.slane %v1333_v39, 9 }
 0x22d   :  { %v1892_v1 = vsel %vm1632_vm11, %v4171_v33, %v1891_v22  ;;  %3241 = vmatprep.subr.bf16.mxu1 %v4041_v53  ;;  %v3244_v40 = vpack.c.bf16 %v1495_v57, %v1494_v17  ;;  %v1885_v41 = vsel %vm1632_vm11, %v4160_v42, %v1884_v37  ;;  %v1897_v48 = vsel %vm1629_vm10, %v4140_v44, %v1896_v28 }
 0x22e   :  { %v1893_v7 = vsel %vm319_vm6, %v4186_v56, %v1892_v1  ;;  %v1886_v47 = vsel %vm319_vm6, %v4163_v9, %v1885_v41  ;;  %v1898_v33 = vsel %vm317_vm4, %v4174_v49, %v1897_v48  ;;  %v1483_v9 = vmax.f32 %v1333_v39, %v2951_v60 }
 0x22f   :  { %v1894_v13 = vsel %vm1635_vm12, %v4148_v63, %v1893_v7  ;;  %3126 = vmatmul.mubr.msk.f32.vlgmr.msra.gmra.mrb[0].mxu1 %vm1652_vm13, %v1769_v30  ;;  %v1887_v42 = vsel %vm1635_vm12, %v4092_v26, %v1886_v47  ;;  %v1899_v56 = vsel %vm1632_vm11, %v4197_v16, %v1898_v33  ;;  %v1777_v49 = vsel %vm1626_vm9, %v1621_v25, %v4207_v0  ;;  %v2220_v16 = vld [vmem:[#allocation8 + $0x20] sm:$0xff] }
 0x230   :  { %3243 = vmatpush3.bf16.msra.mxu1 %v4041_v53  ;;  %3128 = vmatprep.mubr.msk.f32.mxu1 %vm1652_vm13, %v1776_v45  ;;  %v1900_v44 = vsel %vm319_vm6, %v4207_v0, %v1899_v56  ;;  %v1880_v26 = vrot.slane %v1483_v9, %v4031_v8  ;;  %v3479_v11 = vmov 0.0|0.0   ;;  %v3249_v0 = vpack.c.bf16 %v2221_v31, %v2220_v16  ;;  %v2222_v8 = vld [vmem:[#allocation8 + $0x30] sm:$0xff] }
 0x231   :  { %3245 = vmatprep.subr.bf16.mxu1 %v3244_v40  ;;  %v1901_v63 = vsel %vm1635_vm12, %v1621_v25, %v1900_v44  ;;  %3266 = vmatprep.subr.bf16.mxu0 %v3479_v11  ;;  %v3267_v55 = vpack.c.bf16 %v2229_v46, %v2228_v23  ;;  %v3481_v54 = vmov 0.0   ;;  %v3270_v12 = vpack.c.bf16 %v2231_v15, %v2230_v62  ;;  %v2964_v25 = vld [vmem:[%s4433_s4] ss:$0 sm:$0xff] }
 0x232   :  { %v1902_v53 = vsel %vm1626_vm9, %v1880_v26, %v4222_v59  ;;  %3186 = vmatprep.mubr.msk.f32.mxu0 %vm3480_vm14, %v3481_v54  ;;  %v3252_v59 = vpack.c.bf16 %v2223_v27, %v2222_v8  ;;  %v3482_v43 = vmov 1966171168  }
 0x233   :  { %3129 = vmatmul.mubr.msk.f32.gmra.mrb[2].mxu1 %vm1652_vm13, %v1777_v49  ;;  %3268 = vmatpush3.bf16.msra.mxu0 %v3267_v55  ;;  %v2021_v36 = vunpack.c.l.s4 %v3482_v43 }
 0x234   :  { %3247 = vmatpush3.bf16.msra.mxu1 %v3244_v40  ;;  %3139 = vmatprep.mubr.msk.f32.mxu1 %vm1652_vm13, %v1887_v42 }
 0x235   :  { %3248 = vmatprep.subr.bf16.mxu1 %v3479_v11  ;;  %3269 = vmatprep.subr.bf16.mxu0 %v3479_v11  ;;  %v2022_v19 = vunpack.c.0.s8 %v2021_v36 }
 0x237   :  { %3140 = vmatmul.mubr.msk.f32.vlgmr.msra.gmra.mrb[0].mxu1 %vm1652_vm13, %v1894_v13  ;;  %3271 = vmatpush3.bf16.msra.mxu0 %v3270_v12  ;;  %v4349_v51 = vsub.s32 %v2022_v19, %v4471_v5  ;;  %v2217_v19 = vld [vmem:[#allocation8 + $0x8] sm:$0xff] }
 0x238   :  { %3142 = vmatprep.mubr.msk.f32.mxu1 %vm1652_vm13, %v1901_v63  ;;  %3250 = vmatpush3.bf16.msra.mxu1 %v3249_v0 }
 0x239   :  { %3251 = vmatprep.subr.bf16.mxu1 %v3479_v11  ;;  %3278 = vmatprep.subr.bf16.mxu0 %v3479_v11 }
 0x23b   :  { %3143 = vmatmul.mubr.msk.f32.gmra.mrb[2].mxu1 %vm1652_vm13, %v1902_v53 }
 0x23c   :  { %3153 = vmatprep.mubr.msk.f32.mxu1 %vm3480_vm14, %v3481_v54  ;;  %3253 = vmatpush3.bf16.msra.mxu1 %v3252_v59 }
 0x23d   :  { %3254 = vmatprep.subr.bf16.mxu1 %v3479_v11 }
 0x30a   :  { %v3141_v35 = vpop.f32.mrb[0].mxu1 }
 0x30b   :  { %v2008_v2 = vadd.f32 %v3141_v35, %v2964_v25  ;;  %v1977_v10 = vpop.f32.mrb[1].mxu1 }
 0x30c   :  { %v2007_v52 = vadd.f32 %v2964_v25, %v1977_v10 }
 0x30d   :  { %v2012_v32 = vmax.f32 %v2008_v2, 0.0 }
 0x30e   :  { %v2011_v4 = vmax.f32 %v2007_v52, 0.0  ;;  %v3144_v29 = vpop.f32.mrb[2].mxu1 }
 0x30f   :  { %v2068_v20 = vcombine.high %v2012_v32, %v2012_v32  ;;  %v1987_v61 = vpop.f32.mrb[3].mxu1  ;;  %v2075_v30 = vrot.slane %v2012_v32, %v4349_v51  ;;  %v2010_v58 = vadd.f32 %v3144_v29, %v2964_v25 }
 0x310   :  { %v2019_v34 = vcombine.high %v2011_v4, %v2011_v4  ;;  %v2026_v3 = vrot.slane %v2011_v4, %v4349_v51  ;;  %v2009_v50 = vadd.f32 %v2964_v25, %v1987_v61  ;;  %v2216_v25 = vld [vmem:[#allocation8] sm:$0xff] }
 0x311   :  { %v2082_v18 = vrot.slane %v2068_v20, %v4349_v51  ;;  %v2083_v28 = vcombine.high %v2075_v30, %v2075_v30  ;;  %v2091_v40 = vrot.slane %v2075_v30, %v4349_v51  ;;  %v2014_v7 = vmax.f32 %v2010_v58, 0.0 }
 0x312   :  { %v2033_v21 = vrot.slane %v2019_v34, %v4349_v51  ;;  %v2034_v39 = vcombine.high %v2026_v3, %v2026_v3  ;;  %v2042_v17 = vrot.slane %v2026_v3, %v4349_v51  ;;  %v2013_v24 = vmax.f32 %v2009_v50, 0.0 }
 0x313   :  { %v2084_v38 = vcombine.high %v2082_v18, %v2082_v18  ;;  %v2098_v5 = vrot.slane %v2082_v18, %v4349_v51  ;;  %v2105_v42 = vrot.slane %v2083_v28, %v4349_v51  ;;  %v2113_v26 = vcombine.high %v2091_v40, %v2091_v40  ;;  %v2236_v18 = vld [vmem:[#allocation8 + $0xa0] sm:$0xff]  ;;  %v2239_v28 = vld [vmem:[#allocation8 + $0xb8] sm:$0xff] }
 0x314   :  { %v2056_v57 = vrot.slane %v2034_v39, %v4349_v51  ;;  %v2035_v22 = vcombine.high %v2033_v21, %v2033_v21  ;;  %v2064_v41 = vcombine.high %v2042_v17, %v2042_v17  ;;  %v2117_v48 = vcombine.high %v2013_v24, %v2013_v24  ;;  %v2237_v39 = vld [vmem:[#allocation8 + $0xa8] sm:$0xff] }
 0x315   :  { %v2112_v6 = vrot.slane %v2084_v38, %v4349_v51  ;;  %v2114_v14 = vcombine.high %v2098_v5, %v2098_v5  ;;  %v2124_v33 = vrot.slane %v2013_v24, %v4349_v51  ;;  %v2049_v56 = vrot.slane %v2033_v21, %v4349_v51  ;;  %v2218_v38 = vld [vmem:[#allocation8 + $0x10] sm:$0xff]  ;;  %v2219_v5 = vld [vmem:[#allocation8 + $0x18] sm:$0xff] }
 0x316   :  { %v2204_v45 = vmax.f32 %v2042_v17, %v2056_v57  ;;  %v2066_v1 = vcombine.high %v2056_v57, %v2056_v57  ;;  %v2063_v60 = vrot.slane %v2035_v22, %v4349_v51  ;;  %v2131_v44 = vrot.slane %v2117_v48, %v4349_v51  ;;  %v2226_v48 = vld [vmem:[#allocation8 + $0x50] sm:$0xff] }
 0x317   :  { %v2210_v37 = vmax.f32 %v2112_v6, %v2114_v14  ;;  %v2116_v13 = vcombine.high %v2112_v6, %v2112_v6  ;;  %v2132_v9 = vcombine.high %v2124_v33, %v2124_v33  ;;  %v2140_v49 = vrot.slane %v2124_v33, %v4349_v51  ;;  %v2238_v6 = vld [vmem:[#allocation8 + $0xb0] sm:$0xff] }
 0x318   :  { %v2205_v63 = vmax.f32 %v2064_v41, %v2066_v1  ;;  %v2172_v53 = vrot.slane %v2014_v7, %v4349_v51  ;;  %v2133_v16 = vcombine.high %v2131_v44, %v2131_v44  ;;  %v2147_v31 = vrot.slane %v2131_v44, %v4349_v51 }
 0x319   :  { %v4361_v47 = vcombine.low %v2204_v45, %v2210_v37  ;;  %v2067_v23 = vcombine.high %v2063_v60, %v2063_v60  ;;  %v2154_v0 = vrot.slane %v2132_v9, %v4349_v51  ;;  %v2162_v46 = vcombine.high %v2140_v49, %v2140_v49  ;;  %v2224_v45 = vld [vmem:[#allocation8 + $0x40] sm:$0xff]  ;;  %v2225_v37 = vld [vmem:[#allocation8 + $0x48] sm:$0xff]  ;;  %v2234_v9 = vld [vmem:[#allocation8 + $0x90] sm:$0xff] }
 0x31a   :  { %v2211_v8 = vmax.f32 %v2116_v13, %v2140_v49  ;;  %v2115_v27 = vcombine.high %v2105_v42, %v2105_v42  ;;  %v2065_v55 = vcombine.high %v2049_v56, %v2049_v56  ;;  %v2161_v62 = vrot.slane %v2133_v16, %v4349_v51  ;;  %v2235_v49 = vld [vmem:[#allocation8 + $0x98] sm:$0xff] }
 0x31b   :  { %v2163_v15 = vcombine.high %v2147_v31, %v2147_v31  ;;  %v2206_v59 = vmax.f32 %v2049_v56, %v2063_v60  ;;  %v2164_v12 = vcombine.high %v2154_v0, %v2154_v0  ;;  %v2212_v43 = vmax.f32 %v2154_v0, %v2162_v46  ;;  %v2227_v60 = vld [vmem:[#allocation8 + $0x58] sm:$0xff]  ;;  %v2233_v56 = vld [vmem:[#allocation8 + $0x88] sm:$0xff]  ;;  %v2789_v0 = vld [vmem:[#allocation10 + $0x10] sm:$0xff] }
 0x31c   :  { %v2242_v36 = vcombine.low %v2205_v63, %v2211_v8  ;;  %v2208_v35 = vmax.f32 %v2091_v40, %v2105_v42  ;;  %v2179_v2 = vrot.slane %v2172_v53, %v4349_v51  ;;  %v2165_v10 = vcombine.high %v2161_v62, %v2161_v62  ;;  %v2232_v42 = vld [vmem:[#allocation8 + $0x80] sm:$0xff]  ;;  %v2790_v8 = vld [vmem:[#allocation10 + $0x18] sm:$0xff] }
 0x31d   :  { %v2214_v52 = vmax.f32 %v2161_v62, %v2163_v15  ;;  %v2207_v32 = vmax.f32 %v2065_v55, %v2067_v23  ;;  %v2213_v4 = vmax.f32 %v2164_v12, %v2147_v31  ;;  %v2420_v20 = vcombine.low %v2206_v59, %v2212_v43  ;;  %v2787_v31 = vld [vmem:[#allocation10] sm:$0xff]  ;;  %v2788_v23 = vld [vmem:[#allocation10 + $0x8] sm:$0xff] }
 0x31e   :  { %v2249_v29 = vrot.slane %v2242_v36, %v4349_v51  ;;  %v2209_v61 = vmax.f32 %v2113_v26, %v2115_v27  ;;  %v2215_v34 = vmax.f32 %v2165_v10, %v2179_v2  ;;  %v3255_v50 = vpack.c.bf16 %v2217_v19, %v2216_v25 }
 0x31f   :  { %v2600_v3 = vcombine.low %v2208_v35, %v2214_v52  ;;  %v2510_v21 = vcombine.low %v2207_v32, %v2213_v4  ;;  %v3279_v58 = vpack.c.bf16 %v2237_v39, %v2236_v18  ;;  %v3258_v24 = vpack.c.bf16 %v2219_v5, %v2218_v38 }
 0x320   :  { %v2256_v30 = vrot.slane %v2249_v29, %v4349_v51  ;;  %v2690_v17 = vcombine.low %v2209_v61, %v2215_v34  ;;  %v2338_v14 = vrot.slane %v4361_v47, %v4349_v51  ;;  %v3282_v1 = vpack.c.bf16 %v2239_v28, %v2238_v6  ;;  %v2972_v34 = vld [vmem:[%s4437_s8] ss:$0 sm:$0xff] }
 0x321   :  { %v2517_v57 = vrot.slane %v2510_v21, %v4349_v51  ;;  %v3261_v40 = vpack.c.bf16 %v2225_v37, %v2224_v45  ;;  %v3264_v47 = vpack.c.bf16 %v2227_v60, %v2226_v48  ;;  %v2427_v13 = vrot.slane %v2420_v20, %v4349_v51 }
 0x322   :  { %3154 = vmatmul.mubr.msk.f32.vlgmr.msra.gmra.mrb[4].mxu1 %vm1652_vm13, %v2256_v30  ;;  %v2345_v41 = vrot.slane %v2338_v14, %v4349_v51  ;;  %v2697_v7 = vrot.slane %v2690_v17, %v4349_v51  ;;  %v3273_v44 = vpack.c.bf16 %v2233_v56, %v2232_v42  ;;  %v3276_v26 = vpack.c.bf16 %v2235_v49, %v2234_v9 }
 0x323   :  { %3256 = vmatpush3.bf16.msra.mxu1 %v3255_v50  ;;  %3164 = vmatprep.mubr.msk.f32.mxu1 %vm3480_vm14, %v3481_v54  ;;  %v2524_v22 = vrot.slane %v2517_v57, %v4349_v51  ;;  %v2434_v63 = vrot.slane %v2427_v13, %v4349_v51  ;;  %v2607_v53 = vrot.slane %v2600_v3, %v4349_v51 }
 0x324   :  { %3257 = vmatprep.subr.bf16.mxu1 %v3479_v11  ;;  %v2704_v33 = vrot.slane %v2697_v7, %v4349_v51  ;;  %v3285_v46 = vpack.c.bf16 %v2788_v23, %v2787_v31  ;;  %v3288_v27 = vpack.c.bf16 %v2790_v8, %v2789_v0 }
 0x325   :  { %3187 = vmatmul.mubr.msk.f32.vlgmr.msra.gmra.mrb[8].mxu0 %vm1652_vm13, %v2524_v22  ;;  %v2614_v16 = vrot.slane %v2607_v53, %v4349_v51  ;;  %v2791_v51 = vld [vmem:[#allocation10 + $0x20] sm:$0xff] }
 0x326   :  { %3280 = vmatpush3.bf16.msra.mxu0 %v3279_v58  ;;  %3208 = vmatprep.mubr.msk.f32.mxu0 %vm3480_vm14, %v3481_v54 }
 0x327   :  { %3259 = vmatpush3.bf16.msra.mxu1 %v3258_v24  ;;  %3281 = vmatprep.subr.bf16.mxu0 %v3479_v11 }
 0x328   :  { %3260 = vmatprep.subr.bf16.mxu1 %v3479_v11 }
 0x32a   :  { %3165 = vmatmul.mubr.msk.f32.vlgmr.msra.gmra.mrb[6].mxu1 %vm1652_vm13, %v2345_v41  ;;  %3283 = vmatpush3.bf16.msra.mxu0 %v3282_v1 }
 0x32b   :  { %3262 = vmatpush3.bf16.msra.mxu1 %v3261_v40  ;;  %3175 = vmatprep.mubr.msk.f32.mxu1 %vm3480_vm14, %v3481_v54 }
 0x32c   :  { %3263 = vmatprep.subr.bf16.mxu1 %v3479_v11 }
 0x32d   :  { %3209 = vmatmul.mubr.msk.f32.vlgmr.msra.gmra.mrb[10].mxu0 %vm1652_vm13, %v2704_v33 }
 0x32f   :  { %3265 = vmatpush3.bf16.msra.mxu1 %v3264_v47 }
 0x330   :  { %3272 = vmatprep.subr.bf16.mxu1 %v3479_v11 }
 0x332   :  { %3176 = vmatmul.mubr.msk.f32.vlgmr.msra.gmra.mrb[8].mxu1 %vm1652_vm13, %v2434_v63 }
 0x333   :  { %3274 = vmatpush3.bf16.msra.mxu1 %v3273_v44  ;;  %3197 = vmatprep.mubr.msk.f32.mxu1 %vm3480_vm14, %v3481_v54 }
 0x334   :  { %3275 = vmatprep.subr.bf16.mxu1 %v3479_v11 }
 0x337   :  { %3277 = vmatpush3.bf16.msra.mxu1 %v3276_v26 }
 0x338   :  { %3284 = vmatprep.subr.bf16.mxu1 %v3479_v11 }
 0x33a   :  { %3198 = vmatmul.mubr.msk.f32.vlgmr.msra.gmra.mrb[10].mxu1 %vm1652_vm13, %v2614_v16 }
 0x33b   :  { %3221 = vmatprep.mubr.msk.f32.mxu1 %vm3480_vm14, %v3481_v54  ;;  %3286 = vmatpush3.bf16.msra.mxu1 %v3285_v46 }
 0x33c   :  { %3287 = vmatprep.subr.bf16.mxu1 %v3479_v11 }
 0x33f   :  { %3289 = vmatpush3.bf16.msra.mxu1 %v3288_v27 }
 0x340   :  { %3219 = vmatprep.subr.mxu1 %v3481_v54  ;;  %v2971_v54 = vld [vmem:[%s4435_s6] ss:$0 sm:$0xff] }
 0x343   :  { %3220 = vmatpush3.msra.mxu1 %v2791_v51 }
 0x3f5   :  { %v2325_v55 = vpop.f32.mrb[4].mxu1 }
 0x3f6   :  { %v3155_v62 = vpop.f32.mrb[5].mxu1 }
 0x3f8   :  { %v2593_v15 = vpop.f32.mrb[8].mxu0 }
 0x3f9   :  { %v3188_v59 = vpop.f32.mrb[9].mxu0 }
 0x3fd   :  { %v2414_v12 = vpop.f32.mrb[6].mxu1 }
 0x3fe   :  { %v2415_v43 = vadd.f32 %v2414_v12, %v2325_v55  ;;  %v3166_v36 = vpop.f32.mrb[7].mxu1 }
 0x400   :  { %v2773_v25 = vpop.f32.mrb[10].mxu0 }
 0x401   :  { %v3210_v19 = vpop.f32.mrb[11].mxu0 }
 0x405   :  { %v2503_v35 = vpop.f32.mrb[8].mxu1 }
 0x406   :  { %v2507_v2 = vadd.f32 %v2503_v35, %v2415_v43  ;;  %v3177_v10 = vpop.f32.mrb[9].mxu1 }
 0x408   :  { %v2597_v52 = vadd.f32 %v2593_v15, %v2507_v2 }
 0x40d   :  { %v2683_v32 = vpop.f32.mrb[10].mxu1 }
 0x40e   :  { %v2687_v11 = vadd.f32 %v2683_v32, %v2597_v52  ;;  %v3199_v4 = vpop.f32.mrb[11].mxu1 }
 0x410   :  { %v2777_v29 = vadd.f32 %v2773_v25, %v2687_v11 }
 0x412   :  { %v2785_v20 = vadd.f32 %v2971_v54, %v2777_v29 }
 0x414   :  { %v2786_v61 = vmax.f32 %v2785_v20, 0.0 }
 0x416   :  { %3222 = vmatmul.mubr.msk.f32.vlgmr.msra.gmra.mrb[12].mxu1 %vm2799_vm15, %v2786_v61 }
 0x4e9   :  { %v2869_v3 = vpop.f32.mrb[12].mxu1 }
 0x4ea   :  { %v2870_v50 = vadd.f32 %v2972_v34, %v2869_v3  ;;  %v3223_v18 = vpop.f32.mrb[13].mxu1 }
 0x4ec   :  { %2873 = vst [vmem:[#allocation11] sm:$0x3] %v2870_v50 }
 0x4ed   :  { %3450 = shalt.err (!%p3447_p2)
}
 0x4ee   :  { %s3451_s17 = scalar_lea.hbm %s4438_s9, 32 }
 0x4ef   :  { %p3452_p3 = scmp.ne.s32.totalorder %s4438_s9, %s3451_s17  ;;  %p3455_p4 = scmp.lt.u32.totalorder %s3451_s17, %s4438_s9 }
 0x4f1   :  { %p3457_p5 = pnand %p3455_p4, %p3452_p3 }
 0x4f3   :  { %3460 = shalt.err (!%p3457_p5)
}
 0x4f4   :  { %2883 = dma.vmem_to_hbm [thread:$0]  %s2881_s1, 32, %s4438_s9, [#allocation4]  }
 0x4f5   :  { %3467 = dma.done.wait [#allocation4], 32  }
 0x4f6   :  { %3468 = vsyncadd [#allocation4], 4294967264 }
 0x4f7   :  { %2887 = vsyncpa [#allocation3], 1 }
 0x4f8   :  { %2888 = vsyncpa [#allocation6], 1 }
 0x4f9   :  { %2889 = vsyncpa [#allocation9], 1 }
 0x4fa   :  { %2890 = vsyncpa [#allocation4], 1 }

// kernel: tpu_custom_call.1
= control target key start
LH: loop header
LB: loop body
LE: loop exit
PB: predicated region body
PF: predicated region fallthrough
CT: control target
= control target key end

     0   :  { %14 = vsyncpa [#allocation3], 0  ;;  %s4210_s0 = inlined_call_operand.vmem [shape: f32[2,32,4], index: 0, kind: input, shape index: {}]   ;;  %s4211_s1 = inlined_call_operand.vmem [shape: f32[3,4,32], index: 1, kind: input, shape index: {}]   ;;  %s4212_s2 = inlined_call_operand.vmem [shape: f32[1,32], index: 2, kind: input, shape index: {}]   ;;  %s4213_s3 = inlined_call_operand.hbm [shape: f32[3,32,32], index: 3, kind: input, shape index: {}]   ;;  %s4214_s4 = inlined_call_operand.vmem [shape: f32[1,32], index: 4, kind: input, shape index: {}]   ;;  %s4215_s5 = inlined_call_operand.hbm [shape: f32[6,32,40], index: 5, kind: input, shape index: {}]   ;;  %s4216_s6 = inlined_call_operand.vmem [shape: f32[1,40], index: 6, kind: input, shape index: {}]   ;;  %s4217_s7 = inlined_call_operand.vmem [shape: f32[40,128], index: 7, kind: input, shape index: {}]   ;;  %s4218_s8 = inlined_call_operand.vmem [shape: f32[1,128], index: 8, kind: input, shape index: {}]   ;;  %s4219_s9 = inlined_call_operand.hbm [shape: f32[2,128], index: 9, kind: output, shape index: {}]  }
   0x1   :  { %15 = vsyncpa [#allocation6], 0 }
   0x2   :  { %16 = vsyncpa [#allocation4], 0  ;;  %s3305_s30 = smov [#allocation2]   ;;  %s3233_s13 = scalar_lea.hbm %s4213_s3, 1536 }
   0x3   :  { %s28_s10 = sshll.u32 %s3305_s30, 4  ;;  %p3234_p0 = scmp.ne.s32.totalorder %s4213_s3, %s3233_s13  ;;  %s29_s10 = int_to_ptr.vmem [resolvable:$true] %s28_s10 }
   0x4   :  { %p3237_p1 = scmp.lt.u32.totalorder %s3233_s13, %s4213_s3 }
   0x6   :  { %p3239_p2 = pnand %p3237_p1, %p3234_p0 }
   0x8   :  { %3242 = shalt.err (!%p3239_p2)
}
   0x9   :  { %s3243_s18 = scalar_lea.vmem %s29_s10, 1536  ;;  %p3248_p4 = scmp.lt.s32.totalorder %s29_s10, %s29_s10 }
   0xa   :  { %p3244_p3 = scmp.ne.s32.totalorder %s29_s10, %s3243_s18  ;;  %p3249_p5 = scmp.lt.s32.totalorder %s3243_s18, %s3243_s18 }
   0xc   :  { %p3250_p6 = por %p3249_p5, %p3248_p4 }
   0xe   :  { %p3251_p7 = pnand %p3250_p6, %p3244_p3 }
  0x10   :  { %3254 = shalt.err (!%p3251_p7)
}
  0x11   :  { %s3306_s19 = smov 128   ;;  %s3307_s20 = smov 8  }
  0x12   :  { %34 = dma.hbm_to_vmem [thread:$0]  %s4213_s3, 1536, %s29_s10, [#allocation3], %s3306_s19, %s3306_s19, %s3307_s20  }
  0x13   :  { %s3308_s23 = smov [#allocation5]   ;;  %s3255_s27 = scalar_lea.hbm %s4215_s5, 3072 }
  0x14   :  { %s42_s24 = sshll.u32 %s3308_s23, 4  ;;  %p3256_p8 = scmp.ne.s32.totalorder %s4215_s5, %s3255_s27  ;;  %s43_s24 = int_to_ptr.vmem [resolvable:$true] %s42_s24 }
  0x15   :  { %p3259_p9 = scmp.lt.u32.totalorder %s3255_s27, %s4215_s5 }
  0x17   :  { %p3261_p10 = pnand %p3259_p9, %p3256_p8 }
  0x19   :  { %3264 = shalt.err (!%p3261_p10)
}
  0x1a   :  { %s3265_s12 = scalar_lea.vmem %s43_s24, 3072  ;;  %p3270_p12 = scmp.lt.s32.totalorder %s43_s24, %s43_s24 }
  0x1b   :  { %p3266_p11 = scmp.ne.s32.totalorder %s43_s24, %s3265_s12  ;;  %p3271_p13 = scmp.lt.s32.totalorder %s3265_s12, %s3265_s12 }
  0x1d   :  { %p3272_p0 = por %p3271_p13, %p3270_p12 }
  0x1f   :  { %p3273_p1 = pnand %p3272_p0, %p3266_p11 }
  0x21   :  { %3276 = shalt.err (!%p3273_p1)
}
  0x22   :  { %48 = dma.hbm_to_vmem [thread:$0]  %s4215_s5, 3072, %s43_s24, [#allocation6], %s3306_s19, %s3306_s19, %s3307_s20  }
  0x23   :  { %3299 = dma.done.wait [#allocation3], 1536  }
  0x24   :  { %3300 = vsyncadd [#allocation3], 4294965760 }
  0x25   :  { %3301 = dma.done.wait [#allocation6], 3072  }
  0x26   :  { %3302 = vsyncadd [#allocation6], 4294964224  ;;  %v84_v0 = vlaneseq  ;;  %vm216_vm0 = vcmask 1040384   ;;  %v3309_v1 = vmov 1983009808   ;;  %vm217_vm1 = vcmask 1042434  }
  0x27   :  { %v82_v2 = vunpack.c.l.s4 %v3309_v1  ;;  %vm218_vm2 = vmor %vm216_vm0, %vm217_vm1  ;;  %vm219_vm3 = vcmask 1044484   ;;  %vm459_vm4 = vcmask 1043456   ;;  %v70_v7 = vld [vmem:[%s4211_s1 + $0x4] sm:$0xf]  ;;  %v62_v9 = vld [vmem:[%s4210_s0 + $0x8] sm:$0xff]  ;;  %vm221_vm6 = vcmask 1046534  }
  0x28   :  { %v3389_v3 = vshrl.u32 %v84_v0, 7  ;;  %vm3396_vm5 = vmor %vm218_vm2, %vm219_vm3  ;;  %v61_v8 = vld [vmem:[%s4210_s0] sm:$0xff]  ;;  %2962 = vmatprep.subr.msk.mxu0 %vm459_vm4, %v70_v7  ;;  %v97_v12 = vcombine.high %v62_v9, %v62_v9  ;;  %v63_v15 = vld [vmem:[%s4210_s0 + $0x10] sm:$0xff]  ;;  %vm442_vm8 = vcmask 31744   ;;  %vm1528_vm9 = vcmask 1041409   ;;  %s3314_s24 = smov [#allocation7]  }
  0x29   :  { %v83_v4 = vunpack.c.0.s8 %v82_v2  ;;  %v80_v10 = vcombine.high %v61_v8, %v61_v8  ;;  %v3419_v14 = vld [vmem:[%s4211_s1] sm:$0xf]  ;;  %v64_v16 = vld [vmem:[%s4210_s0 + $0x18] sm:$0xff]  ;;  %2963 = vmatpush3.msk.msra.mxu0 %vm459_vm4, %v70_v7  ;;  %v114_v18 = vcombine.high %v63_v15, %v63_v15  ;;  %vm3450_vm7 = vmor %vm3396_vm5, %vm221_vm6  ;;  %vm1531_vm10 = vcmask 1043459   ;;  %s2782_s25 = sshll.u32 %s3314_s24, 4  ;;  %s2783_s25 = int_to_ptr.vmem [resolvable:$true] %s2782_s25 }
  0x2a   :  { %v131_v19 = vcombine.high %v64_v16, %v64_v16  ;;  %2976 = vmatprep.subr.msk.mxu0 %vm459_vm4, %v3419_v14  ;;  %v65_v2 = vld [vmem:[%s4210_s0 + $0x20] sm:$0xff]  ;;  %vm1534_vm11 = vcmask 1045509   ;;  %vm1537_vm12 = vcmask 1047559   ;;  %vm1554_vm13 = vcmask 261120   ;;  %s3277_s26 = scalar_lea.vmem %s2783_s25, 32  ;;  %p3282_p3 = scmp.lt.s32.totalorder %s2783_s25, %s2783_s25 }
  0x2b   :  { %v3393_v5 = vsub.s32 %v83_v4, %v3389_v3  ;;  %vm3311_vm14 = vmmov 0   ;;  %vm2701_vm15 = vcmask 326656   ;;  %p3278_p2 = scmp.ne.s32.totalorder %s2783_s25, %s3277_s26  ;;  %p3283_p4 = scmp.lt.s32.totalorder %s3277_s26, %s3277_s26 }
  0x2d   :  { %v3411_v11 = vrot.slane %v61_v8, %v3393_v5  ;;  %v3414_v13 = vrot.slane %v62_v9, %v3393_v5  ;;  %v3429_v17 = vrot.slane %v63_v15, %v3393_v5  ;;  %v3432_v20 = vrot.slane %v64_v16, %v3393_v5  ;;  %p3284_p5 = por %p3283_p4, %p3282_p3 }
  0x2e   :  { %v3435_v21 = vrot.slane %v80_v10, %v3393_v5  ;;  %v3442_v23 = vrot.slane %v97_v12, %v3393_v5  ;;  %v3461_v29 = vrot.slane %v114_v18, %v3393_v5  ;;  %v3500_v56 = vrot.slane %v131_v19, %v3393_v5 }
  0x2f   :  { %v3439_v22 = vcombine.high %v3411_v11, %v3411_v11  ;;  %v2792_v24 = vrot.slane %v3411_v11, 9  ;;  %v234_v26 = vrot.slane %v3414_v13, 7  ;;  %v3457_v27 = vcombine.high %v3414_v13, %v3414_v13  ;;  %p3285_p6 = pnand %p3284_p5, %p3278_p2 }
  0x30   :  { %v246_v28 = vrot.slane %v3429_v17, 7  ;;  %v3465_v30 = vcombine.high %v3435_v21, %v3435_v21  ;;  %v228_v32 = vrot.slane %v3435_v21, 7  ;;  %v3471_v33 = vcombine.high %v3442_v23, %v3442_v23 }
  0x31   :  { %v225_v31 = vrot.slane %v3439_v22, 7  ;;  %v236_v34 = vrot.slane %v234_v26, 2  ;;  %v237_v35 = vrot.slane %v3457_v27, 7  ;;  %v240_v36 = vrot.slane %v3442_v23, 7 }
  0x32   :  { %v3477_v37 = vcombine.high %v3429_v17, %v3429_v17  ;;  %v230_v40 = vrot.slane %v228_v32, 2  ;;  %v231_v41 = vrot.slane %v3465_v30, 7  ;;  %v243_v45 = vrot.slane %v3471_v33, 7 }
  0x33   :  { %v226_v38 = vsel %vm3450_vm7, %v2792_v24, %v225_v31  ;;  %v227_v39 = vrot.slane %v225_v31, 2  ;;  %v238_v42 = vsel %vm3450_vm7, %v236_v34, %v237_v35  ;;  %v239_v43 = vrot.slane %v237_v35, 2 }
  0x34   :  { %v242_v44 = vrot.slane %v240_v36, 2  ;;  %v232_v47 = vsel %vm3450_vm7, %v230_v40, %v231_v41  ;;  %v233_v48 = vrot.slane %v231_v41, 2  ;;  %v3491_v49 = vcombine.high %v3461_v29, %v3461_v29  ;;  %v3544_v40 = vld [vmem:[%s4211_s1 + $0x8] sm:$0xf] }
  0x35   :  { %v229_v46 = vsel %vm3450_vm7, %v227_v39, %v228_v32  ;;  %v241_v51 = vsel %vm3450_vm7, %v239_v43, %v240_v36  ;;  %v245_v53 = vrot.slane %v243_v45, 2  ;;  %v248_v57 = vrot.slane %v246_v28, 2  ;;  %v66_v39 = vld [vmem:[%s4210_s0 + $0x28] sm:$0xff] }
  0x36   :  { %v315_v50 = vcombine.low %v226_v38, %v229_v46  ;;  %v244_v52 = vsel %vm3450_vm7, %v242_v44, %v243_v45  ;;  %v235_v54 = vsel %vm3450_vm7, %v233_v48, %v234_v26  ;;  %v332_v55 = vcombine.low %v238_v42, %v241_v51 }
  0x37   :  { %v316_v58 = vcombine.low %v232_v47, %v235_v54  ;;  %v247_v60 = vsel %vm3450_vm7, %v245_v53, %v246_v28  ;;  %v249_v61 = vrot.slane %v3477_v37, 7  ;;  %v252_v0 = vrot.slane %v3461_v29, 7  ;;  %v67_v53 = vld [vmem:[%s4210_s0 + $0x30] sm:$0xff] }
  0x38   :  { %v323_v59 = vrot.slane %v315_v50, %v3393_v5  ;;  %v333_v62 = vcombine.low %v244_v52, %v247_v60  ;;  %v340_v63 = vrot.slane %v332_v55, %v3393_v5  ;;  %v255_v1 = vrot.slane %v3491_v49, 7 }
  0x39   :  { %v330_v4 = vrot.slane %v316_v58, %v3393_v5  ;;  %v250_v6 = vsel %vm3450_vm7, %v248_v57, %v249_v61  ;;  %v251_v7 = vrot.slane %v249_v61, 2  ;;  %v258_v8 = vrot.slane %v3432_v20, 7 }
  0x3a   :  { %v347_v9 = vrot.slane %v333_v62, %v3393_v5  ;;  %v254_v10 = vrot.slane %v252_v0, 2  ;;  %v257_v12 = vrot.slane %v255_v1, 2  ;;  %v3519_v15 = vcombine.high %v3432_v20, %v3432_v20 }
  0x3b   :  { %v331_v16 = vcombine.low %v323_v59, %v330_v4  ;;  %v253_v18 = vsel %vm3450_vm7, %v251_v7, %v252_v0  ;;  %v3524_v19 = vrot.slane %v65_v2, %v3393_v5  ;;  %v214_v24 = vcombine.high %v3500_v56, %v3500_v56 }
  0x3c   :  { %v348_v26 = vcombine.low %v340_v63, %v347_v9  ;;  %v256_v28 = vsel %vm3450_vm7, %v254_v10, %v255_v1  ;;  %v259_v31 = vsel %vm3450_vm7, %v257_v12, %v258_v8  ;;  %v349_v32 = vcombine.low %v250_v6, %v253_v18 }
  0x3d   :  { %2964 = vmatprep.mubr.msk.f32.mxu0 %vm442_vm8, %v331_v16  ;;  %v350_v34 = vcombine.low %v256_v28, %v259_v31  ;;  %v3535_v35 = vcombine.high %v3524_v19, %v3524_v19  ;;  %v260_v36 = vrot.slane %v258_v8, 2  ;;  %v261_v38 = vrot.slane %v3519_v15, 7 }
  0x3e   :  { %2965 = vmatmul.mubr.msk.f32.vlgmr.msra.gmra.mrb[0].mxu0 %vm442_vm8, %v348_v26  ;;  %v357_v41 = vrot.slane %v349_v32, %v3393_v5  ;;  %v264_v42 = vrot.slane %v3500_v56, 7  ;;  %v267_v43 = vrot.slane %v214_v24, 7  ;;  %v2793_v44 = vrot.slane %v3524_v19, 9 }
  0x3f   :  { %2977 = vmatpush3.msk.msra.mxu0 %vm459_vm4, %v3419_v14  ;;  %v364_v45 = vrot.slane %v350_v34, %v3393_v5  ;;  %v262_v46 = vsel %vm3450_vm7, %v260_v36, %v261_v38  ;;  %v263_v47 = vrot.slane %v261_v38, 2  ;;  %v271_v48 = vrot.slane %v3535_v35, 7  ;;  %v68_v38 = vld [vmem:[%s4210_s0 + $0x38] sm:$0xff] }
  0x40   :  { %v266_v50 = vrot.slane %v264_v42, 2  ;;  %v147_v51 = vcombine.high %v65_v2, %v65_v2  ;;  %v3557_v52 = vrot.slane %v66_v39, %v3393_v5  ;;  %v164_v54 = vcombine.high %v66_v39, %v66_v39  ;;  %2990 = vmatprep.subr.msk.mxu0 %vm459_vm4, %v3544_v40 }
  0x41   :  { %v365_v14 = vcombine.low %v357_v41, %v364_v45  ;;  %v265_v55 = vsel %vm3450_vm7, %v263_v47, %v264_v42  ;;  %v272_v57 = vsel %vm3450_vm7, %v2793_v44, %v271_v48  ;;  %v273_v58 = vrot.slane %v271_v48, 2 }
  0x42   :  { %v268_v59 = vsel %vm3450_vm7, %v266_v50, %v267_v43  ;;  %v366_v60 = vcombine.low %v262_v46, %v265_v55  ;;  %v3571_v61 = vrot.slane %v147_v51, %v3393_v5  ;;  %v3575_v62 = vcombine.high %v3557_v52, %v3557_v52 }
  0x43   :  { %2967 = vmatprep.mubr.msk.f32.mxu0 %vm442_vm8, %v365_v14  ;;  %v367_v63 = vcombine.low %v268_v59, %v272_v57  ;;  %v280_v0 = vrot.slane %v3557_v52, 7  ;;  %v3580_v1 = vrot.slane %v164_v54, %v3393_v5  ;;  %v3583_v2 = vrot.slane %v67_v53, %v3393_v5 }
  0x44   :  { %v374_v4 = vrot.slane %v366_v60, %v3393_v5  ;;  %v3588_v6 = vcombine.high %v3571_v61, %v3571_v61  ;;  %v274_v7 = vrot.slane %v3571_v61, 7  ;;  %v283_v8 = vrot.slane %v3575_v62, 7 }
  0x45   :  { %v381_v9 = vrot.slane %v367_v63, %v3393_v5  ;;  %v282_v10 = vrot.slane %v280_v0, 2  ;;  %v3595_v12 = vcombine.high %v3580_v1, %v3580_v1  ;;  %v3599_v16 = vcombine.high %v3583_v2, %v3583_v2 }
  0x46   :  { %v275_v18 = vsel %vm3450_vm7, %v273_v58, %v274_v7  ;;  %v276_v24 = vrot.slane %v274_v7, 2  ;;  %v277_v26 = vrot.slane %v3588_v6, 7  ;;  %v285_v28 = vrot.slane %v283_v8, 2 }
  0x47   :  { %v382_v31 = vcombine.low %v374_v4, %v381_v9  ;;  %v284_v32 = vsel %vm3450_vm7, %v282_v10, %v283_v8  ;;  %v286_v34 = vrot.slane %v3580_v1, 7  ;;  %v289_v36 = vrot.slane %v3595_v12, 7 }
  0x48   :  { %v278_v39 = vsel %vm3450_vm7, %v276_v24, %v277_v26  ;;  %v279_v41 = vrot.slane %v277_v26, 2  ;;  %v292_v42 = vrot.slane %v3583_v2, 7  ;;  %v295_v43 = vrot.slane %v3599_v16, 7 }
  0x49   :  { %2968 = vmatmul.mubr.msk.f32.gmra.mrb[2].mxu0 %vm442_vm8, %v382_v31  ;;  %v383_v44 = vcombine.low %v275_v18, %v278_v39  ;;  %v287_v45 = vsel %vm3450_vm7, %v285_v28, %v286_v34  ;;  %v288_v46 = vrot.slane %v286_v34, 2  ;;  %v291_v47 = vrot.slane %v289_v36, 2 }
  0x4a   :  { %v281_v48 = vsel %vm3450_vm7, %v279_v41, %v280_v0  ;;  %v294_v50 = vrot.slane %v292_v42, 2  ;;  %v181_v51 = vcombine.high %v67_v53, %v67_v53  ;;  %v3621_v54 = vrot.slane %v68_v38, %v3393_v5 }
  0x4b   :  { %v384_v14 = vcombine.low %v281_v48, %v284_v32  ;;  %v391_v55 = vrot.slane %v383_v44, %v3393_v5  ;;  %v290_v57 = vsel %vm3450_vm7, %v288_v46, %v289_v36  ;;  %v293_v58 = vsel %vm3450_vm7, %v291_v47, %v292_v42 }
  0x4c   :  { %v296_v59 = vsel %vm3450_vm7, %v294_v50, %v295_v43  ;;  %v400_v60 = vcombine.low %v287_v45, %v290_v57  ;;  %v3631_v63 = vrot.slane %v181_v51, %v3393_v5  ;;  %v3635_v53 = vcombine.high %v3621_v54, %v3621_v54 }
  0x4d   :  { %v398_v0 = vrot.slane %v384_v14, %v3393_v5  ;;  %v401_v4 = vcombine.low %v293_v58, %v296_v59  ;;  %v297_v7 = vrot.slane %v295_v43, 2  ;;  %v304_v8 = vrot.slane %v3621_v54, 7 }
  0x4e   :  { %v408_v9 = vrot.slane %v400_v60, %v3393_v5  ;;  %v3642_v10 = vcombine.high %v3631_v63, %v3631_v63  ;;  %v298_v18 = vrot.slane %v3631_v63, 7  ;;  %v307_v24 = vrot.slane %v3635_v53, 7 }
  0x4f   :  { %v399_v26 = vcombine.low %v391_v55, %v398_v0  ;;  %v415_v28 = vrot.slane %v401_v4, %v3393_v5  ;;  %v306_v31 = vrot.slane %v304_v8, 2  ;;  %v198_v32 = vcombine.high %v68_v38, %v68_v38 }
  0x50   :  { %v299_v34 = vsel %vm3450_vm7, %v297_v7, %v298_v18  ;;  %v300_v36 = vrot.slane %v298_v18, 2  ;;  %v301_v39 = vrot.slane %v3642_v10, 7  ;;  %v309_v43 = vrot.slane %v307_v24, 2 }
  0x51   :  { %2970 = vmatprep.mubr.msk.f32.mxu0 %vm442_vm8, %v399_v26  ;;  %v416_v41 = vcombine.low %v408_v9, %v415_v28  ;;  %v3652_v42 = vrot.slane %v198_v32, %v3393_v5  ;;  %v568_v44 = vcombine.low %v3411_v11, %v3439_v22  ;;  %v308_v46 = vsel %vm3450_vm7, %v306_v31, %v307_v24 }
  0x52   :  { %v302_v45 = vsel %vm3450_vm7, %v300_v36, %v301_v39  ;;  %v303_v38 = vrot.slane %v301_v39, 2  ;;  %v569_v47 = vcombine.low %v3435_v21, %v3465_v30  ;;  %v585_v57 = vcombine.low %v3414_v13, %v3457_v27 }
  0x53   :  { %2971 = vmatmul.mubr.msk.f32.gmra.mrb[4].mxu0 %vm442_vm8, %v416_v41  ;;  %v417_v48 = vcombine.low %v299_v34, %v302_v45  ;;  %v3665_v50 = vcombine.high %v3652_v42, %v3652_v42  ;;  %v310_v51 = vrot.slane %v3652_v42, 7  ;;  %v576_v14 = vrot.slane %v568_v44, %v3393_v5 }
  0x54   :  { %v305_v11 = vsel %vm3450_vm7, %v303_v38, %v304_v8  ;;  %v583_v55 = vrot.slane %v569_v47, %v3393_v5  ;;  %v586_v0 = vcombine.low %v3442_v23, %v3471_v33  ;;  %v602_v8 = vcombine.low %v3429_v17, %v3477_v37 }
  0x55   :  { %v418_v58 = vcombine.low %v305_v11, %v308_v46  ;;  %v425_v59 = vrot.slane %v417_v48, %v3393_v5  ;;  %v312_v60 = vrot.slane %v310_v51, 2  ;;  %v311_v4 = vsel %vm3450_vm7, %v309_v43, %v310_v51 }
  0x56   :  { %v313_v7 = vrot.slane %v3665_v50, 7  ;;  %v603_v18 = vcombine.low %v3461_v29, %v3491_v49  ;;  %v593_v26 = vrot.slane %v585_v57, %v3393_v5  ;;  %v619_v28 = vcombine.low %v3432_v20, %v3519_v15 }
  0x57   :  { %v432_v9 = vrot.slane %v418_v58, %v3393_v5  ;;  %v620_v31 = vcombine.low %v3500_v56, %v3524_v19  ;;  %v584_v36 = vcombine.low %v576_v14, %v583_v55  ;;  %v600_v39 = vrot.slane %v586_v0, %v3393_v5 }
  0x58   :  { %v314_v24 = vsel %vm3450_vm7, %v312_v60, %v313_v7  ;;  %v610_v41 = vrot.slane %v602_v8, %v3393_v5  ;;  %v617_v43 = vrot.slane %v603_v18, %v3393_v5  ;;  %v636_v25 = vcombine.low %v3535_v35, %v3571_v61 }
  0x59   :  { %v433_v32 = vcombine.low %v425_v59, %v432_v9  ;;  %v434_v34 = vcombine.low %v311_v4, %v314_v24  ;;  %v637_v44 = vcombine.low %v3588_v6, %v3557_v52  ;;  %v627_v38 = vrot.slane %v619_v28, %v3393_v5 }
  0x5a   :  { %v634_v46 = vrot.slane %v620_v31, %v3393_v5  ;;  %v601_v47 = vcombine.low %v593_v26, %v600_v39  ;;  %v653_v48 = vcombine.low %v3575_v62, %v3580_v1  ;;  %v654_v35 = vcombine.low %v3595_v12, %v3583_v2 }
  0x5b   :  { %2973 = vmatprep.mubr.msk.f32.mxu0 %vm442_vm8, %v433_v32  ;;  %v441_v45 = vrot.slane %v434_v34, %v3393_v5  ;;  %v670_v51 = vcombine.low %v3599_v16, %v3631_v63  ;;  %v618_v11 = vcombine.low %v610_v41, %v617_v43  ;;  %v644_v14 = vrot.slane %v636_v25, %v3393_v5  ;;  %v1390_v25 = vld [vmem:[#allocation2 + $0x20] sm:$0xff] }
  0x5c   :  { %v651_v55 = vrot.slane %v637_v44, %v3393_v5  ;;  %v671_v57 = vcombine.low %v3642_v10, %v3621_v54  ;;  %v635_v58 = vcombine.low %v627_v38, %v634_v46  ;;  %v661_v59 = vrot.slane %v653_v48, %v3393_v5  ;;  %v1391_v44 = vld [vmem:[#allocation2 + $0x28] sm:$0xff]  ;;  %v1392_v38 = vld [vmem:[#allocation2 + $0x30] sm:$0xff]  ;;  %v1393_v46 = vld [vmem:[#allocation2 + $0x38] sm:$0xff] }
  0x5d   :  { %2974 = vmatmul.mubr.msk.f32.gmra.mrb[6].mxu0 %vm442_vm8, %v441_v45  ;;  %v668_v60 = vrot.slane %v654_v35, %v3393_v5  ;;  %v678_v0 = vrot.slane %v670_v51, %v3393_v5  ;;  %v819_v4 = vcombine.low %v3439_v22, %v3435_v21  ;;  %v820_v9 = vcombine.low %v3465_v30, %v3414_v13  ;;  %v3790_v35 = vld [vmem:[%s4212_s2] ss:$0 sm:$0xff] }
  0x5e   :  { %2978 = vmatprep.mubr.msk.f32.mxu0 %vm442_vm8, %v584_v36  ;;  %v652_v7 = vcombine.low %v644_v14, %v651_v55  ;;  %v685_v8 = vrot.slane %v671_v57, %v3393_v5  ;;  %v836_v18 = vcombine.low %v3457_v27, %v3442_v23  ;;  %v837_v24 = vcombine.low %v3471_v33, %v3429_v17 }
  0x5f   :  { %v669_v21 = vcombine.low %v661_v59, %v668_v60  ;;  %v687_v22 = vcombine.low %v3635_v53, %v3652_v42  ;;  %v834_v28 = vrot.slane %v820_v9, %v3393_v5  ;;  %v853_v13 = vcombine.low %v3477_v37, %v3461_v29 }
  0x60   :  { %v686_v26 = vcombine.low %v678_v0, %v685_v8  ;;  %v854_v23 = vcombine.low %v3491_v49, %v3432_v20  ;;  %v844_v17 = vrot.slane %v836_v18, %v3393_v5  ;;  %v851_v27 = vrot.slane %v837_v24, %v3393_v5 }
  0x61   :  { %2979 = vmatmul.mubr.msk.f32.vlgmr.msra.gmra.mrb[0].mxu0 %vm442_vm8, %v601_v47  ;;  %v870_v30 = vcombine.low %v3519_v15, %v3500_v56  ;;  %v694_v33 = vrot.slane %v687_v22, %v3393_v5  ;;  %v2812_v31 = vcombine.high %v3500_v56, %v3524_v19  ;;  %v887_v29 = vcombine.low %v3571_v61, %v3588_v6  ;;  %v1389_v22 = vld [vmem:[#allocation2 + $0x18] sm:$0xff] }
  0x62   :  { %2991 = vmatpush3.msk.msra.mxu0 %vm459_vm4, %v3544_v40  ;;  %2981 = vmatprep.mubr.msk.f32.mxu0 %vm442_vm8, %v618_v11  ;;  %v827_v40 = vrot.slane %v819_v4, %v3393_v5  ;;  %v861_v37 = vrot.slane %v853_v13, %v3393_v5  ;;  %v868_v49 = vrot.slane %v854_v23, %v3393_v5  ;;  %v3797_v8 = vsub.s32 0, %v3389_v3 }
  0x63   :  { %v888_v15 = vcombine.low %v3557_v52, %v3575_v62  ;;  %v852_v32 = vcombine.low %v844_v17, %v851_v27  ;;  %v878_v34 = vrot.slane %v870_v30, %v3393_v5  ;;  %v885_v56 = vrot.slane %v2812_v31, %v3393_v5  ;;  %v1395_v31 = vld [vmem:[#allocation2 + $0x48] sm:$0xff] }
  0x64   :  { %v835_v20 = vcombine.low %v827_v40, %v834_v28  ;;  %v895_v19 = vrot.slane %v887_v29, %v3393_v5  ;;  %v904_v61 = vcombine.low %v3580_v1, %v3595_v12  ;;  %v905_v6 = vcombine.low %v3583_v2, %v3599_v16 }
  0x65   :  { %2982 = vmatmul.mubr.msk.f32.gmra.mrb[2].mxu0 %vm442_vm8, %v635_v58  ;;  %v869_v36 = vcombine.low %v861_v37, %v868_v49  ;;  %v902_v52 = vrot.slane %v888_v15, %v3393_v5  ;;  %v921_v62 = vcombine.low %v3631_v63, %v3642_v10  ;;  %v922_v39 = vcombine.low %v3621_v54, %v3635_v53 }
  0x66   :  { %2984 = vmatprep.mubr.msk.f32.mxu0 %vm442_vm8, %v652_v7  ;;  %v886_v41 = vcombine.low %v878_v34, %v885_v56  ;;  %v912_v43 = vrot.slane %v904_v61, %v3393_v5  ;;  %v919_v1 = vrot.slane %v905_v6, %v3393_v5  ;;  %v938_v54 = vcombine.low %v3652_v42, %v3665_v50  ;;  %v1386_v42 = vld [vmem:[#allocation2] sm:$0xff]  ;;  %v1387_v50 = vld [vmem:[#allocation2 + $0x8] sm:$0xff] }
  0x67   :  { %v903_v2 = vcombine.low %v895_v19, %v902_v52  ;;  %v929_v12 = vrot.slane %v921_v62, %v3393_v5  ;;  %v936_v16 = vrot.slane %v922_v39, %v3393_v5  ;;  %v3125_v45 = vpack.c.bf16 %v1391_v44, %v1390_v25 }
  0x68   :  { %v920_v63 = vcombine.low %v912_v43, %v919_v1  ;;  %v945_v10 = vrot.slane %v938_v54, %v3393_v5  ;;  %v3129_v47 = vpack.c.bf16 %v1393_v46, %v1392_v38  ;;  %v3784_v48 = vpack.c.bf16 %v1387_v50, %v1386_v42 }
  0x69   :  { %2985 = vmatmul.mubr.msk.f32.gmra.mrb[4].mxu0 %vm442_vm8, %v669_v21  ;;  %v937_v53 = vcombine.low %v929_v12, %v936_v16  ;;  %3126 = vmatprep.subr.bf16.mxu1 %v3125_v45  ;;  %v1388_v21 = vld [vmem:[#allocation2 + $0x10] sm:$0xff] }
  0x6a   :  { %2987 = vmatprep.mubr.msk.f32.mxu0 %vm442_vm8, %v686_v26  ;;  %3128 = vmatpush3.bf16.msra.mxu1 %v3125_v45  ;;  %v3803_v15 = vpack.c.bf16 %v1389_v22, %v1388_v21 }
  0x6b   :  { %3130 = vmatprep.subr.bf16.mxu1 %v3129_v47 }
  0x6d   :  { %2988 = vmatmul.mubr.msk.f32.gmra.mrb[6].mxu0 %vm442_vm8, %v694_v33  ;;  %v1394_v33 = vld [vmem:[#allocation2 + $0x40] sm:$0xff] }
  0x6e   :  { %2992 = vmatprep.mubr.msk.f32.mxu0 %vm442_vm8, %v835_v20  ;;  %3132 = vmatpush3.bf16.msra.mxu1 %v3129_v47  ;;  %v3807_v52 = vpack.c.bf16 %v1395_v31, %v1394_v33 }
  0x6f   :  { %3134 = vmatprep.subr.bf16.mxu1 %v3784_v48 }
  0x71   :  { %2993 = vmatmul.mubr.msk.f32.vlgmr.msra.gmra.mrb[0].mxu0 %vm442_vm8, %v852_v32 }
  0x72   :  { %2995 = vmatprep.mubr.msk.f32.mxu0 %vm442_vm8, %v869_v36 }
  0x75   :  { %2996 = vmatmul.mubr.msk.f32.gmra.mrb[2].mxu0 %vm442_vm8, %v886_v41 }
  0x76   :  { %2998 = vmatprep.mubr.msk.f32.mxu0 %vm442_vm8, %v903_v2 }
  0x79   :  { %2999 = vmatmul.mubr.msk.f32.gmra.mrb[4].mxu0 %vm442_vm8, %v920_v63 }
  0x7a   :  { %3001 = vmatprep.mubr.msk.f32.mxu0 %vm442_vm8, %v937_v53 }
  0x7d   :  { %3002 = vmatmul.mubr.msk.f32.gmra.mrb[6].mxu0 %vm442_vm8, %v945_v10 }
 0x144   :  { %v2994_v51 = vpop.f32.mrb[0].mxu0 }
 0x145   :  { %v1086_v11 = vadd.f32 %v2994_v51, %v3790_v35  ;;  %v1031_v14 = vpop.f32.mrb[1].mxu0 }
 0x146   :  { %v1085_v55 = vadd.f32 %v3790_v35, %v1031_v14 }
 0x147   :  { %v1094_v57 = vmax.f32 %v1086_v11, 0.0 }
 0x148   :  { %v1093_v58 = vmax.f32 %v1085_v55, 0.0  ;;  %v2997_v59 = vpop.f32.mrb[2].mxu0 }
 0x149   :  { %v1126_v60 = vcombine.high %v1094_v57, %v1094_v57  ;;  %v1133_v0 = vrot.slane %v1094_v57, %v3393_v5  ;;  %v1088_v4 = vadd.f32 %v2997_v59, %v3790_v35  ;;  %v1041_v7 = vpop.f32.mrb[3].mxu0 }
 0x14a   :  { %v1109_v9 = vcombine.high %v1093_v58, %v1093_v58  ;;  %v1116_v18 = vrot.slane %v1093_v58, %v3393_v5  ;;  %v1087_v24 = vadd.f32 %v3790_v35, %v1041_v7 }
 0x14b   :  { %v1140_v40 = vrot.slane %v1126_v60, %v3393_v5  ;;  %v1141_v26 = vcombine.high %v1133_v0, %v1133_v0  ;;  %v2827_v28 = vrot.slane %v1133_v0, 9  ;;  %v1096_v13 = vmax.f32 %v1088_v4, 0.0 }
 0x14c   :  { %v1123_v23 = vrot.slane %v1109_v9, %v3393_v5  ;;  %v1124_v17 = vcombine.high %v1116_v18, %v1116_v18  ;;  %v2823_v27 = vrot.slane %v1116_v18, 9  ;;  %v3000_v30 = vpop.f32.mrb[4].mxu0  ;;  %v1095_v37 = vmax.f32 %v1087_v24, 0.0 }
 0x14d   :  { %v2828_v29 = vrot.slane %v1141_v26, 9  ;;  %v2829_v20 = vrot.slane %v1140_v40, 9  ;;  %v1051_v49 = vpop.f32.mrb[5].mxu0  ;;  %v1360_v32 = vmax.f32 %v1133_v0, %v2827_v28  ;;  %v3805_v61 = vcombine.high %v1140_v40, %v1140_v40 }
 0x14e   :  { %v1125_v34 = vcombine.high %v1123_v23, %v1123_v23  ;;  %v2824_v56 = vrot.slane %v1124_v17, 9  ;;  %v2825_v19 = vrot.slane %v1123_v23, 9  ;;  %v1356_v6 = vmax.f32 %v1116_v18, %v2823_v27 }
 0x14f   :  { %v1160_v36 = vcombine.high %v1096_v13, %v1096_v13  ;;  %v1361_v62 = vmax.f32 %v1141_v26, %v2828_v29  ;;  %v3809_v39 = vmax.f32 %v1140_v40, %v2829_v20  ;;  %v1167_v12 = vrot.slane %v1096_v13, %v3393_v5 }
 0x150   :  { %v2826_v41 = vrot.slane %v1125_v34, 9  ;;  %v1357_v43 = vmax.f32 %v1124_v17, %v2824_v56  ;;  %v3003_v1 = vpop.f32.mrb[6].mxu0  ;;  %v1358_v2 = vmax.f32 %v1123_v23, %v2825_v19  ;;  %v1143_v63 = vcombine.high %v1095_v37, %v1095_v37 }
 0x151   :  { %v1174_v16 = vrot.slane %v1160_v36, %v3393_v5  ;;  %v1061_v54 = vpop.f32.mrb[7].mxu0  ;;  %v3814_v53 = vrot.slane %v1360_v32, %v3797_v8  ;;  %v3820_v44 = vrot.slane %v1095_v37, %v3393_v5  ;;  %v1175_v45 = vcombine.high %v1167_v12, %v1167_v12 }
 0x152   :  { %v1359_v10 = vmax.f32 %v1125_v34, %v2826_v41  ;;  %v3817_v25 = vrot.slane %v1357_v43, %v3797_v8  ;;  %v2835_v46 = vrot.slane %v1167_v12, 9  ;;  %v1653_v50 = vrot.slane %v1356_v6, %v3797_v8 }
 0x153   :  { %v1176_v38 = vcombine.high %v1174_v16, %v1174_v16  ;;  %v2837_v47 = vrot.slane %v1174_v16, 9  ;;  %v1157_v51 = vrot.slane %v1143_v63, %v3393_v5  ;;  %v1158_v11 = vcombine.high %v3820_v44, %v3820_v44 }
 0x154   :  { %v3823_v42 = vrot.slane %v1359_v10, %v3797_v8  ;;  %v3830_v14 = vrot.slane %v1358_v2, %v3797_v8  ;;  %v2836_v55 = vrot.slane %v1175_v45, 9  ;;  %v1368_v58 = vmax.f32 %v1167_v12, %v2835_v46 }
 0x155   :  { %v2838_v57 = vrot.slane %v1176_v38, 9  ;;  %v3833_v59 = vrot.slane %v1361_v62, %v3797_v8  ;;  %v3835_v60 = vmax.f32 %v1174_v16, %v2837_v47  ;;  %v1159_v0 = vcombine.high %v1157_v51, %v1157_v51 }
 0x156   :  { %v2832_v4 = vrot.slane %v1158_v11, 9  ;;  %v3839_v7 = vsel %vm1528_vm9, %v3817_v25, %v1653_v50  ;;  %v3844_v9 = vsel %vm1528_vm9, %v3823_v42, %v3830_v14  ;;  %v1369_v18 = vmax.f32 %v1175_v45, %v2836_v55 }
 0x157   :  { %v2831_v24 = vrot.slane %v3820_v44, 9  ;;  %v2833_v21 = vrot.slane %v1157_v51, 9  ;;  %v2834_v22 = vrot.slane %v1159_v0, 9  ;;  %v1090_v26 = vadd.f32 %v3000_v30, %v3790_v35 }
 0x158   :  { %v1365_v40 = vmax.f32 %v1158_v11, %v2832_v4  ;;  %v3848_v28 = vmax.f32 %v1176_v38, %v2838_v57  ;;  %v3851_v13 = vrot.slane %v1368_v58, %v3797_v8  ;;  %v1089_v23 = vadd.f32 %v3790_v35, %v1051_v49 }
 0x159   :  { %v1092_v17 = vadd.f32 %v3003_v1, %v3790_v35  ;;  %v1778_v27 = vrot.slane %v3835_v60, %v3797_v8  ;;  %v1366_v33 = vmax.f32 %v1157_v51, %v2833_v21  ;;  %v1367_v31 = vmax.f32 %v1159_v0, %v2834_v22 }
 0x15a   :  { %v1098_v29 = vmax.f32 %v1090_v26, 0.0  ;;  %v3858_v20 = vrot.slane %v1365_v40, %v3797_v8  ;;  %v1097_v37 = vmax.f32 %v1089_v23, 0.0  ;;  %v1091_v32 = vadd.f32 %v3790_v35, %v1061_v54 }
 0x15b   :  { %v1100_v30 = vmax.f32 %v1092_v17, 0.0  ;;  %v3862_v34 = vrot.slane %v1366_v33, %v3797_v8  ;;  %v3865_v49 = vrot.slane %v1367_v31, %v3797_v8  ;;  %v2830_v41 = vrot.slane %v3805_v61, 9 }
 0x15c   :  { %v1194_v56 = vcombine.high %v1098_v29, %v1098_v29  ;;  %v1201_v19 = vrot.slane %v1098_v29, %v3393_v5  ;;  %v1177_v6 = vcombine.high %v1097_v37, %v1097_v37  ;;  %v1184_v36 = vrot.slane %v1097_v37, %v3393_v5 }
 0x15d   :  { %v3870_v62 = vrot.slane %v1100_v30, %v3393_v5  ;;  %v1790_v35 = vsel %vm1528_vm9, %v3865_v49, %v3862_v34  ;;  %v1099_v2 = vmax.f32 %v1091_v32, 0.0  ;;  %v3883_v4 = vrot.slane %v1369_v18, %v3797_v8 }
 0x15e   :  { %v1208_v43 = vrot.slane %v1194_v56, %v3393_v5  ;;  %v1209_v1 = vcombine.high %v1201_v19, %v1201_v19  ;;  %v3879_v12 = vsel %vm217_vm1, %v3851_v13, %v1790_v35  ;;  %v2843_v16 = vrot.slane %v1201_v19, 9 }
 0x15f   :  { %v1191_v63 = vrot.slane %v1177_v6, %v3393_v5  ;;  %v1192_v54 = vcombine.high %v1184_v36, %v1184_v36  ;;  %v2839_v46 = vrot.slane %v1184_v36, 9  ;;  %v1657_v21 = vrot.slane %v3848_v28, %v3797_v8 }
 0x160   :  { %v1210_v10 = vcombine.high %v1208_v43, %v1208_v43  ;;  %v2844_v45 = vrot.slane %v1209_v1, 9  ;;  %v2845_v38 = vrot.slane %v1208_v43, 9  ;;  %v1376_v47 = vmax.f32 %v1201_v19, %v2843_v16 }
 0x161   :  { %v1193_v50 = vcombine.high %v1191_v63, %v1191_v63  ;;  %v2840_v51 = vrot.slane %v1192_v54, 9  ;;  %v2841_v11 = vrot.slane %v1191_v63, 9  ;;  %v1372_v0 = vmax.f32 %v1184_v36, %v2839_v46 }
 0x162   :  { %v2846_v55 = vrot.slane %v1210_v10, 9  ;;  %v1377_v57 = vmax.f32 %v1209_v1, %v2844_v45  ;;  %v1378_v58 = vmax.f32 %v1208_v43, %v2845_v38  ;;  %v1539_v22 = vsel %vm1528_vm9, %v3862_v34, %v3858_v20 }
 0x163   :  { %v2842_v40 = vrot.slane %v1193_v50, 9  ;;  %v3891_v23 = vrot.slane %v1376_v47, %v3797_v8  ;;  %v1373_v33 = vmax.f32 %v1192_v54, %v2840_v51  ;;  %v1374_v31 = vmax.f32 %v1191_v63, %v2841_v11 }
 0x164   :  { %v1379_v26 = vmax.f32 %v1210_v10, %v2846_v55  ;;  %v3894_v17 = vrot.slane %v1377_v57, %v3797_v8  ;;  %v2851_v29 = vrot.slane %v3870_v62, 9  ;;  %v1211_v37 = vcombine.high %v1099_v2, %v1099_v2 }
 0x165   :  { %v1375_v18 = vmax.f32 %v1193_v50, %v2842_v40  ;;  %v3898_v30 = vrot.slane %v1378_v58, %v3797_v8  ;;  %v3901_v32 = vrot.slane %v1372_v0, %v3797_v8  ;;  %v1218_v56 = vrot.slane %v1099_v2, %v3393_v5 }
 0x166   :  { %v1363_v19 = vmax.f32 %v3805_v61, %v2830_v41  ;;  %v3906_v6 = vrot.slane %v1379_v26, %v3797_v8  ;;  %v3911_v36 = vsel %vm1528_vm9, %v3894_v17, %v3891_v23  ;;  %v1225_v43 = vrot.slane %v1211_v37, %v3393_v5 }
 0x167   :  { %v3914_v35 = vrot.slane %v1375_v18, %v3797_v8  ;;  %v1384_v1 = vmax.f32 %v3870_v62, %v2851_v29  ;;  %v1226_v16 = vcombine.high %v1218_v56, %v1218_v56  ;;  %v2847_v2 = vrot.slane %v1218_v56, 9 }
 0x168   :  { %v1364_v61 = vmax.f32 %v3820_v44, %v2831_v24  ;;  %v1227_v41 = vcombine.high %v1225_v43, %v1225_v43  ;;  %v2849_v63 = vrot.slane %v1225_v43, 9  ;;  %v3923_v54 = vrot.slane %v3809_v39, %v3797_v8 }
 0x169   :  { %v3926_v10 = vrot.slane %v1363_v19, %v3797_v8  ;;  %v2848_v45 = vrot.slane %v1226_v16, 9  ;;  %v1380_v38 = vmax.f32 %v1218_v56, %v2847_v2  ;;  %v1529_v46 = vsel %vm1528_vm9, %v3830_v14, %v3817_v25 }
 0x16a   :  { %v3929_v5 = vrot.slane %v1364_v61, %v3797_v8  ;;  %v2850_v47 = vrot.slane %v1227_v41, 9  ;;  %v1382_v44 = vmax.f32 %v1225_v43, %v2849_v63  ;;  %v1530_v24 = vsel %vm217_vm1, %v3823_v42, %v1529_v46 }
 0x16b   :  { %v3937_v39 = vrot.slane %v1373_v33, %v3797_v8  ;;  %v1381_v50 = vmax.f32 %v1226_v16, %v2848_v45  ;;  %v3940_v51 = vrot.slane %v1380_v38, %v3797_v8  ;;  %v1532_v11 = vsel %vm1531_vm10, %v3814_v53, %v1530_v24 }
 0x16c   :  { %v1665_v55 = vsel %vm1528_vm9, %v3858_v20, %v3929_v5  ;;  %v1533_v25 = vsel %vm219_vm3, %v3833_v59, %v1532_v11  ;;  %v3952_v58 = vrot.slane %v1374_v31, %v3797_v8  ;;  %v1540_v0 = vsel %vm217_vm1, %v3865_v49, %v1539_v22 }
 0x16d   :  { %v1666_v57 = vsel %vm217_vm1, %v3862_v34, %v1665_v55  ;;  %v1535_v40 = vsel %vm1534_vm11, %v3923_v54, %v1533_v25  ;;  %v1541_v33 = vsel %vm1531_vm10, %v3851_v13, %v1540_v0  ;;  %v3963_v18 = vrot.slane %v1381_v50, %v3797_v8 }
 0x16e   :  { %v1667_v26 = vsel %vm1531_vm10, %v3865_v49, %v1666_v57  ;;  %v1536_v34 = vsel %vm221_vm6, %v3926_v10, %v1535_v40  ;;  %v1542_v31 = vsel %vm219_vm3, %v3883_v4, %v1541_v33  ;;  %v1672_v22 = vsel %vm1528_vm9, %v3914_v35, %v3952_v58  ;;  %v1397_v57 = vld [vmem:[#allocation2 + $0x58] sm:$0xff] }
 0x16f   :  { %v3973_v29 = vrot.slane %v1382_v44, %v3797_v8  ;;  %v1538_v49 = vsel %vm1537_vm12, %v3929_v5, %v1536_v34  ;;  %v1543_v37 = vsel %vm1534_vm11, %v3901_v32, %v1542_v31  ;;  %v1546_v56 = vsel %vm1528_vm9, %v3891_v23, %v3914_v35  ;;  %v2123_v34 = vld [vmem:[#allocation5 + $0x28] sm:$0xff] }
 0x170   :  { %v1383_v19 = vmax.f32 %v1227_v41, %v2850_v47  ;;  %3012 = vmatprep.mubr.msk.f32.mxu1 %vm1554_vm13, %v1538_v49  ;;  %v1544_v43 = vsel %vm221_vm6, %v3937_v39, %v1543_v37  ;;  %v1547_v16 = vsel %vm217_vm1, %v3894_v17, %v1546_v56  ;;  %v3988_v2 = vrot.slane %v1384_v1, %v3797_v8  ;;  %v2124_v49 = vld [vmem:[#allocation5 + $0x30] sm:$0xff]  ;;  %v2125_v56 = vld [vmem:[#allocation5 + $0x38] sm:$0xff] }
 0x171   :  { %v1659_v61 = vsel %vm217_vm1, %v3830_v14, %v3839_v7  ;;  %v1545_v63 = vsel %vm1537_vm12, %v3952_v58, %v1544_v43  ;;  %v1548_v41 = vsel %vm1531_vm10, %v3898_v30, %v1547_v16  ;;  %v1668_v14 = vsel %vm219_vm3, %v3851_v13, %v1667_v26  ;;  %v2132_v43 = vld [vmem:[#allocation5 + $0x70] sm:$0xff]  ;;  %v2133_v16 = vld [vmem:[#allocation5 + $0x78] sm:$0xff] }
 0x172   :  { %v1523_v45 = vrot.slane %v1383_v19, %v3797_v8  ;;  %v1660_v38 = vsel %vm1531_vm10, %v3823_v42, %v1659_v61  ;;  %3013 = vmatmul.mubr.msk.f32.vlgmr.msra.gmra.mrb[0].mxu1 %vm1554_vm13, %v1545_v63  ;;  %v1549_v1 = vsel %vm219_vm3, %v3906_v6, %v1548_v41  ;;  %v1673_v7 = vsel %vm217_vm1, %v3891_v23, %v1672_v22 }
 0x173   :  { %v1661_v46 = vsel %vm219_vm3, %v3814_v53, %v1660_v38  ;;  %3136 = vmatpush3.bf16.msra.mxu1 %v3784_v48  ;;  %v1550_v47 = vsel %vm1534_vm11, %v3940_v51, %v1549_v1  ;;  %v1669_v24 = vsel %vm1534_vm11, %v1657_v21, %v1668_v14  ;;  %v1674_v50 = vsel %vm1531_vm10, %v3894_v17, %v1673_v7 }
 0x174   :  { %v1553_v42 = vsel %vm1528_vm9, %v3988_v2, %v1523_v45  ;;  %v1662_v44 = vsel %vm1534_vm11, %v3833_v59, %v1661_v46  ;;  %v1551_v13 = vsel %vm221_vm6, %v3963_v18, %v1550_v47  ;;  %3138 = vmatprep.subr.bf16.mxu1 %v3803_v15  ;;  %v1670_v23 = vsel %vm221_vm6, %v3901_v32, %v1669_v24  ;;  %v1396_v32 = vld [vmem:[#allocation2 + $0x50] sm:$0xff] }
 0x175   :  { %v1663_v48 = vsel %vm221_vm6, %v3923_v54, %v1662_v44  ;;  %v1552_v11 = vsel %vm1537_vm12, %v3973_v29, %v1551_v13  ;;  %v1671_v21 = vsel %vm1537_vm12, %v3937_v39, %v1670_v23  ;;  %v1675_v55 = vsel %vm219_vm3, %v3898_v30, %v1674_v50 }
 0x176   :  { %v1664_v28 = vsel %vm1537_vm12, %v3926_v10, %v1663_v48  ;;  %v1235_v25 = vcombine.high %v3870_v62, %v3870_v62  ;;  %3015 = vmatprep.mubr.msk.f32.mxu1 %vm1554_vm13, %v1552_v11  ;;  %v1676_v17 = vsel %vm1534_vm11, %v3906_v6, %v1675_v55  ;;  %v1784_v0 = vsel %vm217_vm1, %v3814_v53, %v3844_v9 }
 0x177   :  { %v1792_v40 = vsel %vm1531_vm10, %v3883_v4, %v3879_v12  ;;  %3016 = vmatmul.mubr.msk.f32.gmra.mrb[2].mxu1 %vm1554_vm13, %v1553_v42  ;;  %v1677_v62 = vsel %vm221_vm6, %v3940_v51, %v1676_v17  ;;  %v1785_v26 = vsel %vm1531_vm10, %v3833_v59, %v1784_v0  ;;  %v1798_v53 = vsel %vm217_vm1, %v3898_v30, %v3911_v36 }
 0x178   :  { %v1793_v33 = vsel %vm219_vm3, %v1778_v27, %v1792_v40  ;;  %3140 = vmatpush3.bf16.msra.mxu1 %v3803_v15  ;;  %3026 = vmatprep.mubr.msk.f32.mxu1 %vm1554_vm13, %v1664_v28  ;;  %v1678_v9 = vsel %vm1537_vm12, %v3963_v18, %v1677_v62  ;;  %v1786_v12 = vsel %vm219_vm3, %v3923_v54, %v1785_v26  ;;  %v2852_v30 = vrot.slane %v1235_v25, 9 }
 0x179   :  { %v1794_v59 = vsel %vm1534_vm11, %v3937_v39, %v1793_v33  ;;  %3142 = vmatprep.subr.bf16.mxu1 %v3807_v52  ;;  %v3145_v60 = vpack.c.bf16 %v1397_v57, %v1396_v32  ;;  %v1787_v27 = vsel %vm1534_vm11, %v3926_v10, %v1786_v12  ;;  %v1799_v4 = vsel %vm1531_vm10, %v3906_v6, %v1798_v53 }
 0x17a   :  { %v1795_v15 = vsel %vm221_vm6, %v3952_v58, %v1794_v59  ;;  %v1788_v36 = vsel %vm221_vm6, %v3929_v5, %v1787_v27  ;;  %v1800_v39 = vsel %vm219_vm3, %v3940_v51, %v1799_v4  ;;  %v1385_v5 = vmax.f32 %v1235_v25, %v2852_v30 }
 0x17b   :  { %v1796_v54 = vsel %vm1537_vm12, %v3914_v35, %v1795_v15  ;;  %3027 = vmatmul.mubr.msk.f32.vlgmr.msra.gmra.mrb[0].mxu1 %vm1554_vm13, %v1671_v21  ;;  %v1789_v10 = vsel %vm1537_vm12, %v3858_v20, %v1788_v36  ;;  %v1801_v58 = vsel %vm1534_vm11, %v3963_v18, %v1800_v39  ;;  %v1679_v51 = vsel %vm1528_vm9, %v1523_v45, %v3973_v29  ;;  %v2122_v18 = vld [vmem:[#allocation5 + $0x20] sm:$0xff] }
 0x17c   :  { %3144 = vmatpush3.bf16.msra.mxu1 %v3807_v52  ;;  %3029 = vmatprep.mubr.msk.f32.mxu1 %vm1554_vm13, %v1678_v9  ;;  %v1802_v6 = vsel %vm221_vm6, %v3973_v29, %v1801_v58  ;;  %v1782_v20 = vrot.slane %v1385_v5, %v3797_v8  ;;  %v3150_v31 = vpack.c.bf16 %v2123_v34, %v2122_v18  ;;  %v3310_v22 = vmov 0.0|0.0   ;;  %v2130_v29 = vld [vmem:[#allocation5 + $0x60] sm:$0xff]  ;;  %v2131_v8 = vld [vmem:[#allocation5 + $0x68] sm:$0xff] }
 0x17d   :  { %3146 = vmatprep.subr.bf16.mxu1 %v3145_v60  ;;  %v1803_v35 = vsel %vm1537_vm12, %v1523_v45, %v1802_v6  ;;  %3167 = vmatprep.subr.bf16.mxu0 %v3310_v22  ;;  %v3168_v37 = vpack.c.bf16 %v2131_v8, %v2130_v29  ;;  %v3312_v19 = vmov 0.0   ;;  %v3171_v61 = vpack.c.bf16 %v2133_v16, %v2132_v43  ;;  %v2865_v45 = vld [vmem:[%s4214_s4] ss:$0 sm:$0xff] }
 0x17e   :  { %v1804_v52 = vsel %vm1528_vm9, %v1782_v20, %v3988_v2  ;;  %v3153_v2 = vpack.c.bf16 %v2125_v56, %v2124_v49  ;;  %3087 = vmatprep.mubr.msk.f32.mxu0 %vm3311_vm14, %v3312_v19  ;;  %v3313_v63 = vmov 1966171168  }
 0x17f   :  { %3030 = vmatmul.mubr.msk.f32.gmra.mrb[2].mxu1 %vm1554_vm13, %v1679_v51  ;;  %3169 = vmatpush3.bf16.msra.mxu0 %v3168_v37  ;;  %v1923_v41 = vunpack.c.l.s4 %v3313_v63 }
 0x180   :  { %3148 = vmatpush3.bf16.msra.mxu1 %v3145_v60  ;;  %3040 = vmatprep.mubr.msk.f32.mxu1 %vm1554_vm13, %v1789_v10 }
 0x181   :  { %3149 = vmatprep.subr.bf16.mxu1 %v3310_v22  ;;  %3170 = vmatprep.subr.bf16.mxu0 %v3310_v22  ;;  %v1924_v38 = vunpack.c.0.s8 %v1923_v41 }
 0x183   :  { %3041 = vmatmul.mubr.msk.f32.vlgmr.msra.gmra.mrb[0].mxu1 %vm1554_vm13, %v1796_v54  ;;  %3172 = vmatpush3.bf16.msra.mxu0 %v3171_v61  ;;  %v4115_v7 = vsub.s32 %v1924_v38, %v3389_v3  ;;  %v2119_v38 = vld [vmem:[#allocation5 + $0x8] sm:$0xff] }
 0x184   :  { %3043 = vmatprep.mubr.msk.f32.mxu1 %vm1554_vm13, %v1803_v35  ;;  %3151 = vmatpush3.bf16.msra.mxu1 %v3150_v31 }
 0x185   :  { %3152 = vmatprep.subr.bf16.mxu1 %v3310_v22  ;;  %3179 = vmatprep.subr.bf16.mxu0 %v3310_v22 }
 0x187   :  { %3044 = vmatmul.mubr.msk.f32.gmra.mrb[2].mxu1 %vm1554_vm13, %v1804_v52 }
 0x188   :  { %3054 = vmatprep.mubr.msk.f32.mxu1 %vm3311_vm14, %v3312_v19  ;;  %3154 = vmatpush3.bf16.msra.mxu1 %v3153_v2 }
 0x189   :  { %3155 = vmatprep.subr.bf16.mxu1 %v3310_v22 }
 0x256   :  { %v3042_v1 = vpop.f32.mrb[0].mxu1 }
 0x257   :  { %v1910_v46 = vadd.f32 %v3042_v1, %v2865_v45  ;;  %v1879_v14 = vpop.f32.mrb[1].mxu1 }
 0x258   :  { %v1909_v47 = vadd.f32 %v2865_v45, %v1879_v14 }
 0x259   :  { %v1914_v42 = vmax.f32 %v1910_v46, 0.0 }
 0x25a   :  { %v1913_v44 = vmax.f32 %v1909_v47, 0.0  ;;  %v3045_v24 = vpop.f32.mrb[2].mxu1 }
 0x25b   :  { %v1970_v13 = vcombine.high %v1914_v42, %v1914_v42  ;;  %v1889_v48 = vpop.f32.mrb[3].mxu1  ;;  %v1977_v21 = vrot.slane %v1914_v42, %v4115_v7  ;;  %v1912_v0 = vadd.f32 %v3045_v24, %v2865_v45 }
 0x25c   :  { %v1921_v23 = vcombine.high %v1913_v44, %v1913_v44  ;;  %v1928_v50 = vrot.slane %v1913_v44, %v4115_v7  ;;  %v1911_v11 = vadd.f32 %v2865_v45, %v1889_v48  ;;  %v2118_v45 = vld [vmem:[#allocation5] sm:$0xff] }
 0x25d   :  { %v1984_v28 = vrot.slane %v1970_v13, %v4115_v7  ;;  %v1985_v53 = vcombine.high %v1977_v21, %v1977_v21  ;;  %v1993_v60 = vrot.slane %v1977_v21, %v4115_v7  ;;  %v1916_v15 = vmax.f32 %v1912_v0, 0.0 }
 0x25e   :  { %v1935_v55 = vrot.slane %v1921_v23, %v4115_v7  ;;  %v1936_v25 = vcombine.high %v1928_v50, %v1928_v50  ;;  %v1944_v32 = vrot.slane %v1928_v50, %v4115_v7  ;;  %v1915_v40 = vmax.f32 %v1911_v11, 0.0 }
 0x25f   :  { %v1986_v17 = vcombine.high %v1984_v28, %v1984_v28  ;;  %v2000_v3 = vrot.slane %v1984_v28, %v4115_v7  ;;  %v2007_v10 = vrot.slane %v1985_v53, %v4115_v7  ;;  %v2015_v20 = vcombine.high %v1993_v60, %v1993_v60  ;;  %v2138_v28 = vld [vmem:[#allocation5 + $0xa0] sm:$0xff]  ;;  %v2141_v53 = vld [vmem:[#allocation5 + $0xb8] sm:$0xff] }
 0x260   :  { %v1958_v57 = vrot.slane %v1936_v25, %v4115_v7  ;;  %v1937_v33 = vcombine.high %v1935_v55, %v1935_v55  ;;  %v1966_v27 = vcombine.high %v1944_v32, %v1944_v32  ;;  %v2019_v4 = vcombine.high %v1915_v40, %v1915_v40  ;;  %v2139_v25 = vld [vmem:[#allocation5 + $0xa8] sm:$0xff] }
 0x261   :  { %v2014_v62 = vrot.slane %v1986_v17, %v4115_v7  ;;  %v2016_v26 = vcombine.high %v2000_v3, %v2000_v3  ;;  %v2026_v39 = vrot.slane %v1915_v40, %v4115_v7  ;;  %v1951_v58 = vrot.slane %v1935_v55, %v4115_v7  ;;  %v2120_v17 = vld [vmem:[#allocation5 + $0x10] sm:$0xff]  ;;  %v2121_v3 = vld [vmem:[#allocation5 + $0x18] sm:$0xff] }
 0x262   :  { %v2106_v9 = vmax.f32 %v1944_v32, %v1958_v57  ;;  %v1968_v59 = vcombine.high %v1958_v57, %v1958_v57  ;;  %v1965_v30 = vrot.slane %v1937_v33, %v4115_v7  ;;  %v2033_v6 = vrot.slane %v2019_v4, %v4115_v7  ;;  %v2128_v4 = vld [vmem:[#allocation5 + $0x50] sm:$0xff] }
 0x263   :  { %v2112_v12 = vmax.f32 %v2014_v62, %v2016_v26  ;;  %v2018_v54 = vcombine.high %v2014_v62, %v2014_v62  ;;  %v2034_v5 = vcombine.high %v2026_v39, %v2026_v39  ;;  %v2042_v51 = vrot.slane %v2026_v39, %v4115_v7  ;;  %v2140_v62 = vld [vmem:[#allocation5 + $0xb0] sm:$0xff] }
 0x264   :  { %v2107_v35 = vmax.f32 %v1966_v27, %v1968_v59  ;;  %v2074_v52 = vrot.slane %v1916_v15, %v4115_v7  ;;  %v2035_v18 = vcombine.high %v2033_v6, %v2033_v6  ;;  %v2049_v34 = vrot.slane %v2033_v6, %v4115_v7 }
 0x265   :  { %v4127_v36 = vcombine.low %v2106_v9, %v2112_v12  ;;  %v1969_v31 = vcombine.high %v1965_v30, %v1965_v30  ;;  %v2056_v29 = vrot.slane %v2034_v5, %v4115_v7  ;;  %v2064_v8 = vcombine.high %v2042_v51, %v2042_v51  ;;  %v2126_v9 = vld [vmem:[#allocation5 + $0x40] sm:$0xff]  ;;  %v2127_v12 = vld [vmem:[#allocation5 + $0x48] sm:$0xff]  ;;  %v2136_v5 = vld [vmem:[#allocation5 + $0x90] sm:$0xff] }
 0x266   :  { %v2113_v49 = vmax.f32 %v2018_v54, %v2042_v51  ;;  %v2017_v37 = vcombine.high %v2007_v10, %v2007_v10  ;;  %v1967_v56 = vcombine.high %v1951_v58, %v1951_v58  ;;  %v2063_v43 = vrot.slane %v2035_v18, %v4115_v7  ;;  %v2137_v51 = vld [vmem:[#allocation5 + $0x98] sm:$0xff] }
 0x267   :  { %v2065_v16 = vcombine.high %v2049_v34, %v2049_v34  ;;  %v2108_v2 = vmax.f32 %v1951_v58, %v1965_v30  ;;  %v2066_v61 = vcombine.high %v2056_v29, %v2056_v29  ;;  %v2114_v63 = vmax.f32 %v2056_v29, %v2064_v8  ;;  %v2129_v30 = vld [vmem:[#allocation5 + $0x58] sm:$0xff]  ;;  %v2135_v58 = vld [vmem:[#allocation5 + $0x88] sm:$0xff]  ;;  %v2692_v8 = vld [vmem:[%s4217_s7 + $0x18] sm:$0xff] }
 0x268   :  { %v2144_v41 = vcombine.low %v2107_v35, %v2113_v49  ;;  %v2110_v1 = vmax.f32 %v1993_v60, %v2007_v10  ;;  %v2081_v46 = vrot.slane %v2074_v52, %v4115_v7  ;;  %v2067_v14 = vcombine.high %v2063_v43, %v2063_v43  ;;  %v2134_v10 = vld [vmem:[#allocation5 + $0x80] sm:$0xff] }
 0x269   :  { %v2116_v47 = vmax.f32 %v2063_v43, %v2065_v16  ;;  %v2109_v42 = vmax.f32 %v1967_v56, %v1969_v31  ;;  %v2115_v44 = vmax.f32 %v2066_v61, %v2049_v34  ;;  %v2322_v13 = vcombine.low %v2108_v2, %v2114_v63  ;;  %v2689_v34 = vld [vmem:[%s4217_s7] sm:$0xff]  ;;  %v2690_v31 = vld [vmem:[%s4217_s7 + $0x8] sm:$0xff] }
 0x26a   :  { %v2151_v24 = vrot.slane %v2144_v41, %v4115_v7  ;;  %v2111_v48 = vmax.f32 %v2015_v20, %v2017_v37  ;;  %v2117_v23 = vmax.f32 %v2067_v14, %v2081_v46  ;;  %v3156_v11 = vpack.c.bf16 %v2119_v38, %v2118_v45  ;;  %v2693_v37 = vld [vmem:[%s4217_s7 + $0x20] sm:$0xff] }
 0x26b   :  { %v2502_v50 = vcombine.low %v2110_v1, %v2116_v47  ;;  %v2412_v55 = vcombine.low %v2109_v42, %v2115_v44  ;;  %v3180_v0 = vpack.c.bf16 %v2139_v25, %v2138_v28  ;;  %v3159_v40 = vpack.c.bf16 %v2121_v3, %v2120_v17  ;;  %v2872_v44 = vld [vmem:[%s4216_s6] ss:$0 sm:$0xff] }
 0x26c   :  { %v2158_v21 = vrot.slane %v2151_v24, %v4115_v7  ;;  %v2592_v32 = vcombine.low %v2111_v48, %v2117_v23  ;;  %v2240_v26 = vrot.slane %v4127_v36, %v4115_v7  ;;  %v3183_v59 = vpack.c.bf16 %v2141_v53, %v2140_v62  ;;  %v2873_v23 = vld [vmem:[%s4218_s8] ss:$0 sm:$0xff] }
 0x26d   :  { %v2419_v57 = vrot.slane %v2412_v55, %v4115_v7  ;;  %v3162_v60 = vpack.c.bf16 %v2127_v12, %v2126_v9  ;;  %v3165_v36 = vpack.c.bf16 %v2129_v30, %v2128_v4  ;;  %v2329_v54 = vrot.slane %v2322_v13, %v4115_v7 }
 0x26e   :  { %3055 = vmatmul.mubr.msk.f32.vlgmr.msra.gmra.mrb[4].mxu1 %vm1554_vm13, %v2158_v21  ;;  %v2247_v27 = vrot.slane %v2240_v26, %v4115_v7  ;;  %v2599_v15 = vrot.slane %v2592_v32, %v4115_v7  ;;  %v3174_v6 = vpack.c.bf16 %v2135_v58, %v2134_v10  ;;  %v3177_v20 = vpack.c.bf16 %v2137_v51, %v2136_v5 }
 0x26f   :  { %3157 = vmatpush3.bf16.msra.mxu1 %v3156_v11  ;;  %3065 = vmatprep.mubr.msk.f32.mxu1 %vm3311_vm14, %v3312_v19  ;;  %v2426_v33 = vrot.slane %v2419_v57, %v4115_v7  ;;  %v2336_v35 = vrot.slane %v2329_v54, %v4115_v7  ;;  %v2509_v52 = vrot.slane %v2502_v50, %v4115_v7 }
 0x270   :  { %3158 = vmatprep.subr.bf16.mxu1 %v3310_v22  ;;  %v2606_v39 = vrot.slane %v2599_v15, %v4115_v7  ;;  %v3186_v29 = vpack.c.bf16 %v2690_v31, %v2689_v34 }
 0x271   :  { %3088 = vmatmul.mubr.msk.f32.vlgmr.msra.gmra.mrb[8].mxu0 %vm1554_vm13, %v2426_v33  ;;  %v2516_v18 = vrot.slane %v2509_v52, %v4115_v7  ;;  %v2691_v7 = vld [vmem:[%s4217_s7 + $0x10] sm:$0xff] }
 0x272   :  { %3181 = vmatpush3.bf16.msra.mxu0 %v3180_v0  ;;  %3109 = vmatprep.mubr.msk.f32.mxu0 %vm3311_vm14, %v3312_v19  ;;  %v3189_v49 = vpack.c.bf16 %v2692_v8, %v2691_v7 }
 0x273   :  { %3160 = vmatpush3.bf16.msra.mxu1 %v3159_v40  ;;  %3182 = vmatprep.subr.bf16.mxu0 %v3310_v22 }
 0x274   :  { %3161 = vmatprep.subr.bf16.mxu1 %v3310_v22 }
 0x276   :  { %3066 = vmatmul.mubr.msk.f32.vlgmr.msra.gmra.mrb[6].mxu1 %vm1554_vm13, %v2247_v27  ;;  %3184 = vmatpush3.bf16.msra.mxu0 %v3183_v59 }
 0x277   :  { %3163 = vmatpush3.bf16.msra.mxu1 %v3162_v60  ;;  %3076 = vmatprep.mubr.msk.f32.mxu1 %vm3311_vm14, %v3312_v19 }
 0x278   :  { %3164 = vmatprep.subr.bf16.mxu1 %v3310_v22 }
 0x279   :  { %3110 = vmatmul.mubr.msk.f32.vlgmr.msra.gmra.mrb[10].mxu0 %vm1554_vm13, %v2606_v39 }
 0x27b   :  { %3166 = vmatpush3.bf16.msra.mxu1 %v3165_v36 }
 0x27c   :  { %3173 = vmatprep.subr.bf16.mxu1 %v3310_v22 }
 0x27e   :  { %3077 = vmatmul.mubr.msk.f32.vlgmr.msra.gmra.mrb[8].mxu1 %vm1554_vm13, %v2336_v35 }
 0x27f   :  { %3175 = vmatpush3.bf16.msra.mxu1 %v3174_v6  ;;  %3098 = vmatprep.mubr.msk.f32.mxu1 %vm3311_vm14, %v3312_v19 }
 0x280   :  { %3176 = vmatprep.subr.bf16.mxu1 %v3310_v22 }
 0x283   :  { %3178 = vmatpush3.bf16.msra.mxu1 %v3177_v20 }
 0x284   :  { %3185 = vmatprep.subr.bf16.mxu1 %v3310_v22 }
 0x286   :  { %3099 = vmatmul.mubr.msk.f32.vlgmr.msra.gmra.mrb[10].mxu1 %vm1554_vm13, %v2516_v18 }
 0x287   :  { %3122 = vmatprep.mubr.msk.f32.mxu1 %vm3311_vm14, %v3312_v19  ;;  %3187 = vmatpush3.bf16.msra.mxu1 %v3186_v29 }
 0x288   :  { %3188 = vmatprep.subr.bf16.mxu1 %v3310_v22 }
 0x28b   :  { %3190 = vmatpush3.bf16.msra.mxu1 %v3189_v49 }
 0x28c   :  { %3120 = vmatprep.subr.mxu1 %v3312_v19 }
 0x28f   :  { %3121 = vmatpush3.msra.mxu1 %v2693_v37 }
 0x341   :  { %v2227_v56 = vpop.f32.mrb[4].mxu1 }
 0x342   :  { %v3056_v43 = vpop.f32.mrb[5].mxu1 }
 0x344   :  { %v2495_v16 = vpop.f32.mrb[8].mxu0 }
 0x345   :  { %v3089_v2 = vpop.f32.mrb[9].mxu0 }
 0x349   :  { %v2316_v61 = vpop.f32.mrb[6].mxu1 }
 0x34a   :  { %v2317_v63 = vadd.f32 %v2316_v61, %v2227_v56  ;;  %v3067_v41 = vpop.f32.mrb[7].mxu1 }
 0x34c   :  { %v2675_v45 = vpop.f32.mrb[10].mxu0 }
 0x34d   :  { %v3111_v38 = vpop.f32.mrb[11].mxu0 }
 0x351   :  { %v2405_v1 = vpop.f32.mrb[8].mxu1 }
 0x352   :  { %v2409_v46 = vadd.f32 %v2405_v1, %v2317_v63  ;;  %v3078_v22 = vpop.f32.mrb[9].mxu1 }
 0x354   :  { %v2499_v14 = vadd.f32 %v2495_v16, %v2409_v46 }
 0x359   :  { %v2585_v47 = vpop.f32.mrb[10].mxu1 }
 0x35a   :  { %v2589_v19 = vadd.f32 %v2585_v47, %v2499_v14  ;;  %v3100_v42 = vpop.f32.mrb[11].mxu1 }
 0x35c   :  { %v2679_v24 = vadd.f32 %v2675_v45, %v2589_v19 }
 0x35e   :  { %v2687_v13 = vadd.f32 %v2872_v44, %v2679_v24 }
 0x360   :  { %v2688_v48 = vmax.f32 %v2687_v13, 0.0 }
 0x362   :  { %3123 = vmatmul.mubr.msk.f32.vlgmr.msra.gmra.mrb[12].mxu1 %vm2701_vm15, %v2688_v48 }
 0x435   :  { %v2771_v50 = vpop.f32.mrb[12].mxu1 }
 0x436   :  { %v2772_v11 = vadd.f32 %v2873_v23, %v2771_v50  ;;  %v3124_v28 = vpop.f32.mrb[13].mxu1 }
 0x438   :  { %2775 = vst [vmem:[#allocation7] sm:$0x3] %v2772_v11 }
 0x439   :  { %3288 = shalt.err (!%p3285_p6)
}
 0x43a   :  { %s3289_s28 = scalar_lea.hbm %s4219_s9, 32 }
 0x43b   :  { %p3290_p7 = scmp.ne.s32.totalorder %s4219_s9, %s3289_s28  ;;  %p3293_p8 = scmp.lt.u32.totalorder %s3289_s28, %s4219_s9 }
 0x43d   :  { %p3295_p9 = pnand %p3293_p8, %p3290_p7 }
 0x43f   :  { %3298 = shalt.err (!%p3295_p9)
}
 0x440   :  { %2785 = dma.vmem_to_hbm [thread:$0]  %s2783_s25, 32, %s4219_s9, [#allocation4]  }
 0x441   :  { %3303 = dma.done.wait [#allocation4], 32  }
 0x442   :  { %3304 = vsyncadd [#allocation4], 4294967264 }
 0x443   :  { %2789 = vsyncpa [#allocation3], 1 }
 0x444   :  { %2790 = vsyncpa [#allocation6], 1 }
 0x445   :  { %2791 = vsyncpa [#allocation4], 1 }

</bundles_post_ra>
